<compile_context>
chip_gen: v5e
topology: v5e:2x2
jax: 0.10.0
libtpu: 0.0.40
codegen_flags: <defaults>
</compile_context>

<pallas_src>
import functools

import jax
import jax.numpy as jnp
from jax import lax
from jax.experimental import pallas as pl
from jax.experimental.pallas import tpu as pltpu

KSIZE = 7
PAD = 3


def _attention_kernel(x_ref, w_ref, b_ref, convw_ref, out_ref, *, img_w):
    # x block: (1, C, H*W) — one batch element, channels on sublanes,
    # flattened spatial on lanes (lane-dense).
    x = x_ref[0].astype(jnp.float32)                      # (C, HW)
    C, HW = x.shape
    W = img_w

    # ---------------- channel attention (GAP / GMP -> Linear -> sigmoid) -----
    avg_c = jnp.mean(x, axis=1, keepdims=True)            # (C, 1)
    max_c = jnp.max(x, axis=1, keepdims=True)             # (C, 1)
    pooled = jnp.concatenate([avg_c, max_c], axis=1)      # (C, 2)
    w = w_ref[...].astype(jnp.float32)                    # (C, C) torch (out,in)
    b = b_ref[...].astype(jnp.float32)                    # (C, 1)
    # Fused: one MXU matmul for both pooled vectors, one sigmoid.
    logits = jnp.dot(w, pooled, preferred_element_type=jnp.float32) + b  # (C,2)
    chan = jnp.mean(jax.nn.sigmoid(logits), axis=1, keepdims=True)       # (C,1)

    # ---------------- spatial attention (mean/max over C -> 7x7 conv) --------
    avg_s = jnp.mean(x, axis=0, keepdims=True)            # (1, HW)
    max_s = jnp.max(x, axis=0, keepdims=True)             # (1, HW)
    sp = jnp.concatenate([avg_s, max_s], axis=0)          # (2, HW)

    # Zero-pad on the lane axis only: covers +/-3 rows (3*W) and +/-3 columns.
    LP = PAD * W + PAD
    zpad = jnp.zeros((2, LP), jnp.float32)
    flatpad = jnp.concatenate([zpad, sp, zpad], axis=1)   # (2, HW + 2*LP)

    # Column index of every lane (for masking column wrap-around at row edges).
    col = lax.broadcasted_iota(jnp.int32, (1, HW), 1) % W

    # 7x7 "same" conv (no bias) on the flattened layout:
    #   out[p] = sum_{cin,kh,kw} k[cin,kh,kw] * flatpad[cin, p + kh*W + kw]
    # with a per-kw column-validity mask.
    acc = jnp.zeros((1, HW), jnp.float32)
    for kw in range(KSIZE):
        shifted_col = col + (kw - PAD)
        maskf = ((shifted_col >= 0) & (shifted_col < W)).astype(jnp.float32)
        part = jnp.zeros((1, HW), jnp.float32)
        for cin in range(2):
            for kh in range(KSIZE):
                wv = convw_ref[cin * KSIZE * KSIZE + kh * KSIZE + kw]  # SMEM scalar
                s = kh * W + kw
                part = part + wv * flatpad[cin:cin + 1, s:s + HW]
        acc = acc + part * maskf
    spat = jax.nn.sigmoid(acc)                            # (1, HW)

    # ---------------- combine (lane-dense store) ------------------------------
    out_ref[0] = (x * chan * spat).astype(out_ref.dtype)


def attention_scale(x_nchw, torch_w, torch_b, conv_w):
    """One scale of the Attention module.  x_nchw: (B, C, H, W) as in PyTorch."""
    B, C, H, W = x_nchw.shape
    HW = H * W
    x_flat = x_nchw.reshape(B, C, HW)        # contiguous reshape — no transpose
    bias = torch_b.reshape(C, 1)
    conv_flat = conv_w.reshape(-1)           # (2*7*7,), OIHW order [avg-ch, max-ch]

    kernel = functools.partial(_attention_kernel, img_w=W)
    out_flat = pl.pallas_call(
        kernel,
        out_shape=jax.ShapeDtypeStruct((B, C, HW), x_nchw.dtype),
        grid_spec=pltpu.PrefetchScalarGridSpec(
            num_scalar_prefetch=0,
            grid=(B,),
            in_specs=[
                pl.BlockSpec((1, C, HW), lambda b: (b, 0, 0)),
                pl.BlockSpec((C, C), lambda b: (0, 0)),
                pl.BlockSpec((C, 1), lambda b: (0, 0)),
                pl.BlockSpec(memory_space=pltpu.MemorySpace.SMEM),
            ],
            out_specs=pl.BlockSpec((1, C, HW), lambda b: (b, 0, 0)),
        ),
        compiler_params=pltpu.CompilerParams(
            dimension_semantics=("parallel",)),   # v7x: split batches over 2 TCs
    )(x_flat, torch_w, bias, conv_flat)
    return out_flat.reshape(B, C, H, W)


def attention_forward(xs, dense_params, conv_w):
    return tuple(
        attention_scale(x, w, b, conv_w) for x, (w, b) in zip(xs, dense_params))


# -------------------------- plain-JAX reference ------------------------------
def ref_attention_scale(x, torch_w, torch_b, conv_w):
    avg_c = x.mean(axis=(2, 3))
    max_c = x.max(axis=(2, 3))
    a = jax.nn.sigmoid(avg_c @ torch_w.T + torch_b)
    m = jax.nn.sigmoid(max_c @ torch_w.T + torch_b)
    cw = (a + m) / 2.0
    avg_s = x.mean(axis=1, keepdims=True)
    max_s = x.max(axis=1, keepdims=True)
    sp = jnp.concatenate([avg_s, max_s], axis=1)
    conv = lax.conv_general_dilated(
        sp, conv_w, (1, 1), ((PAD, PAD), (PAD, PAD)),
        dimension_numbers=("NCHW", "OIHW", "NCHW"))
    sw = jax.nn.sigmoid(conv)
    return x * cw[:, :, None, None] * sw


if __name__ == "__main__":
    key = jax.random.PRNGKey(0)
    B = 2
    # Module instantiated with dim=32  ->  dim = [32, 32, 32, 32]
    dims = [32, 32, 32, 32]
    spatial = [(16, 16), (12, 12), (8, 8), (8, 8)]
    keys = jax.random.split(key, 16)

    xs = [jax.random.normal(keys[i], (B, dims[i], h, w), jnp.float32)
          for i, (h, w) in enumerate(spatial)]

    # Deterministic parameter init (PyTorch Linear convention: W (out,in), bias).
    dense_params = []
    for i in range(4):
        kw_, kb_ = jax.random.split(keys[4 + i])
        bound = 1.0 / (dims[i] ** 0.5)
        Wt = jax.random.uniform(kw_, (dims[i], dims[i]), jnp.float32, -bound, bound)
        bt = jax.random.uniform(kb_, (dims[i],), jnp.float32, -bound, bound)
        dense_params.append((Wt, bt))
    conv_w = jax.random.normal(keys[10], (1, 2, KSIZE, KSIZE), jnp.float32) * 0.05

    outs = attention_forward(xs, dense_params, conv_w)
    outs = jax.block_until_ready(outs)

    # Correctness check against the pure-JAX reference.
    for x, (w, b), o in zip(xs, dense_params, outs):
        r = ref_attention_scale(x, w, b, conv_w)
        assert o.shape == r.shape and o.dtype == r.dtype
        err = float(jnp.max(jnp.abs(o - r)))
        assert err < 5e-4, f"max abs error {err}"

    print("KERNEL_OK")
</pallas_src>

<mosaic_0001>
module attributes {stable_mosaic.version = 11 : i64} {
  func.func @_attention_kernel(%arg0: i32, %arg1: memref<1x32x256xf32, #tpu.memory_space<vmem>>, %arg2: memref<32x32xf32, #tpu.memory_space<vmem>>, %arg3: memref<32x1xf32, #tpu.memory_space<vmem>>, %arg4: memref<98xf32, #tpu.memory_space<smem>>, %arg5: memref<1x32x256xf32, #tpu.memory_space<vmem>>) attributes {dimension_semantics = [#tpu.dimension_semantics<parallel>], iteration_bounds = array<i64: 2>, scalar_prefetch = 0 : i64, scratch_operands = 0 : i64, tpu.core_type = #tpu.core_type<tc>, window_params = [{transform_indices = @transform_0, window_bounds = array<i64: 1, 32, 256>}, {pipeline_mode = #tpu.pipeline_mode<synchronous>, transform_indices = @transform_1, window_bounds = array<i64: 32, 32>}, {pipeline_mode = #tpu.pipeline_mode<synchronous>, transform_indices = @transform_2, window_bounds = array<i64: 32, 1>}, {transform_indices = @transform_3, window_bounds = array<i64: 98>}, {transform_indices = @transform_4, window_bounds = array<i64: 1, 32, 256>}]} {
    %c0 = arith.constant 0 : index
    %c0_0 = arith.constant 0 : index
    %c0_1 = arith.constant 0 : index
    %0 = vector.load %arg1[%c0, %c0_0, %c0_1] : memref<1x32x256xf32, #tpu.memory_space<vmem>>, vector<1x32x256xf32>
    %1 = vector.shape_cast %0 : vector<1x32x256xf32> to vector<32x256xf32>
    %cst = arith.constant dense<0.000000e+00> : vector<32xf32>
    %2 = vector.multi_reduction <add>, %1, %cst [1] : vector<32x256xf32> to vector<32xf32>
    %3 = vector.shape_cast %2 : vector<32xf32> to vector<32x1xf32>
    %cst_2 = arith.constant 2.560000e+02 : f32
    %4 = vector.broadcast %cst_2 : f32 to vector<32x1xf32>
    %5 = arith.divf %3, %4 : vector<32x1xf32>
    %cst_3 = arith.constant dense<0xFF800000> : vector<32xf32>
    %6 = vector.multi_reduction <maximumf>, %1, %cst_3 [1] : vector<32x256xf32> to vector<32xf32>
    %7 = vector.shape_cast %6 : vector<32xf32> to vector<32x1xf32>
    %8 = tpu.concatenate %5, %7 in 1 : vector<32x1xf32>, vector<32x1xf32> -> vector<32x2xf32>
    %c0_4 = arith.constant 0 : index
    %c0_5 = arith.constant 0 : index
    %9 = vector.load %arg2[%c0_4, %c0_5] : memref<32x32xf32, #tpu.memory_space<vmem>>, vector<32x32xf32>
    %c0_6 = arith.constant 0 : index
    %c0_7 = arith.constant 0 : index
    %10 = vector.load %arg3[%c0_6, %c0_7] : memref<32x1xf32, #tpu.memory_space<vmem>>, vector<32x1xf32>
    %cst_8 = arith.constant dense<0.000000e+00> : vector<32x2xf32>
    %11 = tpu.matmul %9, %8, %cst_8 {dimension_numbers = #tpu.dot_dimension_numbers<[1], [0], [0], [1], [0, 0, 1, 1], [], []>} : vector<32x32xf32>, vector<32x2xf32>, vector<32x2xf32> -> vector<32x2xf32>
    %12 = vector.broadcast %10 : vector<32x1xf32> to vector<32x2xf32>
    %13 = arith.addf %11, %12 : vector<32x2xf32>
    %14 = arith.negf %13 : vector<32x2xf32>
    %15 = math.exp %14 : vector<32x2xf32>
    %cst_9 = arith.constant 1.000000e+00 : f32
    %16 = vector.broadcast %cst_9 : f32 to vector<32x2xf32>
    %17 = arith.addf %16, %15 : vector<32x2xf32>
    %18 = arith.divf %16, %17 : vector<32x2xf32>
    %cst_10 = arith.constant dense<0.000000e+00> : vector<32xf32>
    %19 = vector.multi_reduction <add>, %18, %cst_10 [1] : vector<32x2xf32> to vector<32xf32>
    %20 = vector.shape_cast %19 : vector<32xf32> to vector<32x1xf32>
    %cst_11 = arith.constant 2.000000e+00 : f32
    %21 = vector.broadcast %cst_11 : f32 to vector<32x1xf32>
    %22 = arith.divf %20, %21 : vector<32x1xf32>
    %cst_12 = arith.constant dense<0.000000e+00> : vector<256xf32>
    %23 = vector.multi_reduction <add>, %1, %cst_12 [0] : vector<32x256xf32> to vector<256xf32>
    %24 = vector.shape_cast %23 : vector<256xf32> to vector<1x256xf32>
    %cst_13 = arith.constant 3.200000e+01 : f32
    %25 = vector.broadcast %cst_13 : f32 to vector<1x256xf32>
    %26 = arith.divf %24, %25 : vector<1x256xf32>
    %cst_14 = arith.constant dense<0xFF800000> : vector<256xf32>
    %27 = vector.multi_reduction <maximumf>, %1, %cst_14 [0] : vector<32x256xf32> to vector<256xf32>
    %28 = vector.shape_cast %27 : vector<256xf32> to vector<1x256xf32>
    %29 = tpu.concatenate %26, %28 in 0 : vector<1x256xf32>, vector<1x256xf32> -> vector<2x256xf32>
    %cst_15 = arith.constant 0.000000e+00 : f32
    %30 = vector.broadcast %cst_15 : f32 to vector<2x51xf32>
    %31 = tpu.concatenate %30, %29, %30 in 1 : vector<2x51xf32>, vector<2x256xf32>, vector<2x51xf32> -> vector<2x358xf32>
    %32 = tpu.iota {dimensions = array<i32: 1>} : vector<1x256xi32>
    %c16_i32 = arith.constant 16 : i32
    %c0_i32 = arith.constant 0 : i32
    %33 = arith.cmpi eq, %c16_i32, %c0_i32 : i32
    %c1_i32 = arith.constant 1 : i32
    %34 = arith.select %33, %c1_i32, %c16_i32 : i32
    %35 = vector.broadcast %34 : i32 to vector<1x256xi32>
    %36 = arith.remsi %32, %35 : vector<1x256xi32>
    %c0_i32_16 = arith.constant 0 : i32
    %37 = vector.broadcast %c0_i32_16 : i32 to vector<1x256xi32>
    %38 = arith.cmpi ne, %36, %37 : vector<1x256xi32>
    %c0_i32_17 = arith.constant 0 : i32
    %39 = vector.broadcast %c0_i32_17 : i32 to vector<1x256xi32>
    %40 = arith.cmpi slt, %36, %39 : vector<1x256xi32>
    %c0_i32_18 = arith.constant 0 : i32
    %41 = arith.cmpi slt, %34, %c0_i32_18 : i32
    %42 = vector.broadcast %41 : i1 to vector<1x256xi1>
    %43 = vector.broadcast %42 : vector<1x256xi1> to vector<1x256xi1>
    %44 = arith.xori %40, %43 : vector<1x256xi1>
    %45 = arith.andi %44, %38 : vector<1x256xi1>
    %46 = vector.broadcast %34 : i32 to vector<1x256xi32>
    %47 = arith.addi %36, %46 : vector<1x256xi32>
    %48 = arith.select %45, %47, %36 : vector<1x256xi1>, vector<1x256xi32>
    %cst_19 = arith.constant 0.000000e+00 : f32
    %49 = vector.broadcast %cst_19 : f32 to vector<1x256xf32>
    %c-3_i32 = arith.constant -3 : i32
    %50 = vector.broadcast %c-3_i32 : i32 to vector<1x256xi32>
    %51 = arith.addi %48, %50 : vector<1x256xi32>
    %c0_i32_20 = arith.constant 0 : i32
    %52 = vector.broadcast %c0_i32_20 : i32 to vector<1x256xi32>
    %53 = arith.cmpi sge, %51, %52 : vector<1x256xi32>
    %c16_i32_21 = arith.constant 16 : i32
    %54 = vector.broadcast %c16_i32_21 : i32 to vector<1x256xi32>
    %55 = arith.cmpi slt, %51, %54 : vector<1x256xi32>
    %56 = arith.andi %53, %55 : vector<1x256xi1>
    %57 = arith.extui %56 : vector<1x256xi1> to vector<1x256xi32>
    %58 = arith.sitofp %57 : vector<1x256xi32> to vector<1x256xf32>
    %cst_22 = arith.constant 0.000000e+00 : f32
    %59 = vector.broadcast %cst_22 : f32 to vector<1x256xf32>
    %c0_23 = arith.constant 0 : index
    %60 = memref.load %arg4[%c0_23] : memref<98xf32, #tpu.memory_space<smem>>
    %61 = vector.extract_strided_slice %31 {offsets = [0, 0], sizes = [1, 256], strides = [1, 1]} : vector<2x358xf32> to vector<1x256xf32>
    %62 = vector.broadcast %60 : f32 to vector<1x256xf32>
    %63 = arith.mulf %62, %61 : vector<1x256xf32>
    %64 = arith.addf %59, %63 : vector<1x256xf32>
    %c7 = arith.constant 7 : index
    %65 = memref.load %arg4[%c7] : memref<98xf32, #tpu.memory_space<smem>>
    %66 = vector.extract_strided_slice %31 {offsets = [0, 16], sizes = [1, 256], strides = [1, 1]} : vector<2x358xf32> to vector<1x256xf32>
    %67 = vector.broadcast %65 : f32 to vector<1x256xf32>
    %68 = arith.mulf %67, %66 : vector<1x256xf32>
    %69 = arith.addf %64, %68 : vector<1x256xf32>
    %c14 = arith.constant 14 : index
    %70 = memref.load %arg4[%c14] : memref<98xf32, #tpu.memory_space<smem>>
    %71 = vector.extract_strided_slice %31 {offsets = [0, 32], sizes = [1, 256], strides = [1, 1]} : vector<2x358xf32> to vector<1x256xf32>
    %72 = vector.broadcast %70 : f32 to vector<1x256xf32>
    %73 = arith.mulf %72, %71 : vector<1x256xf32>
    %74 = arith.addf %69, %73 : vector<1x256xf32>
    %c21 = arith.constant 21 : index
    %75 = memref.load %arg4[%c21] : memref<98xf32, #tpu.memory_space<smem>>
    %76 = vector.extract_strided_slice %31 {offsets = [0, 48], sizes = [1, 256], strides = [1, 1]} : vector<2x358xf32> to vector<1x256xf32>
    %77 = vector.broadcast %75 : f32 to vector<1x256xf32>
    %78 = arith.mulf %77, %76 : vector<1x256xf32>
    %79 = arith.addf %74, %78 : vector<1x256xf32>
    %c28 = arith.constant 28 : index
    %80 = memref.load %arg4[%c28] : memref<98xf32, #tpu.memory_space<smem>>
    %81 = vector.extract_strided_slice %31 {offsets = [0, 64], sizes = [1, 256], strides = [1, 1]} : vector<2x358xf32> to vector<1x256xf32>
    %82 = vector.broadcast %80 : f32 to vector<1x256xf32>
    %83 = arith.mulf %82, %81 : vector<1x256xf32>
    %84 = arith.addf %79, %83 : vector<1x256xf32>
    %c35 = arith.constant 35 : index
    %85 = memref.load %arg4[%c35] : memref<98xf32, #tpu.memory_space<smem>>
    %86 = vector.extract_strided_slice %31 {offsets = [0, 80], sizes = [1, 256], strides = [1, 1]} : vector<2x358xf32> to vector<1x256xf32>
    %87 = vector.broadcast %85 : f32 to vector<1x256xf32>
    %88 = arith.mulf %87, %86 : vector<1x256xf32>
    %89 = arith.addf %84, %88 : vector<1x256xf32>
    %c42 = arith.constant 42 : index
    %90 = memref.load %arg4[%c42] : memref<98xf32, #tpu.memory_space<smem>>
    %91 = vector.extract_strided_slice %31 {offsets = [0, 96], sizes = [1, 256], strides = [1, 1]} : vector<2x358xf32> to vector<1x256xf32>
    %92 = vector.broadcast %90 : f32 to vector<1x256xf32>
    %93 = arith.mulf %92, %91 : vector<1x256xf32>
    %94 = arith.addf %89, %93 : vector<1x256xf32>
    %c49 = arith.constant 49 : index
    %95 = memref.load %arg4[%c49] : memref<98xf32, #tpu.memory_space<smem>>
    %96 = vector.extract_strided_slice %31 {offsets = [1, 0], sizes = [1, 256], strides = [1, 1]} : vector<2x358xf32> to vector<1x256xf32>
    %97 = vector.broadcast %95 : f32 to vector<1x256xf32>
    %98 = arith.mulf %97, %96 : vector<1x256xf32>
    %99 = arith.addf %94, %98 : vector<1x256xf32>
    %c56 = arith.constant 56 : index
    %100 = memref.load %arg4[%c56] : memref<98xf32, #tpu.memory_space<smem>>
    %101 = vector.extract_strided_slice %31 {offsets = [1, 16], sizes = [1, 256], strides = [1, 1]} : vector<2x358xf32> to vector<1x256xf32>
    %102 = vector.broadcast %100 : f32 to vector<1x256xf32>
    %103 = arith.mulf %102, %101 : vector<1x256xf32>
    %104 = arith.addf %99, %103 : vector<1x256xf32>
    %c63 = arith.constant 63 : index
    %105 = memref.load %arg4[%c63] : memref<98xf32, #tpu.memory_space<smem>>
    %106 = vector.extract_strided_slice %31 {offsets = [1, 32], sizes = [1, 256], strides = [1, 1]} : vector<2x358xf32> to vector<1x256xf32>
    %107 = vector.broadcast %105 : f32 to vector<1x256xf32>
    %108 = arith.mulf %107, %106 : vector<1x256xf32>
    %109 = arith.addf %104, %108 : vector<1x256xf32>
    %c70 = arith.constant 70 : index
    %110 = memref.load %arg4[%c70] : memref<98xf32, #tpu.memory_space<smem>>
    %111 = vector.extract_strided_slice %31 {offsets = [1, 48], sizes = [1, 256], strides = [1, 1]} : vector<2x358xf32> to vector<1x256xf32>
    %112 = vector.broadcast %110 : f32 to vector<1x256xf32>
    %113 = arith.mulf %112, %111 : vector<1x256xf32>
    %114 = arith.addf %109, %113 : vector<1x256xf32>
    %c77 = arith.constant 77 : index
    %115 = memref.load %arg4[%c77] : memref<98xf32, #tpu.memory_space<smem>>
    %116 = vector.extract_strided_slice %31 {offsets = [1, 64], sizes = [1, 256], strides = [1, 1]} : vector<2x358xf32> to vector<1x256xf32>
    %117 = vector.broadcast %115 : f32 to vector<1x256xf32>
    %118 = arith.mulf %117, %116 : vector<1x256xf32>
    %119 = arith.addf %114, %118 : vector<1x256xf32>
    %c84 = arith.constant 84 : index
    %120 = memref.load %arg4[%c84] : memref<98xf32, #tpu.memory_space<smem>>
    %121 = vector.extract_strided_slice %31 {offsets = [1, 80], sizes = [1, 256], strides = [1, 1]} : vector<2x358xf32> to vector<1x256xf32>
    %122 = vector.broadcast %120 : f32 to vector<1x256xf32>
    %123 = arith.mulf %122, %121 : vector<1x256xf32>
    %124 = arith.addf %119, %123 : vector<1x256xf32>
    %c91 = arith.constant 91 : index
    %125 = memref.load %arg4[%c91] : memref<98xf32, #tpu.memory_space<smem>>
    %126 = vector.extract_strided_slice %31 {offsets = [1, 96], sizes = [1, 256], strides = [1, 1]} : vector<2x358xf32> to vector<1x256xf32>
    %127 = vector.broadcast %125 : f32 to vector<1x256xf32>
    %128 = arith.mulf %127, %126 : vector<1x256xf32>
    %129 = arith.addf %124, %128 : vector<1x256xf32>
    %130 = arith.mulf %129, %58 : vector<1x256xf32>
    %131 = arith.addf %49, %130 : vector<1x256xf32>
    %c-2_i32 = arith.constant -2 : i32
    %132 = vector.broadcast %c-2_i32 : i32 to vector<1x256xi32>
    %133 = arith.addi %48, %132 : vector<1x256xi32>
    %c0_i32_24 = arith.constant 0 : i32
    %134 = vector.broadcast %c0_i32_24 : i32 to vector<1x256xi32>
    %135 = arith.cmpi sge, %133, %134 : vector<1x256xi32>
    %c16_i32_25 = arith.constant 16 : i32
    %136 = vector.broadcast %c16_i32_25 : i32 to vector<1x256xi32>
    %137 = arith.cmpi slt, %133, %136 : vector<1x256xi32>
    %138 = arith.andi %135, %137 : vector<1x256xi1>
    %139 = arith.extui %138 : vector<1x256xi1> to vector<1x256xi32>
    %140 = arith.sitofp %139 : vector<1x256xi32> to vector<1x256xf32>
    %cst_26 = arith.constant 0.000000e+00 : f32
    %141 = vector.broadcast %cst_26 : f32 to vector<1x256xf32>
    %c1 = arith.constant 1 : index
    %142 = memref.load %arg4[%c1] : memref<98xf32, #tpu.memory_space<smem>>
    %143 = vector.extract_strided_slice %31 {offsets = [0, 1], sizes = [1, 256], strides = [1, 1]} : vector<2x358xf32> to vector<1x256xf32>
    %144 = vector.broadcast %142 : f32 to vector<1x256xf32>
    %145 = arith.mulf %144, %143 : vector<1x256xf32>
    %146 = arith.addf %141, %145 : vector<1x256xf32>
    %c8 = arith.constant 8 : index
    %147 = memref.load %arg4[%c8] : memref<98xf32, #tpu.memory_space<smem>>
    %148 = vector.extract_strided_slice %31 {offsets = [0, 17], sizes = [1, 256], strides = [1, 1]} : vector<2x358xf32> to vector<1x256xf32>
    %149 = vector.broadcast %147 : f32 to vector<1x256xf32>
    %150 = arith.mulf %149, %148 : vector<1x256xf32>
    %151 = arith.addf %146, %150 : vector<1x256xf32>
    %c15 = arith.constant 15 : index
    %152 = memref.load %arg4[%c15] : memref<98xf32, #tpu.memory_space<smem>>
    %153 = vector.extract_strided_slice %31 {offsets = [0, 33], sizes = [1, 256], strides = [1, 1]} : vector<2x358xf32> to vector<1x256xf32>
    %154 = vector.broadcast %152 : f32 to vector<1x256xf32>
    %155 = arith.mulf %154, %153 : vector<1x256xf32>
    %156 = arith.addf %151, %155 : vector<1x256xf32>
    %c22 = arith.constant 22 : index
    %157 = memref.load %arg4[%c22] : memref<98xf32, #tpu.memory_space<smem>>
    %158 = vector.extract_strided_slice %31 {offsets = [0, 49], sizes = [1, 256], strides = [1, 1]} : vector<2x358xf32> to vector<1x256xf32>
    %159 = vector.broadcast %157 : f32 to vector<1x256xf32>
    %160 = arith.mulf %159, %158 : vector<1x256xf32>
    %161 = arith.addf %156, %160 : vector<1x256xf32>
    %c29 = arith.constant 29 : index
    %162 = memref.load %arg4[%c29] : memref<98xf32, #tpu.memory_space<smem>>
    %163 = vector.extract_strided_slice %31 {offsets = [0, 65], sizes = [1, 256], strides = [1, 1]} : vector<2x358xf32> to vector<1x256xf32>
    %164 = vector.broadcast %162 : f32 to vector<1x256xf32>
    %165 = arith.mulf %164, %163 : vector<1x256xf32>
    %166 = arith.addf %161, %165 : vector<1x256xf32>
    %c36 = arith.constant 36 : index
    %167 = memref.load %arg4[%c36] : memref<98xf32, #tpu.memory_space<smem>>
    %168 = vector.extract_strided_slice %31 {offsets = [0, 81], sizes = [1, 256], strides = [1, 1]} : vector<2x358xf32> to vector<1x256xf32>
    %169 = vector.broadcast %167 : f32 to vector<1x256xf32>
    %170 = arith.mulf %169, %168 : vector<1x256xf32>
    %171 = arith.addf %166, %170 : vector<1x256xf32>
    %c43 = arith.constant 43 : index
    %172 = memref.load %arg4[%c43] : memref<98xf32, #tpu.memory_space<smem>>
    %173 = vector.extract_strided_slice %31 {offsets = [0, 97], sizes = [1, 256], strides = [1, 1]} : vector<2x358xf32> to vector<1x256xf32>
    %174 = vector.broadcast %172 : f32 to vector<1x256xf32>
    %175 = arith.mulf %174, %173 : vector<1x256xf32>
    %176 = arith.addf %171, %175 : vector<1x256xf32>
    %c50 = arith.constant 50 : index
    %177 = memref.load %arg4[%c50] : memref<98xf32, #tpu.memory_space<smem>>
    %178 = vector.extract_strided_slice %31 {offsets = [1, 1], sizes = [1, 256], strides = [1, 1]} : vector<2x358xf32> to vector<1x256xf32>
    %179 = vector.broadcast %177 : f32 to vector<1x256xf32>
    %180 = arith.mulf %179, %178 : vector<1x256xf32>
    %181 = arith.addf %176, %180 : vector<1x256xf32>
    %c57 = arith.constant 57 : index
    %182 = memref.load %arg4[%c57] : memref<98xf32, #tpu.memory_space<smem>>
    %183 = vector.extract_strided_slice %31 {offsets = [1, 17], sizes = [1, 256], strides = [1, 1]} : vector<2x358xf32> to vector<1x256xf32>
    %184 = vector.broadcast %182 : f32 to vector<1x256xf32>
    %185 = arith.mulf %184, %183 : vector<1x256xf32>
    %186 = arith.addf %181, %185 : vector<1x256xf32>
    %c64 = arith.constant 64 : index
    %187 = memref.load %arg4[%c64] : memref<98xf32, #tpu.memory_space<smem>>
    %188 = vector.extract_strided_slice %31 {offsets = [1, 33], sizes = [1, 256], strides = [1, 1]} : vector<2x358xf32> to vector<1x256xf32>
    %189 = vector.broadcast %187 : f32 to vector<1x256xf32>
    %190 = arith.mulf %189, %188 : vector<1x256xf32>
    %191 = arith.addf %186, %190 : vector<1x256xf32>
    %c71 = arith.constant 71 : index
    %192 = memref.load %arg4[%c71] : memref<98xf32, #tpu.memory_space<smem>>
    %193 = vector.extract_strided_slice %31 {offsets = [1, 49], sizes = [1, 256], strides = [1, 1]} : vector<2x358xf32> to vector<1x256xf32>
    %194 = vector.broadcast %192 : f32 to vector<1x256xf32>
    %195 = arith.mulf %194, %193 : vector<1x256xf32>
    %196 = arith.addf %191, %195 : vector<1x256xf32>
    %c78 = arith.constant 78 : index
    %197 = memref.load %arg4[%c78] : memref<98xf32, #tpu.memory_space<smem>>
    %198 = vector.extract_strided_slice %31 {offsets = [1, 65], sizes = [1, 256], strides = [1, 1]} : vector<2x358xf32> to vector<1x256xf32>
    %199 = vector.broadcast %197 : f32 to vector<1x256xf32>
    %200 = arith.mulf %199, %198 : vector<1x256xf32>
    %201 = arith.addf %196, %200 : vector<1x256xf32>
    %c85 = arith.constant 85 : index
    %202 = memref.load %arg4[%c85] : memref<98xf32, #tpu.memory_space<smem>>
    %203 = vector.extract_strided_slice %31 {offsets = [1, 81], sizes = [1, 256], strides = [1, 1]} : vector<2x358xf32> to vector<1x256xf32>
    %204 = vector.broadcast %202 : f32 to vector<1x256xf32>
    %205 = arith.mulf %204, %203 : vector<1x256xf32>
    %206 = arith.addf %201, %205 : vector<1x256xf32>
    %c92 = arith.constant 92 : index
    %207 = memref.load %arg4[%c92] : memref<98xf32, #tpu.memory_space<smem>>
    %208 = vector.extract_strided_slice %31 {offsets = [1, 97], sizes = [1, 256], strides = [1, 1]} : vector<2x358xf32> to vector<1x256xf32>
    %209 = vector.broadcast %207 : f32 to vector<1x256xf32>
    %210 = arith.mulf %209, %208 : vector<1x256xf32>
    %211 = arith.addf %206, %210 : vector<1x256xf32>
    %212 = arith.mulf %211, %140 : vector<1x256xf32>
    %213 = arith.addf %131, %212 : vector<1x256xf32>
    %c-1_i32 = arith.constant -1 : i32
    %214 = vector.broadcast %c-1_i32 : i32 to vector<1x256xi32>
    %215 = arith.addi %48, %214 : vector<1x256xi32>
    %c0_i32_27 = arith.constant 0 : i32
    %216 = vector.broadcast %c0_i32_27 : i32 to vector<1x256xi32>
    %217 = arith.cmpi sge, %215, %216 : vector<1x256xi32>
    %c16_i32_28 = arith.constant 16 : i32
    %218 = vector.broadcast %c16_i32_28 : i32 to vector<1x256xi32>
    %219 = arith.cmpi slt, %215, %218 : vector<1x256xi32>
    %220 = arith.andi %217, %219 : vector<1x256xi1>
    %221 = arith.extui %220 : vector<1x256xi1> to vector<1x256xi32>
    %222 = arith.sitofp %221 : vector<1x256xi32> to vector<1x256xf32>
    %cst_29 = arith.constant 0.000000e+00 : f32
    %223 = vector.broadcast %cst_29 : f32 to vector<1x256xf32>
    %c2 = arith.constant 2 : index
    %224 = memref.load %arg4[%c2] : memref<98xf32, #tpu.memory_space<smem>>
    %225 = vector.extract_strided_slice %31 {offsets = [0, 2], sizes = [1, 256], strides = [1, 1]} : vector<2x358xf32> to vector<1x256xf32>
    %226 = vector.broadcast %224 : f32 to vector<1x256xf32>
    %227 = arith.mulf %226, %225 : vector<1x256xf32>
    %228 = arith.addf %223, %227 : vector<1x256xf32>
    %c9 = arith.constant 9 : index
    %229 = memref.load %arg4[%c9] : memref<98xf32, #tpu.memory_space<smem>>
    %230 = vector.extract_strided_slice %31 {offsets = [0, 18], sizes = [1, 256], strides = [1, 1]} : vector<2x358xf32> to vector<1x256xf32>
    %231 = vector.broadcast %229 : f32 to vector<1x256xf32>
    %232 = arith.mulf %231, %230 : vector<1x256xf32>
    %233 = arith.addf %228, %232 : vector<1x256xf32>
    %c16 = arith.constant 16 : index
    %234 = memref.load %arg4[%c16] : memref<98xf32, #tpu.memory_space<smem>>
    %235 = vector.extract_strided_slice %31 {offsets = [0, 34], sizes = [1, 256], strides = [1, 1]} : vector<2x358xf32> to vector<1x256xf32>
    %236 = vector.broadcast %234 : f32 to vector<1x256xf32>
    %237 = arith.mulf %236, %235 : vector<1x256xf32>
    %238 = arith.addf %233, %237 : vector<1x256xf32>
    %c23 = arith.constant 23 : index
    %239 = memref.load %arg4[%c23] : memref<98xf32, #tpu.memory_space<smem>>
    %240 = vector.extract_strided_slice %31 {offsets = [0, 50], sizes = [1, 256], strides = [1, 1]} : vector<2x358xf32> to vector<1x256xf32>
    %241 = vector.broadcast %239 : f32 to vector<1x256xf32>
    %242 = arith.mulf %241, %240 : vector<1x256xf32>
    %243 = arith.addf %238, %242 : vector<1x256xf32>
    %c30 = arith.constant 30 : index
    %244 = memref.load %arg4[%c30] : memref<98xf32, #tpu.memory_space<smem>>
    %245 = vector.extract_strided_slice %31 {offsets = [0, 66], sizes = [1, 256], strides = [1, 1]} : vector<2x358xf32> to vector<1x256xf32>
    %246 = vector.broadcast %244 : f32 to vector<1x256xf32>
    %247 = arith.mulf %246, %245 : vector<1x256xf32>
    %248 = arith.addf %243, %247 : vector<1x256xf32>
    %c37 = arith.constant 37 : index
    %249 = memref.load %arg4[%c37] : memref<98xf32, #tpu.memory_space<smem>>
    %250 = vector.extract_strided_slice %31 {offsets = [0, 82], sizes = [1, 256], strides = [1, 1]} : vector<2x358xf32> to vector<1x256xf32>
    %251 = vector.broadcast %249 : f32 to vector<1x256xf32>
    %252 = arith.mulf %251, %250 : vector<1x256xf32>
    %253 = arith.addf %248, %252 : vector<1x256xf32>
    %c44 = arith.constant 44 : index
    %254 = memref.load %arg4[%c44] : memref<98xf32, #tpu.memory_space<smem>>
    %255 = vector.extract_strided_slice %31 {offsets = [0, 98], sizes = [1, 256], strides = [1, 1]} : vector<2x358xf32> to vector<1x256xf32>
    %256 = vector.broadcast %254 : f32 to vector<1x256xf32>
    %257 = arith.mulf %256, %255 : vector<1x256xf32>
    %258 = arith.addf %253, %257 : vector<1x256xf32>
    %c51 = arith.constant 51 : index
    %259 = memref.load %arg4[%c51] : memref<98xf32, #tpu.memory_space<smem>>
    %260 = vector.extract_strided_slice %31 {offsets = [1, 2], sizes = [1, 256], strides = [1, 1]} : vector<2x358xf32> to vector<1x256xf32>
    %261 = vector.broadcast %259 : f32 to vector<1x256xf32>
    %262 = arith.mulf %261, %260 : vector<1x256xf32>
    %263 = arith.addf %258, %262 : vector<1x256xf32>
    %c58 = arith.constant 58 : index
    %264 = memref.load %arg4[%c58] : memref<98xf32, #tpu.memory_space<smem>>
    %265 = vector.extract_strided_slice %31 {offsets = [1, 18], sizes = [1, 256], strides = [1, 1]} : vector<2x358xf32> to vector<1x256xf32>
    %266 = vector.broadcast %264 : f32 to vector<1x256xf32>
    %267 = arith.mulf %266, %265 : vector<1x256xf32>
    %268 = arith.addf %263, %267 : vector<1x256xf32>
    %c65 = arith.constant 65 : index
    %269 = memref.load %arg4[%c65] : memref<98xf32, #tpu.memory_space<smem>>
    %270 = vector.extract_strided_slice %31 {offsets = [1, 34], sizes = [1, 256], strides = [1, 1]} : vector<2x358xf32> to vector<1x256xf32>
    %271 = vector.broadcast %269 : f32 to vector<1x256xf32>
    %272 = arith.mulf %271, %270 : vector<1x256xf32>
    %273 = arith.addf %268, %272 : vector<1x256xf32>
    %c72 = arith.constant 72 : index
    %274 = memref.load %arg4[%c72] : memref<98xf32, #tpu.memory_space<smem>>
    %275 = vector.extract_strided_slice %31 {offsets = [1, 50], sizes = [1, 256], strides = [1, 1]} : vector<2x358xf32> to vector<1x256xf32>
    %276 = vector.broadcast %274 : f32 to vector<1x256xf32>
    %277 = arith.mulf %276, %275 : vector<1x256xf32>
    %278 = arith.addf %273, %277 : vector<1x256xf32>
    %c79 = arith.constant 79 : index
    %279 = memref.load %arg4[%c79] : memref<98xf32, #tpu.memory_space<smem>>
    %280 = vector.extract_strided_slice %31 {offsets = [1, 66], sizes = [1, 256], strides = [1, 1]} : vector<2x358xf32> to vector<1x256xf32>
    %281 = vector.broadcast %279 : f32 to vector<1x256xf32>
    %282 = arith.mulf %281, %280 : vector<1x256xf32>
    %283 = arith.addf %278, %282 : vector<1x256xf32>
    %c86 = arith.constant 86 : index
    %284 = memref.load %arg4[%c86] : memref<98xf32, #tpu.memory_space<smem>>
    %285 = vector.extract_strided_slice %31 {offsets = [1, 82], sizes = [1, 256], strides = [1, 1]} : vector<2x358xf32> to vector<1x256xf32>
    %286 = vector.broadcast %284 : f32 to vector<1x256xf32>
    %287 = arith.mulf %286, %285 : vector<1x256xf32>
    %288 = arith.addf %283, %287 : vector<1x256xf32>
    %c93 = arith.constant 93 : index
    %289 = memref.load %arg4[%c93] : memref<98xf32, #tpu.memory_space<smem>>
    %290 = vector.extract_strided_slice %31 {offsets = [1, 98], sizes = [1, 256], strides = [1, 1]} : vector<2x358xf32> to vector<1x256xf32>
    %291 = vector.broadcast %289 : f32 to vector<1x256xf32>
    %292 = arith.mulf %291, %290 : vector<1x256xf32>
    %293 = arith.addf %288, %292 : vector<1x256xf32>
    %294 = arith.mulf %293, %222 : vector<1x256xf32>
    %295 = arith.addf %213, %294 : vector<1x256xf32>
    %c0_i32_30 = arith.constant 0 : i32
    %296 = vector.broadcast %c0_i32_30 : i32 to vector<1x256xi32>
    %297 = arith.addi %48, %296 : vector<1x256xi32>
    %c0_i32_31 = arith.constant 0 : i32
    %298 = vector.broadcast %c0_i32_31 : i32 to vector<1x256xi32>
    %299 = arith.cmpi sge, %297, %298 : vector<1x256xi32>
    %c16_i32_32 = arith.constant 16 : i32
    %300 = vector.broadcast %c16_i32_32 : i32 to vector<1x256xi32>
    %301 = arith.cmpi slt, %297, %300 : vector<1x256xi32>
    %302 = arith.andi %299, %301 : vector<1x256xi1>
    %303 = arith.extui %302 : vector<1x256xi1> to vector<1x256xi32>
    %304 = arith.sitofp %303 : vector<1x256xi32> to vector<1x256xf32>
    %cst_33 = arith.constant 0.000000e+00 : f32
    %305 = vector.broadcast %cst_33 : f32 to vector<1x256xf32>
    %c3 = arith.constant 3 : index
    %306 = memref.load %arg4[%c3] : memref<98xf32, #tpu.memory_space<smem>>
    %307 = vector.extract_strided_slice %31 {offsets = [0, 3], sizes = [1, 256], strides = [1, 1]} : vector<2x358xf32> to vector<1x256xf32>
    %308 = vector.broadcast %306 : f32 to vector<1x256xf32>
    %309 = arith.mulf %308, %307 : vector<1x256xf32>
    %310 = arith.addf %305, %309 : vector<1x256xf32>
    %c10 = arith.constant 10 : index
    %311 = memref.load %arg4[%c10] : memref<98xf32, #tpu.memory_space<smem>>
    %312 = vector.extract_strided_slice %31 {offsets = [0, 19], sizes = [1, 256], strides = [1, 1]} : vector<2x358xf32> to vector<1x256xf32>
    %313 = vector.broadcast %311 : f32 to vector<1x256xf32>
    %314 = arith.mulf %313, %312 : vector<1x256xf32>
    %315 = arith.addf %310, %314 : vector<1x256xf32>
    %c17 = arith.constant 17 : index
    %316 = memref.load %arg4[%c17] : memref<98xf32, #tpu.memory_space<smem>>
    %317 = vector.extract_strided_slice %31 {offsets = [0, 35], sizes = [1, 256], strides = [1, 1]} : vector<2x358xf32> to vector<1x256xf32>
    %318 = vector.broadcast %316 : f32 to vector<1x256xf32>
    %319 = arith.mulf %318, %317 : vector<1x256xf32>
    %320 = arith.addf %315, %319 : vector<1x256xf32>
    %c24 = arith.constant 24 : index
    %321 = memref.load %arg4[%c24] : memref<98xf32, #tpu.memory_space<smem>>
    %322 = vector.extract_strided_slice %31 {offsets = [0, 51], sizes = [1, 256], strides = [1, 1]} : vector<2x358xf32> to vector<1x256xf32>
    %323 = vector.broadcast %321 : f32 to vector<1x256xf32>
    %324 = arith.mulf %323, %322 : vector<1x256xf32>
    %325 = arith.addf %320, %324 : vector<1x256xf32>
    %c31 = arith.constant 31 : index
    %326 = memref.load %arg4[%c31] : memref<98xf32, #tpu.memory_space<smem>>
    %327 = vector.extract_strided_slice %31 {offsets = [0, 67], sizes = [1, 256], strides = [1, 1]} : vector<2x358xf32> to vector<1x256xf32>
    %328 = vector.broadcast %326 : f32 to vector<1x256xf32>
    %329 = arith.mulf %328, %327 : vector<1x256xf32>
    %330 = arith.addf %325, %329 : vector<1x256xf32>
    %c38 = arith.constant 38 : index
    %331 = memref.load %arg4[%c38] : memref<98xf32, #tpu.memory_space<smem>>
    %332 = vector.extract_strided_slice %31 {offsets = [0, 83], sizes = [1, 256], strides = [1, 1]} : vector<2x358xf32> to vector<1x256xf32>
    %333 = vector.broadcast %331 : f32 to vector<1x256xf32>
    %334 = arith.mulf %333, %332 : vector<1x256xf32>
    %335 = arith.addf %330, %334 : vector<1x256xf32>
    %c45 = arith.constant 45 : index
    %336 = memref.load %arg4[%c45] : memref<98xf32, #tpu.memory_space<smem>>
    %337 = vector.extract_strided_slice %31 {offsets = [0, 99], sizes = [1, 256], strides = [1, 1]} : vector<2x358xf32> to vector<1x256xf32>
    %338 = vector.broadcast %336 : f32 to vector<1x256xf32>
    %339 = arith.mulf %338, %337 : vector<1x256xf32>
    %340 = arith.addf %335, %339 : vector<1x256xf32>
    %c52 = arith.constant 52 : index
    %341 = memref.load %arg4[%c52] : memref<98xf32, #tpu.memory_space<smem>>
    %342 = vector.extract_strided_slice %31 {offsets = [1, 3], sizes = [1, 256], strides = [1, 1]} : vector<2x358xf32> to vector<1x256xf32>
    %343 = vector.broadcast %341 : f32 to vector<1x256xf32>
    %344 = arith.mulf %343, %342 : vector<1x256xf32>
    %345 = arith.addf %340, %344 : vector<1x256xf32>
    %c59 = arith.constant 59 : index
    %346 = memref.load %arg4[%c59] : memref<98xf32, #tpu.memory_space<smem>>
    %347 = vector.extract_strided_slice %31 {offsets = [1, 19], sizes = [1, 256], strides = [1, 1]} : vector<2x358xf32> to vector<1x256xf32>
    %348 = vector.broadcast %346 : f32 to vector<1x256xf32>
    %349 = arith.mulf %348, %347 : vector<1x256xf32>
    %350 = arith.addf %345, %349 : vector<1x256xf32>
    %c66 = arith.constant 66 : index
    %351 = memref.load %arg4[%c66] : memref<98xf32, #tpu.memory_space<smem>>
    %352 = vector.extract_strided_slice %31 {offsets = [1, 35], sizes = [1, 256], strides = [1, 1]} : vector<2x358xf32> to vector<1x256xf32>
    %353 = vector.broadcast %351 : f32 to vector<1x256xf32>
    %354 = arith.mulf %353, %352 : vector<1x256xf32>
    %355 = arith.addf %350, %354 : vector<1x256xf32>
    %c73 = arith.constant 73 : index
    %356 = memref.load %arg4[%c73] : memref<98xf32, #tpu.memory_space<smem>>
    %357 = vector.extract_strided_slice %31 {offsets = [1, 51], sizes = [1, 256], strides = [1, 1]} : vector<2x358xf32> to vector<1x256xf32>
    %358 = vector.broadcast %356 : f32 to vector<1x256xf32>
    %359 = arith.mulf %358, %357 : vector<1x256xf32>
    %360 = arith.addf %355, %359 : vector<1x256xf32>
    %c80 = arith.constant 80 : index
    %361 = memref.load %arg4[%c80] : memref<98xf32, #tpu.memory_space<smem>>
    %362 = vector.extract_strided_slice %31 {offsets = [1, 67], sizes = [1, 256], strides = [1, 1]} : vector<2x358xf32> to vector<1x256xf32>
    %363 = vector.broadcast %361 : f32 to vector<1x256xf32>
    %364 = arith.mulf %363, %362 : vector<1x256xf32>
    %365 = arith.addf %360, %364 : vector<1x256xf32>
    %c87 = arith.constant 87 : index
    %366 = memref.load %arg4[%c87] : memref<98xf32, #tpu.memory_space<smem>>
    %367 = vector.extract_strided_slice %31 {offsets = [1, 83], sizes = [1, 256], strides = [1, 1]} : vector<2x358xf32> to vector<1x256xf32>
    %368 = vector.broadcast %366 : f32 to vector<1x256xf32>
    %369 = arith.mulf %368, %367 : vector<1x256xf32>
    %370 = arith.addf %365, %369 : vector<1x256xf32>
    %c94 = arith.constant 94 : index
    %371 = memref.load %arg4[%c94] : memref<98xf32, #tpu.memory_space<smem>>
    %372 = vector.extract_strided_slice %31 {offsets = [1, 99], sizes = [1, 256], strides = [1, 1]} : vector<2x358xf32> to vector<1x256xf32>
    %373 = vector.broadcast %371 : f32 to vector<1x256xf32>
    %374 = arith.mulf %373, %372 : vector<1x256xf32>
    %375 = arith.addf %370, %374 : vector<1x256xf32>
    %376 = arith.mulf %375, %304 : vector<1x256xf32>
    %377 = arith.addf %295, %376 : vector<1x256xf32>
    %c1_i32_34 = arith.constant 1 : i32
    %378 = vector.broadcast %c1_i32_34 : i32 to vector<1x256xi32>
    %379 = arith.addi %48, %378 : vector<1x256xi32>
    %c0_i32_35 = arith.constant 0 : i32
    %380 = vector.broadcast %c0_i32_35 : i32 to vector<1x256xi32>
    %381 = arith.cmpi sge, %379, %380 : vector<1x256xi32>
    %c16_i32_36 = arith.constant 16 : i32
    %382 = vector.broadcast %c16_i32_36 : i32 to vector<1x256xi32>
    %383 = arith.cmpi slt, %379, %382 : vector<1x256xi32>
    %384 = arith.andi %381, %383 : vector<1x256xi1>
    %385 = arith.extui %384 : vector<1x256xi1> to vector<1x256xi32>
    %386 = arith.sitofp %385 : vector<1x256xi32> to vector<1x256xf32>
    %cst_37 = arith.constant 0.000000e+00 : f32
    %387 = vector.broadcast %cst_37 : f32 to vector<1x256xf32>
    %c4 = arith.constant 4 : index
    %388 = memref.load %arg4[%c4] : memref<98xf32, #tpu.memory_space<smem>>
    %389 = vector.extract_strided_slice %31 {offsets = [0, 4], sizes = [1, 256], strides = [1, 1]} : vector<2x358xf32> to vector<1x256xf32>
    %390 = vector.broadcast %388 : f32 to vector<1x256xf32>
    %391 = arith.mulf %390, %389 : vector<1x256xf32>
    %392 = arith.addf %387, %391 : vector<1x256xf32>
    %c11 = arith.constant 11 : index
    %393 = memref.load %arg4[%c11] : memref<98xf32, #tpu.memory_space<smem>>
    %394 = vector.extract_strided_slice %31 {offsets = [0, 20], sizes = [1, 256], strides = [1, 1]} : vector<2x358xf32> to vector<1x256xf32>
    %395 = vector.broadcast %393 : f32 to vector<1x256xf32>
    %396 = arith.mulf %395, %394 : vector<1x256xf32>
    %397 = arith.addf %392, %396 : vector<1x256xf32>
    %c18 = arith.constant 18 : index
    %398 = memref.load %arg4[%c18] : memref<98xf32, #tpu.memory_space<smem>>
    %399 = vector.extract_strided_slice %31 {offsets = [0, 36], sizes = [1, 256], strides = [1, 1]} : vector<2x358xf32> to vector<1x256xf32>
    %400 = vector.broadcast %398 : f32 to vector<1x256xf32>
    %401 = arith.mulf %400, %399 : vector<1x256xf32>
    %402 = arith.addf %397, %401 : vector<1x256xf32>
    %c25 = arith.constant 25 : index
    %403 = memref.load %arg4[%c25] : memref<98xf32, #tpu.memory_space<smem>>
    %404 = vector.extract_strided_slice %31 {offsets = [0, 52], sizes = [1, 256], strides = [1, 1]} : vector<2x358xf32> to vector<1x256xf32>
    %405 = vector.broadcast %403 : f32 to vector<1x256xf32>
    %406 = arith.mulf %405, %404 : vector<1x256xf32>
    %407 = arith.addf %402, %406 : vector<1x256xf32>
    %c32 = arith.constant 32 : index
    %408 = memref.load %arg4[%c32] : memref<98xf32, #tpu.memory_space<smem>>
    %409 = vector.extract_strided_slice %31 {offsets = [0, 68], sizes = [1, 256], strides = [1, 1]} : vector<2x358xf32> to vector<1x256xf32>
    %410 = vector.broadcast %408 : f32 to vector<1x256xf32>
    %411 = arith.mulf %410, %409 : vector<1x256xf32>
    %412 = arith.addf %407, %411 : vector<1x256xf32>
    %c39 = arith.constant 39 : index
    %413 = memref.load %arg4[%c39] : memref<98xf32, #tpu.memory_space<smem>>
    %414 = vector.extract_strided_slice %31 {offsets = [0, 84], sizes = [1, 256], strides = [1, 1]} : vector<2x358xf32> to vector<1x256xf32>
    %415 = vector.broadcast %413 : f32 to vector<1x256xf32>
    %416 = arith.mulf %415, %414 : vector<1x256xf32>
    %417 = arith.addf %412, %416 : vector<1x256xf32>
    %c46 = arith.constant 46 : index
    %418 = memref.load %arg4[%c46] : memref<98xf32, #tpu.memory_space<smem>>
    %419 = vector.extract_strided_slice %31 {offsets = [0, 100], sizes = [1, 256], strides = [1, 1]} : vector<2x358xf32> to vector<1x256xf32>
    %420 = vector.broadcast %418 : f32 to vector<1x256xf32>
    %421 = arith.mulf %420, %419 : vector<1x256xf32>
    %422 = arith.addf %417, %421 : vector<1x256xf32>
    %c53 = arith.constant 53 : index
    %423 = memref.load %arg4[%c53] : memref<98xf32, #tpu.memory_space<smem>>
    %424 = vector.extract_strided_slice %31 {offsets = [1, 4], sizes = [1, 256], strides = [1, 1]} : vector<2x358xf32> to vector<1x256xf32>
    %425 = vector.broadcast %423 : f32 to vector<1x256xf32>
    %426 = arith.mulf %425, %424 : vector<1x256xf32>
    %427 = arith.addf %422, %426 : vector<1x256xf32>
    %c60 = arith.constant 60 : index
    %428 = memref.load %arg4[%c60] : memref<98xf32, #tpu.memory_space<smem>>
    %429 = vector.extract_strided_slice %31 {offsets = [1, 20], sizes = [1, 256], strides = [1, 1]} : vector<2x358xf32> to vector<1x256xf32>
    %430 = vector.broadcast %428 : f32 to vector<1x256xf32>
    %431 = arith.mulf %430, %429 : vector<1x256xf32>
    %432 = arith.addf %427, %431 : vector<1x256xf32>
    %c67 = arith.constant 67 : index
    %433 = memref.load %arg4[%c67] : memref<98xf32, #tpu.memory_space<smem>>
    %434 = vector.extract_strided_slice %31 {offsets = [1, 36], sizes = [1, 256], strides = [1, 1]} : vector<2x358xf32> to vector<1x256xf32>
    %435 = vector.broadcast %433 : f32 to vector<1x256xf32>
    %436 = arith.mulf %435, %434 : vector<1x256xf32>
    %437 = arith.addf %432, %436 : vector<1x256xf32>
    %c74 = arith.constant 74 : index
    %438 = memref.load %arg4[%c74] : memref<98xf32, #tpu.memory_space<smem>>
    %439 = vector.extract_strided_slice %31 {offsets = [1, 52], sizes = [1, 256], strides = [1, 1]} : vector<2x358xf32> to vector<1x256xf32>
    %440 = vector.broadcast %438 : f32 to vector<1x256xf32>
    %441 = arith.mulf %440, %439 : vector<1x256xf32>
    %442 = arith.addf %437, %441 : vector<1x256xf32>
    %c81 = arith.constant 81 : index
    %443 = memref.load %arg4[%c81] : memref<98xf32, #tpu.memory_space<smem>>
    %444 = vector.extract_strided_slice %31 {offsets = [1, 68], sizes = [1, 256], strides = [1, 1]} : vector<2x358xf32> to vector<1x256xf32>
    %445 = vector.broadcast %443 : f32 to vector<1x256xf32>
    %446 = arith.mulf %445, %444 : vector<1x256xf32>
    %447 = arith.addf %442, %446 : vector<1x256xf32>
    %c88 = arith.constant 88 : index
    %448 = memref.load %arg4[%c88] : memref<98xf32, #tpu.memory_space<smem>>
    %449 = vector.extract_strided_slice %31 {offsets = [1, 84], sizes = [1, 256], strides = [1, 1]} : vector<2x358xf32> to vector<1x256xf32>
    %450 = vector.broadcast %448 : f32 to vector<1x256xf32>
    %451 = arith.mulf %450, %449 : vector<1x256xf32>
    %452 = arith.addf %447, %451 : vector<1x256xf32>
    %c95 = arith.constant 95 : index
    %453 = memref.load %arg4[%c95] : memref<98xf32, #tpu.memory_space<smem>>
    %454 = vector.extract_strided_slice %31 {offsets = [1, 100], sizes = [1, 256], strides = [1, 1]} : vector<2x358xf32> to vector<1x256xf32>
    %455 = vector.broadcast %453 : f32 to vector<1x256xf32>
    %456 = arith.mulf %455, %454 : vector<1x256xf32>
    %457 = arith.addf %452, %456 : vector<1x256xf32>
    %458 = arith.mulf %457, %386 : vector<1x256xf32>
    %459 = arith.addf %377, %458 : vector<1x256xf32>
    %c2_i32 = arith.constant 2 : i32
    %460 = vector.broadcast %c2_i32 : i32 to vector<1x256xi32>
    %461 = arith.addi %48, %460 : vector<1x256xi32>
    %c0_i32_38 = arith.constant 0 : i32
    %462 = vector.broadcast %c0_i32_38 : i32 to vector<1x256xi32>
    %463 = arith.cmpi sge, %461, %462 : vector<1x256xi32>
    %c16_i32_39 = arith.constant 16 : i32
    %464 = vector.broadcast %c16_i32_39 : i32 to vector<1x256xi32>
    %465 = arith.cmpi slt, %461, %464 : vector<1x256xi32>
    %466 = arith.andi %463, %465 : vector<1x256xi1>
    %467 = arith.extui %466 : vector<1x256xi1> to vector<1x256xi32>
    %468 = arith.sitofp %467 : vector<1x256xi32> to vector<1x256xf32>
    %cst_40 = arith.constant 0.000000e+00 : f32
    %469 = vector.broadcast %cst_40 : f32 to vector<1x256xf32>
    %c5 = arith.constant 5 : index
    %470 = memref.load %arg4[%c5] : memref<98xf32, #tpu.memory_space<smem>>
    %471 = vector.extract_strided_slice %31 {offsets = [0, 5], sizes = [1, 256], strides = [1, 1]} : vector<2x358xf32> to vector<1x256xf32>
    %472 = vector.broadcast %470 : f32 to vector<1x256xf32>
    %473 = arith.mulf %472, %471 : vector<1x256xf32>
    %474 = arith.addf %469, %473 : vector<1x256xf32>
    %c12 = arith.constant 12 : index
    %475 = memref.load %arg4[%c12] : memref<98xf32, #tpu.memory_space<smem>>
    %476 = vector.extract_strided_slice %31 {offsets = [0, 21], sizes = [1, 256], strides = [1, 1]} : vector<2x358xf32> to vector<1x256xf32>
    %477 = vector.broadcast %475 : f32 to vector<1x256xf32>
    %478 = arith.mulf %477, %476 : vector<1x256xf32>
    %479 = arith.addf %474, %478 : vector<1x256xf32>
    %c19 = arith.constant 19 : index
    %480 = memref.load %arg4[%c19] : memref<98xf32, #tpu.memory_space<smem>>
    %481 = vector.extract_strided_slice %31 {offsets = [0, 37], sizes = [1, 256], strides = [1, 1]} : vector<2x358xf32> to vector<1x256xf32>
    %482 = vector.broadcast %480 : f32 to vector<1x256xf32>
    %483 = arith.mulf %482, %481 : vector<1x256xf32>
    %484 = arith.addf %479, %483 : vector<1x256xf32>
    %c26 = arith.constant 26 : index
    %485 = memref.load %arg4[%c26] : memref<98xf32, #tpu.memory_space<smem>>
    %486 = vector.extract_strided_slice %31 {offsets = [0, 53], sizes = [1, 256], strides = [1, 1]} : vector<2x358xf32> to vector<1x256xf32>
    %487 = vector.broadcast %485 : f32 to vector<1x256xf32>
    %488 = arith.mulf %487, %486 : vector<1x256xf32>
    %489 = arith.addf %484, %488 : vector<1x256xf32>
    %c33 = arith.constant 33 : index
    %490 = memref.load %arg4[%c33] : memref<98xf32, #tpu.memory_space<smem>>
    %491 = vector.extract_strided_slice %31 {offsets = [0, 69], sizes = [1, 256], strides = [1, 1]} : vector<2x358xf32> to vector<1x256xf32>
    %492 = vector.broadcast %490 : f32 to vector<1x256xf32>
    %493 = arith.mulf %492, %491 : vector<1x256xf32>
    %494 = arith.addf %489, %493 : vector<1x256xf32>
    %c40 = arith.constant 40 : index
    %495 = memref.load %arg4[%c40] : memref<98xf32, #tpu.memory_space<smem>>
    %496 = vector.extract_strided_slice %31 {offsets = [0, 85], sizes = [1, 256], strides = [1, 1]} : vector<2x358xf32> to vector<1x256xf32>
    %497 = vector.broadcast %495 : f32 to vector<1x256xf32>
    %498 = arith.mulf %497, %496 : vector<1x256xf32>
    %499 = arith.addf %494, %498 : vector<1x256xf32>
    %c47 = arith.constant 47 : index
    %500 = memref.load %arg4[%c47] : memref<98xf32, #tpu.memory_space<smem>>
    %501 = vector.extract_strided_slice %31 {offsets = [0, 101], sizes = [1, 256], strides = [1, 1]} : vector<2x358xf32> to vector<1x256xf32>
    %502 = vector.broadcast %500 : f32 to vector<1x256xf32>
    %503 = arith.mulf %502, %501 : vector<1x256xf32>
    %504 = arith.addf %499, %503 : vector<1x256xf32>
    %c54 = arith.constant 54 : index
    %505 = memref.load %arg4[%c54] : memref<98xf32, #tpu.memory_space<smem>>
    %506 = vector.extract_strided_slice %31 {offsets = [1, 5], sizes = [1, 256], strides = [1, 1]} : vector<2x358xf32> to vector<1x256xf32>
    %507 = vector.broadcast %505 : f32 to vector<1x256xf32>
    %508 = arith.mulf %507, %506 : vector<1x256xf32>
    %509 = arith.addf %504, %508 : vector<1x256xf32>
    %c61 = arith.constant 61 : index
    %510 = memref.load %arg4[%c61] : memref<98xf32, #tpu.memory_space<smem>>
    %511 = vector.extract_strided_slice %31 {offsets = [1, 21], sizes = [1, 256], strides = [1, 1]} : vector<2x358xf32> to vector<1x256xf32>
    %512 = vector.broadcast %510 : f32 to vector<1x256xf32>
    %513 = arith.mulf %512, %511 : vector<1x256xf32>
    %514 = arith.addf %509, %513 : vector<1x256xf32>
    %c68 = arith.constant 68 : index
    %515 = memref.load %arg4[%c68] : memref<98xf32, #tpu.memory_space<smem>>
    %516 = vector.extract_strided_slice %31 {offsets = [1, 37], sizes = [1, 256], strides = [1, 1]} : vector<2x358xf32> to vector<1x256xf32>
    %517 = vector.broadcast %515 : f32 to vector<1x256xf32>
    %518 = arith.mulf %517, %516 : vector<1x256xf32>
    %519 = arith.addf %514, %518 : vector<1x256xf32>
    %c75 = arith.constant 75 : index
    %520 = memref.load %arg4[%c75] : memref<98xf32, #tpu.memory_space<smem>>
    %521 = vector.extract_strided_slice %31 {offsets = [1, 53], sizes = [1, 256], strides = [1, 1]} : vector<2x358xf32> to vector<1x256xf32>
    %522 = vector.broadcast %520 : f32 to vector<1x256xf32>
    %523 = arith.mulf %522, %521 : vector<1x256xf32>
    %524 = arith.addf %519, %523 : vector<1x256xf32>
    %c82 = arith.constant 82 : index
    %525 = memref.load %arg4[%c82] : memref<98xf32, #tpu.memory_space<smem>>
    %526 = vector.extract_strided_slice %31 {offsets = [1, 69], sizes = [1, 256], strides = [1, 1]} : vector<2x358xf32> to vector<1x256xf32>
    %527 = vector.broadcast %525 : f32 to vector<1x256xf32>
    %528 = arith.mulf %527, %526 : vector<1x256xf32>
    %529 = arith.addf %524, %528 : vector<1x256xf32>
    %c89 = arith.constant 89 : index
    %530 = memref.load %arg4[%c89] : memref<98xf32, #tpu.memory_space<smem>>
    %531 = vector.extract_strided_slice %31 {offsets = [1, 85], sizes = [1, 256], strides = [1, 1]} : vector<2x358xf32> to vector<1x256xf32>
    %532 = vector.broadcast %530 : f32 to vector<1x256xf32>
    %533 = arith.mulf %532, %531 : vector<1x256xf32>
    %534 = arith.addf %529, %533 : vector<1x256xf32>
    %c96 = arith.constant 96 : index
    %535 = memref.load %arg4[%c96] : memref<98xf32, #tpu.memory_space<smem>>
    %536 = vector.extract_strided_slice %31 {offsets = [1, 101], sizes = [1, 256], strides = [1, 1]} : vector<2x358xf32> to vector<1x256xf32>
    %537 = vector.broadcast %535 : f32 to vector<1x256xf32>
    %538 = arith.mulf %537, %536 : vector<1x256xf32>
    %539 = arith.addf %534, %538 : vector<1x256xf32>
    %540 = arith.mulf %539, %468 : vector<1x256xf32>
    %541 = arith.addf %459, %540 : vector<1x256xf32>
    %c3_i32 = arith.constant 3 : i32
    %542 = vector.broadcast %c3_i32 : i32 to vector<1x256xi32>
    %543 = arith.addi %48, %542 : vector<1x256xi32>
    %c0_i32_41 = arith.constant 0 : i32
    %544 = vector.broadcast %c0_i32_41 : i32 to vector<1x256xi32>
    %545 = arith.cmpi sge, %543, %544 : vector<1x256xi32>
    %c16_i32_42 = arith.constant 16 : i32
    %546 = vector.broadcast %c16_i32_42 : i32 to vector<1x256xi32>
    %547 = arith.cmpi slt, %543, %546 : vector<1x256xi32>
    %548 = arith.andi %545, %547 : vector<1x256xi1>
    %549 = arith.extui %548 : vector<1x256xi1> to vector<1x256xi32>
    %550 = arith.sitofp %549 : vector<1x256xi32> to vector<1x256xf32>
    %cst_43 = arith.constant 0.000000e+00 : f32
    %551 = vector.broadcast %cst_43 : f32 to vector<1x256xf32>
    %c6 = arith.constant 6 : index
    %552 = memref.load %arg4[%c6] : memref<98xf32, #tpu.memory_space<smem>>
    %553 = vector.extract_strided_slice %31 {offsets = [0, 6], sizes = [1, 256], strides = [1, 1]} : vector<2x358xf32> to vector<1x256xf32>
    %554 = vector.broadcast %552 : f32 to vector<1x256xf32>
    %555 = arith.mulf %554, %553 : vector<1x256xf32>
    %556 = arith.addf %551, %555 : vector<1x256xf32>
    %c13 = arith.constant 13 : index
    %557 = memref.load %arg4[%c13] : memref<98xf32, #tpu.memory_space<smem>>
    %558 = vector.extract_strided_slice %31 {offsets = [0, 22], sizes = [1, 256], strides = [1, 1]} : vector<2x358xf32> to vector<1x256xf32>
    %559 = vector.broadcast %557 : f32 to vector<1x256xf32>
    %560 = arith.mulf %559, %558 : vector<1x256xf32>
    %561 = arith.addf %556, %560 : vector<1x256xf32>
    %c20 = arith.constant 20 : index
    %562 = memref.load %arg4[%c20] : memref<98xf32, #tpu.memory_space<smem>>
    %563 = vector.extract_strided_slice %31 {offsets = [0, 38], sizes = [1, 256], strides = [1, 1]} : vector<2x358xf32> to vector<1x256xf32>
    %564 = vector.broadcast %562 : f32 to vector<1x256xf32>
    %565 = arith.mulf %564, %563 : vector<1x256xf32>
    %566 = arith.addf %561, %565 : vector<1x256xf32>
    %c27 = arith.constant 27 : index
    %567 = memref.load %arg4[%c27] : memref<98xf32, #tpu.memory_space<smem>>
    %568 = vector.extract_strided_slice %31 {offsets = [0, 54], sizes = [1, 256], strides = [1, 1]} : vector<2x358xf32> to vector<1x256xf32>
    %569 = vector.broadcast %567 : f32 to vector<1x256xf32>
    %570 = arith.mulf %569, %568 : vector<1x256xf32>
    %571 = arith.addf %566, %570 : vector<1x256xf32>
    %c34 = arith.constant 34 : index
    %572 = memref.load %arg4[%c34] : memref<98xf32, #tpu.memory_space<smem>>
    %573 = vector.extract_strided_slice %31 {offsets = [0, 70], sizes = [1, 256], strides = [1, 1]} : vector<2x358xf32> to vector<1x256xf32>
    %574 = vector.broadcast %572 : f32 to vector<1x256xf32>
    %575 = arith.mulf %574, %573 : vector<1x256xf32>
    %576 = arith.addf %571, %575 : vector<1x256xf32>
    %c41 = arith.constant 41 : index
    %577 = memref.load %arg4[%c41] : memref<98xf32, #tpu.memory_space<smem>>
    %578 = vector.extract_strided_slice %31 {offsets = [0, 86], sizes = [1, 256], strides = [1, 1]} : vector<2x358xf32> to vector<1x256xf32>
    %579 = vector.broadcast %577 : f32 to vector<1x256xf32>
    %580 = arith.mulf %579, %578 : vector<1x256xf32>
    %581 = arith.addf %576, %580 : vector<1x256xf32>
    %c48 = arith.constant 48 : index
    %582 = memref.load %arg4[%c48] : memref<98xf32, #tpu.memory_space<smem>>
    %583 = vector.extract_strided_slice %31 {offsets = [0, 102], sizes = [1, 256], strides = [1, 1]} : vector<2x358xf32> to vector<1x256xf32>
    %584 = vector.broadcast %582 : f32 to vector<1x256xf32>
    %585 = arith.mulf %584, %583 : vector<1x256xf32>
    %586 = arith.addf %581, %585 : vector<1x256xf32>
    %c55 = arith.constant 55 : index
    %587 = memref.load %arg4[%c55] : memref<98xf32, #tpu.memory_space<smem>>
    %588 = vector.extract_strided_slice %31 {offsets = [1, 6], sizes = [1, 256], strides = [1, 1]} : vector<2x358xf32> to vector<1x256xf32>
    %589 = vector.broadcast %587 : f32 to vector<1x256xf32>
    %590 = arith.mulf %589, %588 : vector<1x256xf32>
    %591 = arith.addf %586, %590 : vector<1x256xf32>
    %c62 = arith.constant 62 : index
    %592 = memref.load %arg4[%c62] : memref<98xf32, #tpu.memory_space<smem>>
    %593 = vector.extract_strided_slice %31 {offsets = [1, 22], sizes = [1, 256], strides = [1, 1]} : vector<2x358xf32> to vector<1x256xf32>
    %594 = vector.broadcast %592 : f32 to vector<1x256xf32>
    %595 = arith.mulf %594, %593 : vector<1x256xf32>
    %596 = arith.addf %591, %595 : vector<1x256xf32>
    %c69 = arith.constant 69 : index
    %597 = memref.load %arg4[%c69] : memref<98xf32, #tpu.memory_space<smem>>
    %598 = vector.extract_strided_slice %31 {offsets = [1, 38], sizes = [1, 256], strides = [1, 1]} : vector<2x358xf32> to vector<1x256xf32>
    %599 = vector.broadcast %597 : f32 to vector<1x256xf32>
    %600 = arith.mulf %599, %598 : vector<1x256xf32>
    %601 = arith.addf %596, %600 : vector<1x256xf32>
    %c76 = arith.constant 76 : index
    %602 = memref.load %arg4[%c76] : memref<98xf32, #tpu.memory_space<smem>>
    %603 = vector.extract_strided_slice %31 {offsets = [1, 54], sizes = [1, 256], strides = [1, 1]} : vector<2x358xf32> to vector<1x256xf32>
    %604 = vector.broadcast %602 : f32 to vector<1x256xf32>
    %605 = arith.mulf %604, %603 : vector<1x256xf32>
    %606 = arith.addf %601, %605 : vector<1x256xf32>
    %c83 = arith.constant 83 : index
    %607 = memref.load %arg4[%c83] : memref<98xf32, #tpu.memory_space<smem>>
    %608 = vector.extract_strided_slice %31 {offsets = [1, 70], sizes = [1, 256], strides = [1, 1]} : vector<2x358xf32> to vector<1x256xf32>
    %609 = vector.broadcast %607 : f32 to vector<1x256xf32>
    %610 = arith.mulf %609, %608 : vector<1x256xf32>
    %611 = arith.addf %606, %610 : vector<1x256xf32>
    %c90 = arith.constant 90 : index
    %612 = memref.load %arg4[%c90] : memref<98xf32, #tpu.memory_space<smem>>
    %613 = vector.extract_strided_slice %31 {offsets = [1, 86], sizes = [1, 256], strides = [1, 1]} : vector<2x358xf32> to vector<1x256xf32>
    %614 = vector.broadcast %612 : f32 to vector<1x256xf32>
    %615 = arith.mulf %614, %613 : vector<1x256xf32>
    %616 = arith.addf %611, %615 : vector<1x256xf32>
    %c97 = arith.constant 97 : index
    %617 = memref.load %arg4[%c97] : memref<98xf32, #tpu.memory_space<smem>>
    %618 = vector.extract_strided_slice %31 {offsets = [1, 102], sizes = [1, 256], strides = [1, 1]} : vector<2x358xf32> to vector<1x256xf32>
    %619 = vector.broadcast %617 : f32 to vector<1x256xf32>
    %620 = arith.mulf %619, %618 : vector<1x256xf32>
    %621 = arith.addf %616, %620 : vector<1x256xf32>
    %622 = arith.mulf %621, %550 : vector<1x256xf32>
    %623 = arith.addf %541, %622 : vector<1x256xf32>
    %624 = arith.negf %623 : vector<1x256xf32>
    %625 = math.exp %624 : vector<1x256xf32>
    %cst_44 = arith.constant 1.000000e+00 : f32
    %626 = vector.broadcast %cst_44 : f32 to vector<1x256xf32>
    %627 = arith.addf %626, %625 : vector<1x256xf32>
    %628 = arith.divf %626, %627 : vector<1x256xf32>
    %629 = vector.broadcast %22 : vector<32x1xf32> to vector<32x256xf32>
    %630 = arith.mulf %1, %629 : vector<32x256xf32>
    %631 = vector.broadcast %628 : vector<1x256xf32> to vector<32x256xf32>
    %632 = arith.mulf %630, %631 : vector<32x256xf32>
    %c0_45 = arith.constant 0 : index
    %c0_46 = arith.constant 0 : index
    %c0_47 = arith.constant 0 : index
    %633 = vector.load %arg5[%c0_45, %c0_46, %c0_47] : memref<1x32x256xf32, #tpu.memory_space<vmem>>, vector<1x32x256xf32>
    %634 = vector.shape_cast %633 : vector<1x32x256xf32> to vector<32x256xf32>
    %635 = vector.shape_cast %632 : vector<32x256xf32> to vector<1x32x256xf32>
    tpu.vector_store %arg5[%c0_45, %c0_46, %c0_47], %635 {strides = array<i32>} : memref<1x32x256xf32, #tpu.memory_space<vmem>>, vector<1x32x256xf32>,
    return
  }
  func.func @transform_0(%arg0: i32) -> (i32, i32, i32) {
    %c0_i32 = arith.constant 0 : i32
    %c0_i32_0 = arith.constant 0 : i32
    %c0_i32_1 = arith.constant 0 : i32
    return %arg0, %c0_i32, %c0_i32_0 : i32, i32, i32
  }
  func.func @transform_1(%arg0: i32) -> (i32, i32) {
    %c0_i32 = arith.constant 0 : i32
    %c0_i32_0 = arith.constant 0 : i32
    %c0_i32_1 = arith.constant 0 : i32
    return %c0_i32, %c0_i32_0 : i32, i32
  }
  func.func @transform_2(%arg0: i32) -> (i32, i32) {
    %c0_i32 = arith.constant 0 : i32
    %c0_i32_0 = arith.constant 0 : i32
    %c0_i32_1 = arith.constant 0 : i32
    return %c0_i32, %c0_i32_0 : i32, i32
  }
  func.func @transform_3(%arg0: i32) -> i32 {
    %c0_i32 = arith.constant 0 : i32
    %c0_i32_0 = arith.constant 0 : i32
    return %c0_i32 : i32
  }
  func.func @transform_4(%arg0: i32) -> (i32, i32, i32) {
    %c0_i32 = arith.constant 0 : i32
    %c0_i32_0 = arith.constant 0 : i32
    %c0_i32_1 = arith.constant 0 : i32
    return %arg0, %c0_i32, %c0_i32_0 : i32, i32, i32
  }
}

</mosaic_0001>

<bundles_post_ra>
// kernel: tpu_custom_call.1
= control target key start
LH: loop header
LB: loop body
LE: loop exit
PB: predicated region body
PF: predicated region fallthrough
CT: control target
= control target key end

     0   :  { %s4851_s0 = inlined_call_operand.hbm [shape: f32[2,32,256], index: 0, kind: input, shape index: {}]   ;;  %s4852_s1 = inlined_call_operand.vmem [shape: f32[32,32], index: 1, kind: input, shape index: {}]   ;;  %s4853_s2 = inlined_call_operand.vmem [shape: f32[32,1], index: 2, kind: input, shape index: {}]   ;;  %s4854_s3 = inlined_call_operand.vmem [shape: f32[98], index: 3, kind: input, shape index: {}]   ;;  %s4855_s4 = inlined_call_operand.hbm [shape: f32[2,32,256], index: 4, kind: output, shape index: {}]  }
   0x1   :  { %4867 = sst [smem:[#allocation44_spill]] %s4854_s3 }
   0x2   :  { %9 = vsyncpa [#allocation3], 0 }
   0x3   :  { %11 = vsyncpa [#allocation3 + $0x1], 0 }
   0x4   :  { %12 = vsyncpa [#allocation5], 0 }
   0x5   :  { %13 = vsyncpa [#allocation4], 0 }
   0x6   :  { %15 = vsyncpa [#allocation4 + $0x1], 0  ;;  %s3568_s15 = smov 0   ;;  %s3570_s16 = smov 0  }
   0x7   :  { %s3572_s17 = smov 0   ;;  %s3574_s18 = smov 0  }
   0x8 LB: > { %s3589_s19 = sadd.s32 4294967295, %s3511_s18   ;;  %s3090_s20 = sadd.s32 4294967294, %s3511_s18   ;;  %s3511_s18 = sphi %s3574_s18, %s4948_s18   ;;  %s3507_s17 = sphi %s3572_s17, %s4947_s17   ;;  %s3503_s16 = sphi %s3570_s16, %s4946_s16   ;;  %s3499_s15 = sphi %s3568_s15, %s4945_s15  }
   0x9   : > { %s3593_s21 = sadd.s32 1, %s3511_s18   ;;  %s28_s22 = sadd.s32 1, %s3507_s17 }
   0xa   : > { %s25_s23 = ssub.s32 %s3511_s18, %s3593_s21  ;;  %p35_p0 = scmp.ne.s32.totalorder %s3507_s17, %s3503_s16 }
   0xb   : > { %p26_p1 = scmp.eq.s32.totalorder %s25_s23, 0  ;;  %p36_p2 = scmp.eq.s32.totalorder %s3511_s18, 0 }
   0xc   : > { %p41_p3 = scmp.ne.s32.totalorder %s3503_s16, %s3499_s15  ;;  %p42_p4 = scmp.eq.s32.totalorder %s3589_s19, 0 }
   0xd   : > { %s3605_s24 = scalar_select %p26_p1, %s3507_s17, %s28_s22  }
   0xe   : > { %p3607_p5 = por %p36_p2, %p35_p0  ;;  %p3613_p6 = por %p42_p4, %p41_p3 }
   0xf   : > { %p128_p7 = scmp.eq.s32.totalorder %s3589_s19, 1  ;;  %p134_p8 = scmp.eq.s32.totalorder %s3090_s20, 1 }
  0x10   : > { %p3091_p9 = scmp.ge.s32.totalorder %s3511_s18, 1  ;;  %p141_p10 = scmp.lt.s32.totalorder %s3511_s18, 3 }
  0x11   : > { %p3620_p11 = por %p128_p7, %p35_p0  ;;  %p3624_p12 = por %p134_p8, %p41_p3 }
  0x12   : > { %p3628_p13 = pnand %p3091_p9, %p141_p10  ;;  %s4873_s3 = sld [smem:[#allocation44_spill]] }
  0x13   : > { %p3260_p2 = scmp.lt.s32.totalorder %s3511_s18, 2  ;;  %s170_s7 = sand.u32 1, %s3507_s17  }
  0x14   : > { %p3247_p1 = pneg %p3628_p13  ;;  %s3094_s9 = sshll.u32 %s170_s7, 6 }
  0x15   : > { %p3644_p3 = pnand %p3260_p2, %p3607_p5  ;;  %s3513_s10 = smov [#allocation6]  }
  0x16   : > { %p3248_p7 = pnand %p3247_p1, %p42_p4  ;;  %s3225_s11 = sshll.u32 %s3511_s18, 6 }
  0x17   : > { %s174_s12 = scalar_lea.vmem [#allocation2], %s3094_s9  ;;  %s179_s22 = scalar_lea.hbm %s4851_s0, %s3225_s11 }
  0x18   : > { %s159_s6 = sshll.u32 %s4873_s3, 4  ;;  %s182_s13 = sshll.u32 %s174_s12, 4  ;;  %s160_s6 = int_to_ptr.vmem [resolvable:$true] %s159_s6  ;;  %s183_s13 = int_to_ptr.vmem [resolvable:$true] %s182_s13 }
  0x19   : > { %3250 = dma.vmem_to_smem (!%p3248_p7), %s160_s6, 16, %s3513_s10, [#allocation5]  }
  0x1a   : > { %s180_s23 = sshll.u32 %s179_s22, 4  ;;  %s171_s30 = scalar_lea.sflag [#allocation3], %s170_s7  ;;  %s181_s23 = int_to_ptr.hbm [resolvable:$true] %s180_s23 }
  0x1b   : > { %s3411_s25 = sshra.s32 %s181_s23, 4  ;;  %p3415_p8 = pneg %p3644_p3  ;;  %s3412_s25 = int_to_ptr.hbm [resolvable:$true] %s3411_s25 }
  0x1c   : > { %s3413_s5 = scalar_lea.hbm %s3412_s25, 64  ;;  %s3418_s9 = scalar_lea.hbm %s4851_s0, 128 }
  0x1d   : > { %p3414_p5 = scmp.ne.s32.totalorder %s3412_s25, %s3413_s5  ;;  %p3419_p1 = scmp.lt.s32.totalorder %s3412_s25, %s4851_s0 }
  0x1e   : > { %p3420_p2 = scmp.lt.s32.totalorder %s3418_s9, %s3413_s5 }
  0x1f   : > { %p3416_p9 = pnand %p3415_p8, %p3414_p5 }
  0x20   : > { %p3421_p7 = por %p3420_p2, %p3419_p1 }
  0x21   : > { %p3417_p10 = pneg %p3416_p9 }
  0x23   : > { %p3422_p0 = pnand %p3421_p7, %p3417_p10 }
  0x25   : > { %3425 = shalt.err (!%p3422_p0)
}
  0x26   : > { %s3514_s7 = smov 256   ;;  %s3515_s11 = smov 16  }
  0x27   : > { %3254 = dma.hbm_to_vmem [thread:$0]  (!%p3644_p3), %s181_s23, 1024, %s183_s13, %s171_s30, %s3514_s7, %s3514_s7, %s3515_s11  }
  0x28   : > { %194 = sbr.rel (%p3628_p13) target bundleno = 1737 (0x6c9), region = 36 }
  0x2d   : > { %s3665_s14 = sand.u32 1, %s3503_s16  }
  0x2e   : > { %s3098_s3 = sshll.u32 %s3665_s14, 6  ;;  %s197_s20 = scalar_lea.sflag [#allocation3], %s3665_s14 }
  0x2f   : > { %s3671_s22 = scalar_lea.vmem [#allocation2], %s3098_s3 }
  0x30   : > { %3486 = dma.done.wait (%p3613_p6), %s197_s20, 1024  }
  0x31   : > { %3488 = vsyncadd (%p3613_p6), %s197_s20, 4294966272 }
  0x32   : > { %3490 = dma.done.wait (%p42_p4), [#allocation5], 16  }
  0x33   : > { %3492 = vsyncadd (%p42_p4), [#allocation5], 4294967280 }
  0x34   : > { %211 = sfence }
  0x35   : > { %v236_v0 = vld [vmem:[%s3671_s22 + $0x20] sm:$0xff]  ;;  %v237_v1 = vld [vmem:[%s3671_s22 + $0x28] sm:$0xff]  ;;  %v3516_v5 = vmov 0   ;;  %v238_v8 = vld [vmem:[%s3671_s22 + $0x30] sm:$0xff]  ;;  %v3517_v26 = vmov 32.0   ;;  %vm495_vm1 = vcmask 1040384  }
  0x36   : > { %v232_v2 = vld [vmem:[%s3671_s22] sm:$0xff]  ;;  %v246_v3 = vadd.f32 %v237_v1, %v236_v0  ;;  %v233_v4 = vld [vmem:[%s3671_s22 + $0x8] sm:$0xff]  ;;  %3327 = vset.pattern.permute.xlu1 %v3516_v5  ;;  %3325 = vset.pattern.permute.xlu2 %v3516_v5  ;;  %v239_v9 = vld [vmem:[%s3671_s22 + $0x38] sm:$0xff]  ;;  %v269_v23 = vmax.f32 %v236_v0, %v237_v1  ;;  %3358 = vrcp.f32 %v3517_v26  ;;  %s3518_s25 = smov 51   ;;  %vm275_vm3 = vcmask 7168   ;;  %s3111_s8 = sld [smem:[#allocation6 + $0x7]] }
  0x37   : > { %v263_v6 = vmax.f32 %v232_v2, %v233_v4  ;;  %v240_v7 = vadd.f32 %v233_v4, %v232_v2  ;;  %3326 = vset.pattern.permute.xlu0 %v3516_v5  ;;  %v234_v10 = vld [vmem:[%s3671_s22 + $0x10] sm:$0xff]  ;;  %v235_v11 = vld [vmem:[%s3671_s22 + $0x18] sm:$0xff]  ;;  %v249_v12 = vadd.f32 %v239_v9, %v238_v8  ;;  %v272_v19 = vmax.f32 %v238_v8, %v239_v9  ;;  %v284_v43 = vld [vmem:[%s4853_s2] sm:$0xff]  ;;  %s3112_s13 = sld [smem:[#allocation6 + $0xe]]  ;;  %s3520_s23 = smov 112  }
  0x38   : > { %247 = vadd.xlane.f32.xlu1 %v246_v3  ;;  %v266_v13 = vmax.f32 %v234_v10, %v235_v11  ;;  %v243_v14 = vadd.f32 %v235_v11, %v234_v10  ;;  %v450_v15 = vadd.f32 %v234_v10, %v232_v2  ;;  %v459_v16 = vadd.f32 %v235_v11, %v233_v4  ;;  %v286_v54 = vld [vmem:[%s4853_s2 + $0x10] sm:$0xff]  ;;  %v287_v57 = vld [vmem:[%s4853_s2 + $0x18] sm:$0xff]  ;;  %s3113_s30 = sld [smem:[#allocation6 + $0x15]]  ;;  %s3522_s6 = smov 80  }
  0x39   : > { %264 = vmax.xlane.f32.xlu2 %v263_v6  ;;  %241 = vadd.xlane.f32.xlu0 %v240_v7  ;;  %v477_v20 = vmax.f32 %v232_v2, %v236_v0  ;;  %v486_v21 = vmax.f32 %v233_v4, %v237_v1  ;;  %v478_v22 = vmax.f32 %v234_v10, %v238_v8  ;;  %v3519_v3 = vmov 256.0   ;;  %s3114_s5 = sld [smem:[#allocation6 + $0x1c]]  ;;  %s3523_s9 = smov 64  }
  0x3a   : > { %v451_v17 = vadd.f32 %v450_v15, %v236_v0  ;;  %v460_v18 = vadd.f32 %v459_v16, %v237_v1  ;;  %v487_v24 = vmax.f32 %v235_v11, %v239_v9  ;;  %3360 = vrcp.f32 %v3519_v3  ;;  %s3115_s10 = sld [smem:[#allocation6 + $0x23]]  ;;  %s3524_s11 = smov 48  }
  0x3b   : > { %v479_v29 = vmax.f32 %v477_v20, %v478_v22  ;;  %vm308_vm4 = vcmask 261120   ;;  %vm504_vm5 = vcmask 416768   ;;  %s3116_s12 = sld [smem:[#allocation6 + $0x2a]]  ;;  %s3525_s26 = smov 32   ;;  %vm426_vm10 = vcmask 15360  }
  0x3c   : > { %v452_v25 = vadd.f32 %v451_v17, %v238_v8  ;;  %v461_v27 = vadd.f32 %v460_v18, %v239_v9  ;;  %v488_v31 = vmax.f32 %v486_v21, %v487_v24  ;;  %v3359_v32 = vpop.eup %3358  ;;  %s3118_s7 = sld [smem:[#allocation6 + $0x38]] }
  0x3d   : > { %v480_v34 = vrot.slane %v479_v29, 4  ;;  %v469_v37 = vmul.f32 32.0, %v3359_v32  ;;  %vm473_vm0 = vweird.f32 %v3359_v32  ;;  %s3119_s20 = sld [smem:[#allocation6 + $0x3f]] }
  0x3e   : > { %v453_v28 = vrot.slane %v452_v25, 4  ;;  %v462_v30 = vrot.slane %v461_v27, 4  ;;  %v489_v36 = vrot.slane %v488_v31, 4  ;;  %s3120_s29 = sld [smem:[#allocation6 + $0x46]] }
  0x3f   : > { %v481_v39 = vmax.f32 %v479_v29, %v480_v34  ;;  %v470_v42 = vsub.f32 1.0, %v469_v37  ;;  %v282_v29 = vld [vmem:[%s4852_s1 + $0x10] sm:$0xff]  ;;  %v578_v37 = vstv %s3112_s13  ;;  %s3122_s13 = sld [smem:[#allocation6 + $0x54]] }
  0x40   : > { %250 = vadd.xlane.f32.xlu1 %v249_v12  ;;  %v454_v33 = vadd.f32 %v453_v28, %v452_v25  ;;  %v463_v35 = vadd.f32 %v462_v30, %v461_v27  ;;  %v490_v41 = vmax.f32 %v488_v31, %v489_v36  ;;  %v3361_v4 = vpop.eup %3360  ;;  %v285_v12 = vld [vmem:[%s4853_s2 + $0x8] sm:$0xff]  ;;  %v280_v28 = vld [vmem:[%s4852_s1] sm:$0xff]  ;;  %v283_v30 = vld [vmem:[%s4852_s1 + $0x18] sm:$0xff] }
  0x41   : > { %267 = vmax.xlane.f32.xlu2 %v266_v13  ;;  %244 = vadd.xlane.f32.xlu0 %v243_v14  ;;  %v482_v45 = vrot.slane %v481_v39, 2  ;;  %v471_v48 = vmul.f32 %v3359_v32, %v470_v42  ;;  %v253_v5 = vmul.f32 256.0, %v3361_v4  ;;  %vm257_vm2 = vweird.f32 %v3361_v4  ;;  %v281_v31 = vld [vmem:[%s4852_s1 + $0x8] sm:$0xff] }
  0x42   : > { %v455_v38 = vrot.slane %v454_v33, 2  ;;  %v464_v40 = vrot.slane %v463_v35, 2  ;;  %v491_v47 = vrot.slane %v490_v41, 2 }
  0x43   : > { %v483_v50 = vmax.f32 %v481_v39, %v482_v45  ;;  %v472_v53 = vadd.f32 %v3359_v32, %v471_v48  ;;  %v254_v9 = vsub.f32 1.0, %v253_v5 }
  0x44   : > { %v456_v44 = vadd.f32 %v455_v38, %v454_v33  ;;  %v465_v46 = vadd.f32 %v464_v40, %v463_v35  ;;  %v492_v52 = vmax.f32 %v490_v41, %v491_v47  ;;  %v557_v33 = vstv %s3111_s8  ;;  %s3121_s8 = sld [smem:[#allocation6 + $0x4d]] }
  0x45   : > { %v484_v56 = vrot.slane %v483_v50, 1  ;;  %v474_v60 = vsel %vm473_vm0, %v3359_v32, %v472_v53  ;;  %v255_v10 = vmul.f32 %v3361_v4, %v254_v9  ;;  %v599_v40 = vstv %s3113_s30  ;;  %s3123_s30 = sld [smem:[#allocation6 + $0x5b]] }
  0x46   : > { %v457_v49 = vrot.slane %v456_v44, 1  ;;  %v466_v51 = vrot.slane %v465_v46, 1  ;;  %v493_v59 = vrot.slane %v492_v52, 1  ;;  %v620_v47 = vstv %s3114_s5  ;;  %s3127_s5 = sld [smem:[#allocation6 + $0x8]] }
  0x47   : > { %v485_v62 = vmax.f32 %v483_v50, %v484_v56  ;;  %v256_v15 = vadd.f32 %v3361_v4, %v255_v10  ;;  %v740_v5 = vstv %s3120_s29  ;;  %s3132_s29 = sld [smem:[#allocation6 + $0x2b]] }
  0x48   : > { %273 = vmax.xlane.f32.xlu1 %v272_v19  ;;  %v458_v55 = vadd.f32 %v457_v49, %v456_v44  ;;  %v467_v58 = vadd.f32 %v466_v51, %v465_v46  ;;  %v494_v0 = vmax.f32 %v492_v52, %v493_v59  ;;  %v641_v51 = vstv %s3115_s10  ;;  %s3128_s10 = sld [smem:[#allocation6 + $0xf]] }
  0x49   : > { %270 = vmax.xlane.f32.xlu0 %v269_v23  ;;  %v258_v16 = vsel %vm257_vm2, %v3361_v4, %v256_v15  ;;  %v694_v59 = vstv %s3118_s7  ;;  %s3130_s7 = sld [smem:[#allocation6 + $0x1d]] }
  0x4a   : > { %v475_v61 = vmul.f32 %v474_v60, %v458_v55  ;;  %v476_v63 = vmul.f32 %v474_v60, %v467_v58  ;;  %v662_v55 = vstv %s3116_s12  ;;  %s3129_s12 = sld [smem:[#allocation6 + $0x16]] }
  0x4c   : > { %v496_v1 = vsel %vm495_vm1, %v475_v61, %v485_v62  ;;  %v497_v2 = vsel %vm495_vm1, %v476_v63, %v494_v0  ;;  %v717_v0 = vstv %s3119_s20  ;;  %s3131_s20 = sld [smem:[#allocation6 + $0x24]] }
  0x59   : > { %290 = vperm.xlu2 %3325, %v284_v43  }
  0x5d   : > { %295 = vperm.xlu0 %3326, %v285_v12   ;;  %v763_v12 = vstv %s3121_s8  ;;  %s3134_s8 = sld [smem:[#allocation6 + $0x39]] }
  0x61   : > { %300 = vperm.xlu1 %3327, %v286_v54   ;;  %305 = vperm.xlu2 %3325, %v287_v57  }
  0x69   : > { %500 = vrot.lane.b32.xlu1 %v496_v1, %s3518_s25  ;;  %502 = vrot.lane.b32.xlu2 %v497_v2, %s3518_s25  ;;  %s3521_s25 = smov 96  }
  0xab   : > { %v248_v6 = vpop.xlane.xlu1 %247 }
  0xac   : > { %v265_v7 = vpop.xlane.xlu2 %264  ;;  %v242_v8 = vpop.xlane.xlu0 %241  ;;  %v261_v20 = vmul.f32 %v258_v16, %v248_v6 }
  0xad   : > { %v259_v24 = vmul.f32 %v258_v16, %v242_v8 }
  0xaf   : > { %v276_v27 = vsel %vm275_vm3, %v259_v24, %v265_v7 }
  0xb3   : > { %v251_v11 = vpop.xlane.xlu1 %250 }
  0xb4   : > { %v268_v13 = vpop.xlane.xlu2 %267  ;;  %v245_v14 = vpop.xlane.xlu0 %244  ;;  %v262_v17 = vmul.f32 %v258_v16, %v251_v11 }
  0xb5   : > { %v260_v18 = vmul.f32 %v258_v16, %v245_v14 }
  0xb7   : > { %v277_v26 = vsel %vm275_vm3, %v260_v18, %v268_v13 }
  0xbb   : > { %v274_v19 = vpop.xlane.xlu1 %273 }
  0xbc   : > { %v279_v21 = vsel %vm275_vm3, %v262_v17, %v274_v19  ;;  %v3702_v22 = vpop.permute.xlu2 %290  ;;  %v271_v23 = vpop.xlane.xlu0 %270  ;;  %v786_v19 = vstv %s3122_s13  ;;  %s3135_s13 = sld [smem:[#allocation6 + $0x40]] }
  0xbd   : > { %333 = vmatpush.msra.mxu0 %v279_v21  ;;  %3227 = vmatpush.msra.mxu1 %v279_v21  ;;  %v278_v25 = vsel %vm275_vm3, %v261_v20, %v271_v23 }
  0xbe   : > { %3228 = vmatpush.msra.mxu2 %v279_v21  ;;  %3229 = vmatpush.msra.mxu3 %v279_v21 }
  0xbf   : > { %334 = vmatpush.msra.mxu0 %v278_v25  ;;  %3230 = vmatpush.msra.mxu1 %v278_v25 }
  0xc0   : > { %3231 = vmatpush.msra.mxu2 %v278_v25  ;;  %3232 = vmatpush.msra.mxu3 %v278_v25 }
  0xc1   : > { %335 = vmatpush.msra.mxu0 %v277_v26  ;;  %3233 = vmatpush.msra.mxu1 %v277_v26 }
  0xc2   : > { %3234 = vmatpush.msra.mxu2 %v277_v26  ;;  %3235 = vmatpush.msra.mxu3 %v277_v26 }
  0xc3   : > { %336 = vmatpush.msra.mxu0 %v276_v27  ;;  %3236 = vmatpush.msra.mxu1 %v276_v27 }
  0xc4   : > { %v3719_v32 = vpop.permute.xlu2 %305  ;;  %3237 = vmatpush.msra.mxu2 %v276_v27  ;;  %3238 = vmatpush.msra.mxu3 %v276_v27  ;;  %v809_v27 = vstv %s3123_s30  ;;  %s3136_s30 = sld [smem:[#allocation6 + $0x47]] }
  0xc5   : > { %3101 = vmatmul.msk.f32.vlgmr.msra.gmra.mxu0 %vm308_vm4, %v280_v28  ;;  %3103 = vmatmul.msk.f32.vlgmr.msra.gmra.mxu2 %vm308_vm4, %v282_v29 }
  0xc6   : > { %3104 = vmatmul.msk.f32.vlgmr.msra.gmra.mxu3 %vm308_vm4, %v283_v30  ;;  %3102 = vmatmul.msk.f32.vlgmr.msra.gmra.mxu1 %vm308_vm4, %v281_v31 }
  0xcc   : > { %v503_v34 = vpop.permute.xlu2 %502 }
  0xcd   : > { %v3726_v35 = vsel %vm504_vm5, %v503_v34, 0.0 }
  0xce   : > { %v560_v36 = vmul.f32 %v557_v33, %v3726_v35  ;;  %v581_v39 = vmul.f32 %v578_v37, %v3726_v35  ;;  %v602_v44 = vmul.f32 %v599_v40, %v3726_v35  ;;  %v623_v50 = vmul.f32 %v620_v47, %v3726_v35 }
  0xcf   : > { %v644_v54 = vmul.f32 %v641_v51, %v3726_v35  ;;  %v665_v58 = vmul.f32 %v662_v55, %v3726_v35  ;;  %v697_v60 = vmul.f32 %v694_v59, %v3726_v35  ;;  %v720_v1 = vmul.f32 %v717_v0, %v3726_v35 }
  0xd0   : > { %568 = vrot.lane.b32.xlu2 %v560_v36, %s3520_s23  ;;  %v743_v8 = vmul.f32 %v740_v5, %v3726_v35  ;;  %v766_v15 = vmul.f32 %v763_v12, %v3726_v35  ;;  %v789_v23 = vmul.f32 %v786_v19, %v3726_v35  ;;  %v812_v30 = vmul.f32 %v809_v27, %v3726_v35 }
  0xd1   : > { %v703_v63 = vrot.slane %v697_v60, 1  ;;  %v726_v4 = vrot.slane %v720_v1, 1  ;;  %v966_v1 = vstv %s3132_s29  ;;  %s3133_s29 = sld [smem:[#allocation6 + $0x32]] }
  0xd2   : > { %v749_v11 = vrot.slane %v743_v8, 1  ;;  %v772_v18 = vrot.slane %v766_v15, 1  ;;  %v795_v26 = vrot.slane %v789_v23, 1 }
  0xd3   : > { %v3730_v38 = vpop.permute.xlu1 %300 }
  0xd8   : > { %589 = vrot.lane.b32.xlu2 %v581_v39, %s3521_s25  ;;  %v856_v39 = vstv %s3127_s5  ;;  %s3137_s5 = sld [smem:[#allocation6 + $0x4e]] }
  0xdb   : > { %v501_v41 = vpop.permute.xlu1 %500 }
  0xdc   : > { %v3735_v42 = vsel %vm504_vm5, %v501_v41, %v503_v34  ;;  %v3738_v43 = vsel %vm504_vm5, 0.0, %v501_v41  ;;  %v818_v34 = vrot.slane %v812_v30, 1 }
  0xdd   : > { %v559_v45 = vmul.f32 %v557_v33, %v3735_v42  ;;  %v558_v46 = vmul.f32 %v557_v33, %v3738_v43  ;;  %v579_v48 = vmul.f32 %v578_v37, %v3738_v43  ;;  %v580_v49 = vmul.f32 %v578_v37, %v3735_v42 }
  0xde   : > { %v600_v52 = vmul.f32 %v599_v40, %v3738_v43  ;;  %v601_v53 = vmul.f32 %v599_v40, %v3735_v42  ;;  %v621_v56 = vmul.f32 %v620_v47, %v3738_v43  ;;  %v622_v57 = vmul.f32 %v620_v47, %v3735_v42 }
  0xdf   : > { %566 = vrot.lane.b32.xlu1 %v559_v45, %s3520_s23  ;;  %564 = vrot.lane.b32.xlu0 %v558_v46, %s3520_s23  ;;  %v642_v61 = vmul.f32 %v641_v51, %v3738_v43  ;;  %v643_v62 = vmul.f32 %v641_v51, %v3735_v42  ;;  %v663_v2 = vmul.f32 %v662_v55, %v3738_v43  ;;  %v878_v47 = vstv %s3128_s10  ;;  %s3138_s10 = sld [smem:[#allocation6 + $0x55]] }
  0xe0   : > { %610 = vrot.lane.b32.xlu2 %v602_v44, %s3522_s6  ;;  %v664_v3 = vmul.f32 %v662_v55, %v3735_v42  ;;  %v695_v6 = vmul.f32 %v694_v59, %v3738_v43  ;;  %v696_v7 = vmul.f32 %v694_v59, %v3735_v42  ;;  %v718_v13 = vmul.f32 %v717_v0, %v3738_v43 }
  0xe1   : > { %v719_v14 = vmul.f32 %v717_v0, %v3735_v42  ;;  %v741_v20 = vmul.f32 %v740_v5, %v3738_v43  ;;  %v742_v21 = vmul.f32 %v740_v5, %v3735_v42  ;;  %v764_v28 = vmul.f32 %v763_v12, %v3738_v43  ;;  %v3832_v0 = vpop.permute.xlu0 %295 }
  0xe2   : > { %v701_v9 = vrot.slane %v695_v6, 1  ;;  %v702_v10 = vrot.slane %v696_v7, 1  ;;  %v724_v16 = vrot.slane %v718_v13, 1  ;;  %v765_v29 = vmul.f32 %v763_v12, %v3735_v42 }
  0xe3   : > { %v725_v17 = vrot.slane %v719_v14, 1  ;;  %v747_v24 = vrot.slane %v741_v20, 1  ;;  %v748_v25 = vrot.slane %v742_v21, 1  ;;  %v770_v31 = vrot.slane %v764_v28, 1 }
  0xe4   : > { %v771_v33 = vrot.slane %v765_v29, 1  ;;  %v787_v36 = vmul.f32 %v786_v19, %v3738_v43  ;;  %v788_v37 = vmul.f32 %v786_v19, %v3735_v42  ;;  %v859_v44 = vmul.f32 %v856_v39, %v3726_v35 }
  0xe5   : > { %v810_v45 = vmul.f32 %v809_v27, %v3738_v43  ;;  %v811_v46 = vmul.f32 %v809_v27, %v3735_v42  ;;  %v900_v51 = vstv %s3129_s12  ;;  %v922_v55 = vstv %s3130_s7  ;;  %s3139_s12 = sld [smem:[#allocation6 + $0x5c]]  ;;  %s3527_s7 = smov 1  }
  0xe6   : > { %v793_v40 = vrot.slane %v787_v36, 1  ;;  %v794_v41 = vrot.slane %v788_v37, 1  ;;  %v944_v59 = vstv %s3131_s20  ;;  %v901_v60 = vmul.f32 %v900_v51, %v3738_v43  ;;  %s3126_s20 = sld [smem:[#allocation6 + $0x1]] }
  0xe7   : > { %585 = vrot.lane.b32.xlu1 %v579_v48, %s3521_s25  ;;  %587 = vrot.lane.b32.xlu0 %v580_v49, %s3521_s25  ;;  %v816_v48 = vrot.slane %v810_v45, 1  ;;  %v817_v49 = vrot.slane %v811_v46, 1  ;;  %v1005_v5 = vstv %s3134_s8  ;;  %v1030_v13 = vstv %s3135_s13  ;;  %s3143_s8 = sld [smem:[#allocation6 + $0x9]]  ;;  %s3528_s13 = smov 127  }
  0xe8   : > { %631 = vrot.lane.b32.xlu2 %v623_v50, %s3523_s9  ;;  %v881_v50 = vmul.f32 %v878_v47, %v3726_v35  ;;  %v1008_v7 = vmul.f32 %v1005_v5, %v3726_v35  ;;  %v1033_v14 = vmul.f32 %v1030_v13, %v3726_v35  ;;  %v1055_v21 = vstv %s3136_s30  ;;  %s3144_s30 = sld [smem:[#allocation6 + $0x10]] }
  0xea   : > { %v1014_v12 = vrot.slane %v1008_v7, 1  ;;  %v1039_v20 = vrot.slane %v1033_v14, 1 }
  0xef   : > { %606 = vrot.lane.b32.xlu1 %v600_v52, %s3522_s6  ;;  %608 = vrot.lane.b32.xlu0 %v601_v53, %s3522_s6  ;;  %v857_v52 = vmul.f32 %v856_v39, %v3738_v43  ;;  %v858_v53 = vmul.f32 %v856_v39, %v3735_v42 }
  0xf0   : > { %652 = vrot.lane.b32.xlu2 %v644_v54, %s3524_s11  ;;  %v903_v54 = vmul.f32 %v900_v51, %v3726_v35 }
  0xf7   : > { %627 = vrot.lane.b32.xlu1 %v621_v56, %s3523_s9  ;;  %629 = vrot.lane.b32.xlu0 %v622_v57, %s3523_s9  ;;  %v879_v56 = vmul.f32 %v878_v47, %v3738_v43  ;;  %v880_v57 = vmul.f32 %v878_v47, %v3735_v42 }
  0xf8   : > { %673 = vrot.lane.b32.xlu2 %v665_v58, %s3525_s26  ;;  %v925_v58 = vmul.f32 %v922_v55, %v3726_v35 }
  0xff   : > { %648 = vrot.lane.b32.xlu1 %v642_v61, %s3524_s11  ;;  %650 = vrot.lane.b32.xlu0 %v643_v62, %s3524_s11  ;;  %v902_v61 = vmul.f32 %v900_v51, %v3735_v42  ;;  %v947_v62 = vmul.f32 %v944_v59, %v3726_v35 }
 0x100   : > { %708 = vrot.lane.b32.xlu2 %v703_v63, %s3520_s23 }
 0x107   : > { %669 = vrot.lane.b32.xlu1 %v663_v2, %s3525_s26  ;;  %671 = vrot.lane.b32.xlu0 %v664_v3, %s3525_s26  ;;  %v923_v2 = vmul.f32 %v922_v55, %v3738_v43  ;;  %v924_v3 = vmul.f32 %v922_v55, %v3735_v42 }
 0x108   : > { %731 = vrot.lane.b32.xlu2 %v726_v4, %s3521_s25  ;;  %v969_v4 = vmul.f32 %v966_v1, %v3726_v35 }
 0x10f   : > { %704 = vrot.lane.b32.xlu1 %v701_v9, %s3520_s23  ;;  %706 = vrot.lane.b32.xlu0 %v702_v10, %s3520_s23  ;;  %v945_v10 = vmul.f32 %v944_v59, %v3738_v43 }
 0x110   : > { %754 = vrot.lane.b32.xlu2 %v749_v11, %s3522_s6  ;;  %v946_v11 = vmul.f32 %v944_v59, %v3735_v42 }
 0x117   : > { %727 = vrot.lane.b32.xlu1 %v724_v16, %s3521_s25  ;;  %729 = vrot.lane.b32.xlu0 %v725_v17, %s3521_s25  ;;  %v967_v16 = vmul.f32 %v966_v1, %v3738_v43  ;;  %v968_v17 = vmul.f32 %v966_v1, %v3735_v42 }
 0x118   : > { %777 = vrot.lane.b32.xlu2 %v772_v18, %s3523_s9 }
 0x11f   : > { %750 = vrot.lane.b32.xlu1 %v747_v24, %s3522_s6  ;;  %752 = vrot.lane.b32.xlu0 %v748_v25, %s3522_s6  ;;  %v1006_v24 = vmul.f32 %v1005_v5, %v3738_v43  ;;  %v1007_v25 = vmul.f32 %v1005_v5, %v3735_v42 }
 0x120   : > { %800 = vrot.lane.b32.xlu2 %v795_v26, %s3524_s11  ;;  %v1058_v26 = vmul.f32 %v1055_v21, %v3726_v35 }
 0x121   : > { %v1012_v28 = vrot.slane %v1006_v24, 1  ;;  %v1013_v29 = vrot.slane %v1007_v25, 1 }
 0x127   : > { %773 = vrot.lane.b32.xlu1 %v770_v31, %s3523_s9  ;;  %775 = vrot.lane.b32.xlu0 %v771_v33, %s3523_s9  ;;  %v1064_v31 = vrot.slane %v1058_v26, 1  ;;  %v1080_v33 = vstv %s3137_s5  ;;  %s3145_s5 = sld [smem:[#allocation6 + $0x17]] }
 0x128   : > { %823 = vrot.lane.b32.xlu2 %v818_v34, %s3525_s26  ;;  %v1081_v1 = vmul.f32 %v1080_v33, %v3738_v43 }
 0x12a   : > { %v3830_v63 = vpop.permute.xlu2 %568  ;;  %v1087_v7 = vrot.slane %v1081_v1, 1 }
 0x12f   : > { %796 = vrot.lane.b32.xlu1 %v793_v40, %s3524_s11  ;;  %798 = vrot.lane.b32.xlu0 %v794_v41, %s3524_s11  ;;  %v1032_v40 = vmul.f32 %v1030_v13, %v3735_v42  ;;  %v1083_v41 = vmul.f32 %v1080_v33, %v3726_v35 }
 0x130   : > { %867 = vrot.lane.b32.xlu2 %v859_v44, %s3520_s23 }
 0x131   : > { %v1038_v46 = vrot.slane %v1032_v40, 1  ;;  %v1089_v47 = vrot.slane %v1083_v41, 1 }
 0x132   : > { %v3843_v8 = vpop.permute.xlu2 %589 }
 0x137   : > { %819 = vrot.lane.b32.xlu1 %v816_v48, %s3525_s26  ;;  %821 = vrot.lane.b32.xlu0 %v817_v49, %s3525_s26 }
 0x138   : > { %889 = vrot.lane.b32.xlu2 %v881_v50, %s3521_s25 }
 0x13a   : > { %v3857_v18 = vpop.permute.xlu2 %610 }
 0x13f   : > { %863 = vrot.lane.b32.xlu1 %v857_v52, %s3520_s23  ;;  %865 = vrot.lane.b32.xlu0 %v858_v53, %s3520_s23  ;;  %v1056_v52 = vmul.f32 %v1055_v21, %v3738_v43  ;;  %v1057_v53 = vmul.f32 %v1055_v21, %v3735_v42 }
 0x140   : > { %911 = vrot.lane.b32.xlu2 %v903_v54, %s3522_s6 }
 0x141   : > { %v1062_v59 = vrot.slane %v1056_v52, 1 }
 0x142   : > { %v338_v23 = vpop.f32.mrf.mxu0  ;;  %v3872_v34 = vpop.permute.xlu2 %631 }
 0x143   : > { %v339_v27 = vadd.f32 %v338_v23, %v3702_v22  ;;  %v1031_v22 = vmul.f32 %v1030_v13, %v3738_v43  ;;  %v341_v49 = vpop.f32.mrf.mxu1 }
 0x145   : > { %v3105_v36 = vmul.f32 -1.442695, %v339_v27  ;;  %v1037_v45 = vrot.slane %v1031_v22, 1 }
 0x147   : > { %885 = vrot.lane.b32.xlu1 %v879_v56, %s3521_s25  ;;  %887 = vrot.lane.b32.xlu0 %v880_v57, %s3521_s25  ;;  %3362 = vpow2.f32 %v3105_v36  ;;  %v342_v56 = vadd.f32 %v341_v49, %v3832_v0 }
 0x148   : > { %933 = vrot.lane.b32.xlu2 %v925_v58, %s3523_s9  ;;  %v344_v51 = vpop.f32.mrf.mxu2 }
 0x149   : > { %v347_v39 = vpop.f32.mrf.mxu3  ;;  %v345_v57 = vadd.f32 %v344_v51, %v3730_v38 }
 0x14a   : > { %v348_v44 = vadd.f32 %v347_v39, %v3719_v32  ;;  %v3888_v32 = vpop.permute.xlu2 %652 }
 0x14b   : > { %4875 = vst [vmem:[#allocation11_spill] sm:$0xff] %v3888_v32 }
 0x14c   : > { %v3108_v48 = vmul.f32 -1.442695, %v348_v44 }
 0x14d   : > { %v3363_v54 = vpop.eup %3362 }
 0x14e   : > { %3364 = vpow2.f32 %v3108_v48  ;;  %v362_v58 = vadd.f32 1.0, %v3363_v54 }
 0x14f   : > { %907 = vrot.lane.b32.xlu1 %v901_v60, %s3522_s6  ;;  %909 = vrot.lane.b32.xlu0 %v902_v61, %s3522_s6  ;;  %v1063_v60 = vrot.slane %v1057_v53, 1  ;;  %v3106_v61 = vmul.f32 -1.442695, %v342_v56 }
 0x150   : > { %955 = vrot.lane.b32.xlu2 %v947_v62, %s3524_s11  ;;  %v3107_v62 = vmul.f32 -1.442695, %v345_v57  ;;  %3366 = vrcp.f32 %v362_v58  ;;  %v377_v39 = vand.u32 2147483648, %v362_v58  ;;  %vm371_vm7 = vweird.f32 %v362_v58 }
 0x151   : > { %v3840_v6 = vpop.permute.xlu1 %566  ;;  %v3845_v9 = vpop.permute.xlu0 %564  ;;  %3368 = vpow2.f32 %v3106_v61  ;;  %v375_v41 = vand.u32 2147483647, %v362_v58 }
 0x152   : > { %3370 = vpow2.f32 %v3107_v62  ;;  %v3900_v38 = vpop.permute.xlu2 %673  ;;  %v378_v48 = vor.u32 1.1754944e-38, %v377_v39 }
 0x153   : > { %4877 = vst [vmem:[#allocation13_spill] sm:$0xff] %v3900_v38  ;;  %vm376_vm9 = vcmp.eq.f32.partialorder %v375_v41, 8.507059e+37 }
 0x157   : > { %929 = vrot.lane.b32.xlu1 %v923_v2, %s3523_s9  ;;  %931 = vrot.lane.b32.xlu0 %v924_v3, %s3523_s9  ;;  %v1082_v2 = vmul.f32 %v1080_v33, %v3735_v42  ;;  %v3365_v3 = vpop.eup %3364 }
 0x158   : > { %977 = vrot.lane.b32.xlu2 %v969_v4, %s3525_s26  ;;  %v365_v5 = vadd.f32 1.0, %v3365_v3 }
 0x159   : > { %v3853_v15 = vpop.permute.xlu1 %585  ;;  %v3859_v19 = vpop.permute.xlu0 %587 }
 0x15a   : > { %3372 = vrcp.f32 %v365_v5  ;;  %v3912_v21 = vpop.permute.xlu2 %708  ;;  %v422_v54 = vand.u32 2147483648, %v365_v5  ;;  %vm416_vm12 = vweird.f32 %v365_v5 }
 0x15b   : > { %4880 = vst [vmem:[#allocation16_spill] sm:$0xff] %v3912_v21 }
 0x15f   : > { %951 = vrot.lane.b32.xlu1 %v945_v10, %s3524_s11  ;;  %953 = vrot.lane.b32.xlu0 %v946_v11, %s3524_s11  ;;  %v1088_v10 = vrot.slane %v1082_v2, 1  ;;  %v3367_v11 = vpop.eup %3366  ;;  %v423_v2 = vor.u32 1.1754944e-38, %v422_v54 }
 0x160   : > { %1019 = vrot.lane.b32.xlu2 %v1014_v12, %s3520_s23  ;;  %v3369_v12 = vpop.eup %3368  ;;  %v367_v14 = vmul.f32 %v3367_v11, %v362_v58  ;;  %vm372_vm6 = vweird.f32 %v3367_v11  ;;  %v420_v58 = vand.u32 2147483647, %v365_v5 }
 0x161   : > { %v3868_v30 = vpop.permute.xlu1 %606  ;;  %v3874_v37 = vpop.permute.xlu0 %608  ;;  %vm373_vm8 = vmor %vm371_vm7, %vm372_vm6 }
 0x162   : > { %v3371_v13 = vpop.eup %3370  ;;  %v368_v24 = vsub.f32 1.0, %v367_v14  ;;  %v3922_v22 = vpop.permute.xlu2 %731  ;;  %vm421_vm14 = vcmp.eq.f32.partialorder %v420_v58, 8.507059e+37  ;;  %v1130_v58 = vstv %s3139_s12  ;;  %s3147_s12 = sld [smem:[#allocation6 + $0x25]] }
 0x163   : > { %v3373_v25 = vpop.eup %3372  ;;  %4883 = vst [vmem:[#allocation19_spill] sm:$0xff] %v3922_v22 }
 0x164   : > { %v369_v26 = vmul.f32 %v3367_v11, %v368_v24  ;;  %v412_v27 = vmul.f32 %v3373_v25, %v365_v5  ;;  %vm417_vm11 = vweird.f32 %v3373_v25 }
 0x165   : > { %vm418_vm13 = vmor %vm416_vm12, %vm417_vm11  ;;  %vm570_vm12 = vcmask 916480  }
 0x166   : > { %v413_v33 = vsub.f32 1.0, %v412_v27 }
 0x167   : > { %973 = vrot.lane.b32.xlu1 %v967_v16, %s3525_s26  ;;  %975 = vrot.lane.b32.xlu0 %v968_v17, %s3525_s26  ;;  %v3906_v16 = vadd.f32 1.0, %v3369_v12 }
 0x168   : > { %1044 = vrot.lane.b32.xlu2 %v1039_v20, %s3521_s25  ;;  %v3910_v20 = vadd.f32 1.0, %v3371_v13 }
 0x169   : > { %v3883_v50 = vpop.permute.xlu1 %627  ;;  %v3890_v55 = vpop.permute.xlu0 %629  ;;  %3374 = vrcp.f32 %v3906_v16  ;;  %vm386_vm15 = vweird.f32 %v3906_v16 }
 0x16a   : > { %3376 = vrcp.f32 %v3910_v20  ;;  %v407_v12 = vand.u32 2147483648, %v3910_v20  ;;  %vm401_vm5 = vweird.f32 %v3910_v20  ;;  %v405_v24 = vand.u32 2147483647, %v3910_v20 }
 0x16f   : > { %1015 = vrot.lane.b32.xlu1 %v1012_v28, %s3520_s23  ;;  %1017 = vrot.lane.b32.xlu0 %v1013_v29, %s3520_s23  ;;  %v3918_v28 = vpop.eup %3374 }
 0x170   : > { %1069 = vrot.lane.b32.xlu2 %v1064_v31, %s3522_s6  ;;  %v370_v31 = vadd.f32 %v3367_v11, %v369_v26  ;;  %v3377_v36 = vpop.eup %3376  ;;  %vm387_vm0 = vweird.f32 %v3918_v28 }
 0x171   : > { %v3898_v4 = vpop.permute.xlu1 %648  ;;  %v3902_v0 = vpop.permute.xlu0 %650  ;;  %vm402_vm1 = vweird.f32 %v3377_v36  ;;  %vm3943_vm2 = vmor %vm386_vm15, %vm387_vm0  ;;  %vm633_vm15 = vcmask 523264   ;;  %vm654_vm0 = vcmask 392192  }
 0x172   : > { %4876 = vst [vmem:[#allocation12_spill] sm:$0xff] %v3898_v4  ;;  %v374_v44 = vsel %vm373_vm8, %v3367_v11, %v370_v31  ;;  %v390_v11 = vand.u32 2147483647, %v3906_v16  ;;  %vm403_vm6 = vmor %vm401_vm5, %vm402_vm1  ;;  %v408_v31 = vor.u32 1.1754944e-38, %v407_v12  ;;  %vm406_vm8 = vcmp.eq.f32.partialorder %v405_v24, 8.507059e+37 }
 0x173   : > { %4878 = vst [vmem:[#allocation14_spill] sm:$0xff] %v3902_v0  ;;  %v379_v49 = vsel %vm376_vm9, %v378_v48, %v374_v44 }
 0x174   : > { %v427_v57 = vsel %vm426_vm10, %v379_v49, 0.0  ;;  %vm391_vm7 = vcmp.eq.f32.partialorder %v390_v11, 8.507059e+37 }
 0x177   : > { %1040 = vrot.lane.b32.xlu1 %v1037_v45, %s3521_s25  ;;  %1042 = vrot.lane.b32.xlu0 %v1038_v46, %s3521_s25  ;;  %v414_v45 = vmul.f32 %v3373_v25, %v413_v33  ;;  %v397_v46 = vmul.f32 %v3377_v36, %v3910_v20 }
 0x178   : > { %1094 = vrot.lane.b32.xlu2 %v1089_v47, %s3523_s9  ;;  %v382_v47 = vmul.f32 %v3918_v28, %v3906_v16 }
 0x179   : > { %v3908_v17 = vpop.permute.xlu1 %669  ;;  %v3914_v23 = vpop.permute.xlu0 %671  ;;  %v415_v51 = vadd.f32 %v3373_v25, %v414_v45  ;;  %v398_v52 = vsub.f32 1.0, %v397_v46 }
 0x17a   : > { %4879 = vst [vmem:[#allocation15_spill] sm:$0xff] %v3908_v17  ;;  %v383_v53 = vsub.f32 1.0, %v382_v47  ;;  %v1105_v47 = vstv %s3138_s10  ;;  %s3146_s10 = sld [smem:[#allocation6 + $0x1e]] }
 0x17b   : > { %4881 = vst [vmem:[#allocation17_spill] sm:$0xff] %v3914_v23  ;;  %v419_v61 = vsel %vm418_vm13, %v3373_v25, %v415_v51  ;;  %v399_v62 = vmul.f32 %v3377_v36, %v398_v52  ;;  %v1108_v48 = vmul.f32 %v1105_v47, %v3726_v35  ;;  %v511_v51 = vlaneseq }
 0x17c   : > { %v384_v1 = vmul.f32 %v3918_v28, %v383_v53  ;;  %v424_v3 = vsel %vm421_vm14, %v423_v2, %v419_v61  ;;  %v1107_v53 = vmul.f32 %v1105_v47, %v3735_v42  ;;  %v1106_v2 = vmul.f32 %v1105_v47, %v3738_v43 }
 0x17d   : > { %v400_v5 = vadd.f32 %v3377_v36, %v399_v62  ;;  %v436_v14 = vsel %vm426_vm10, %v424_v3, 0.0  ;;  %v1114_v52 = vrot.slane %v1108_v48, 1  ;;  %v512_v61 = vand.u32 127, %v511_v51 }
 0x17e   : > { %v1113_v62 = vrot.slane %v1107_v53, 1  ;;  %v1112_v11 = vrot.slane %v1106_v2, 1  ;;  %vm591_vm13 = vcmask 785408   ;;  %vm612_vm14 = vcmask 654336  }
 0x17f   : > { %1065 = vrot.lane.b32.xlu1 %v1062_v59, %s3522_s6  ;;  %1067 = vrot.lane.b32.xlu0 %v1063_v60, %s3522_s6  ;;  %v3932_v59 = vpop.permute.xlu2 %754  ;;  %v404_v27 = vsel %vm403_vm6, %v3377_v36, %v400_v5  ;;  %v513_v3 = vadd.s32 128, %v512_v61  ;;  %v1132_v5 = vmul.f32 %v1130_v58, %v3735_v42  ;;  %vm1871_vm6 = vcmask 1022976  }
 0x180   : > { %4886 = vst [vmem:[#allocation22_spill] sm:$0xff] %v3932_v59  ;;  %v409_v41 = vsel %vm406_vm8, %v408_v31, %v404_v27  ;;  %v1131_v27 = vmul.f32 %v1130_v58, %v3738_v43 }
 0x181   : > { %v3920_v29 = vpop.permute.xlu1 %704  ;;  %v3924_v40 = vpop.permute.xlu0 %706  ;;  %v433_v20 = vsel %vm426_vm10, %v409_v41, 0.0  ;;  %v3988_v24 = vand.u32 15, %v513_v3 }
 0x182   : > { %4882 = vst [vmem:[#allocation18_spill] sm:$0xff] %v3920_v29  ;;  %v1137_v41 = vrot.slane %v1131_v27, 1 }
 0x183   : > { %4884 = vst [vmem:[#allocation20_spill] sm:$0xff] %v3924_v40  ;;  %v836_v31 = vadd.s32 4294967294, %v3988_v24 }
 0x185   : > { %vm838_vm11 = vcmp.ge.s32.totalorder %v836_v31, 0 }
 0x187   : > { %1090 = vrot.lane.b32.xlu1 %v1087_v7, %s3523_s9  ;;  %1092 = vrot.lane.b32.xlu0 %v1088_v10, %s3523_s9  ;;  %v392_v7 = vand.u32 2147483648, %v3906_v16  ;;  %v385_v10 = vadd.f32 %v3918_v28, %v384_v1  ;;  %v3955_v33 = vpop.permute.xlu2 %777  ;;  %v1133_v1 = vmul.f32 %v1130_v58, %v3726_v35 }
 0x188   : > { %4891 = vst [vmem:[#allocation25_spill] sm:$0xff] %v3955_v33 }
 0x189   : > { %v3929_v56 = vpop.permute.xlu1 %727  ;;  %v3934_v60 = vpop.permute.xlu0 %729  ;;  %v393_v25 = vor.u32 1.1754944e-38, %v392_v7  ;;  %v389_v16 = vsel %vm3943_vm2, %v3918_v28, %v385_v10  ;;  %v1139_v7 = vrot.slane %v1133_v1, 1 }
 0x18a   : > { %4885 = vst [vmem:[#allocation21_spill] sm:$0xff] %v3929_v56 }
 0x18b   : > { %4887 = vst [vmem:[#allocation23_spill] sm:$0xff] %v3934_v60  ;;  %v394_v44 = vsel %vm391_vm7, %v393_v25, %v389_v16  ;;  %v1138_v25 = vrot.slane %v1132_v5, 1  ;;  %vm2203_vm7 = vcmask 31744  }
 0x18c   : > { %v430_v45 = vsel %vm426_vm10, %v394_v44, 0.0 }
 0x18f   : > { %v3963_v46 = vpop.permute.xlu2 %800 }
 0x190   : > { %4894 = vst [vmem:[#allocation28_spill] sm:$0xff] %v3963_v46 }
 0x191   : > { %v3950_v26 = vpop.permute.xlu1 %750  ;;  %v3957_v39 = vpop.permute.xlu0 %752 }
 0x192   : > { %4890 = vst [vmem:[#allocation24_spill] sm:$0xff] %v3950_v26 }
 0x193   : > { %4892 = vst [vmem:[#allocation26_spill] sm:$0xff] %v3957_v39 }
 0x197   : > { %v3971_v54 = vpop.permute.xlu2 %823 }
 0x198   : > { %4897 = vst [vmem:[#allocation31_spill] sm:$0xff] %v3971_v54 }
 0x199   : > { %v3961_v36 = vpop.permute.xlu1 %773  ;;  %v3965_v28 = vpop.permute.xlu0 %775 }
 0x19a   : > { %4893 = vst [vmem:[#allocation27_spill] sm:$0xff] %v3961_v36  ;;  %v848_v36 = vstv %s3126_s20  ;;  %s3150_s20 = sld [smem:[#allocation6 + $0x3a]] }
 0x19b   : > { %4895 = vst [vmem:[#allocation29_spill] sm:$0xff] %v3965_v28  ;;  %v851_v26 = vmul.f32 %v848_v36, %v3726_v35  ;;  %v849_v39 = vmul.f32 %v848_v36, %v3738_v43  ;;  %v850_v56 = vmul.f32 %v848_v36, %v3735_v42 }
 0x19f   : > { %v868_v12 = vpop.permute.xlu2 %867 }
 0x1a1   : > { %428 = vadd.xlane.f32.xlu2 %v427_v57  ;;  %v3968_v49 = vpop.permute.xlu1 %796  ;;  %v3973_v57 = vpop.permute.xlu0 %798 }
 0x1a2   : > { %4896 = vst [vmem:[#allocation30_spill] sm:$0xff] %v3968_v49 }
 0x1a3   : > { %4898 = vst [vmem:[#allocation32_spill] sm:$0xff] %v3973_v57 }
 0x1a7   : > { %v890_v48 = vpop.permute.xlu2 %889 }
 0x1a9   : > { %437 = vadd.xlane.f32.xlu2 %v436_v14  ;;  %v3980_v10 = vpop.permute.xlu1 %819  ;;  %v3983_v13 = vpop.permute.xlu0 %821  ;;  %v3986_v14 = vand.u32 15, %v512_v61 }
 0x1aa   : > { %4899 = vst [vmem:[#allocation33_spill] sm:$0xff] %v3980_v10 }
 0x1ab   : > { %4900 = vst [vmem:[#allocation34_spill] sm:$0xff] %v3983_v13  ;;  %v835_v16 = vadd.s32 4294967294, %v3986_v14 }
 0x1ad   : > { %vm837_vm9 = vcmp.ge.s32.totalorder %v835_v16, 0 }
 0x1af   : > { %v912_v58 = vpop.permute.xlu2 %911 }
 0x1b1   : > { %434 = vadd.xlane.f32.xlu0 %v433_v20  ;;  %431 = vadd.xlane.f32.xlu1 %v430_v45  ;;  %v864_v44 = vpop.permute.xlu1 %863  ;;  %v4856_v20 = vmov 0.0   ;;  %v866_v51 = vpop.permute.xlu0 %865 }
 0x1b2   : > { %v3124_v45 = vsel %vm837_vm9, 1.0, %v4856_v20  ;;  %v3125_v47 = vsel %vm838_vm11, 1.0, %v4856_v20  ;;  %v869_v59 = vsel %vm570_vm12, %v864_v44, %v866_v51  ;;  %v870_v22 = vsel %vm570_vm12, %v866_v51, %v868_v12 }
 0x1b3   : > { %v874_v21 = vadd.f32 %v869_v59, %v849_v39  ;;  %v875_v40 = vadd.f32 %v870_v22, %v850_v56  ;;  %v988_v51 = vstv %s3133_s29  ;;  %s3151_s29 = sld [smem:[#allocation6 + $0x41]]  ;;  %vm1176_vm11 = vcmask 1039360  }
 0x1b7   : > { %v934_v1 = vpop.permute.xlu2 %933 }
 0x1b9   : > { %v886_v53 = vpop.permute.xlu1 %885  ;;  %v888_v61 = vpop.permute.xlu0 %887 }
 0x1ba   : > { %v891_v60 = vsel %vm591_vm13, %v886_v53, %v888_v61  ;;  %v892_v29 = vsel %vm591_vm13, %v888_v61, %v890_v48 }
 0x1bb   : > { %v896_v23 = vadd.f32 %v891_v60, %v874_v21  ;;  %v897_v4 = vadd.f32 %v892_v29, %v875_v40  ;;  %v991_v29 = vmul.f32 %v988_v51, %v3726_v35 }
 0x1c1   : > { %1119 = vrot.lane.b32.xlu2 %v1114_v52, %s3524_s11  ;;  %v3328_v52 = vpack.i.bf16 %v3125_v47, %v3124_v45  ;;  %v910_v2 = vpop.permute.xlu0 %909 }
 0x1c2   : > { %v914_v32 = vsel %vm612_vm14, %v910_v2, %v912_v58 }
 0x1c3   : > { %v919_v39 = vadd.f32 %v914_v32, %v897_v4  ;;  %v990_v32 = vmul.f32 %v988_v51, %v3735_v42 }
 0x1c5   : > { %1117 = vrot.lane.b32.xlu0 %v1113_v62, %s3524_s11  ;;  %v908_v62 = vpop.permute.xlu1 %907 }
 0x1c6   : > { %v913_v38 = vsel %vm612_vm14, %v908_v62, %v910_v2 }
 0x1c7   : > { %v918_v22 = vadd.f32 %v913_v38, %v896_v23  ;;  %v989_v38 = vmul.f32 %v988_v51, %v3738_v43 }
 0x1c9   : > { %1144 = vrot.lane.b32.xlu2 %v1139_v7, %s3525_s26  ;;  %v956_v7 = vpop.permute.xlu2 %955  ;;  %v932_v5 = vpop.permute.xlu0 %931 }
 0x1ca   : > { %1115 = vrot.lane.b32.xlu1 %v1112_v11, %s3524_s11  ;;  %v936_v56 = vsel %vm633_vm15, %v932_v5, %v934_v1 }
 0x1cb   : > { %v941_v40 = vadd.f32 %v936_v56, %v919_v39 }
 0x1cd   : > { %1142 = vrot.lane.b32.xlu0 %v1138_v25, %s3525_s26  ;;  %v930_v3 = vpop.permute.xlu1 %929 }
 0x1ce   : > { %v935_v36 = vsel %vm633_vm15, %v930_v3, %v932_v5  ;;  %v997_v5 = vrot.slane %v991_v29, 1 }
 0x1cf   : > { %v940_v21 = vadd.f32 %v935_v36, %v918_v22 }
 0x1d1   : > { %v3997_v25 = vpop.permute.xlu2 %977  ;;  %v954_v27 = vpop.permute.xlu0 %953 }
 0x1d2   : > { %1140 = vrot.lane.b32.xlu1 %v1137_v41, %s3525_s26  ;;  %v958_v60 = vsel %vm654_vm0, %v954_v27, %v956_v7 }
 0x1d3   : > { %v963_v23 = vadd.f32 %v958_v60, %v941_v40 }
 0x1d5   : > { %v952_v11 = vpop.permute.xlu1 %951 }
 0x1d9   : > { %v3999_v31 = vpop.permute.xlu2 %1019  ;;  %v976_v41 = vpop.permute.xlu0 %975 }
 0x1da   : > { %3329 = vrot.lane.b32.xlu1 %v3328_v52, %s3527_s7  ;;  %s3148_s7 = sld [smem:[#allocation6 + $0x2c]] }
 0x1dd   : > { %v974_v16 = vpop.permute.xlu1 %973 }
 0x1e1   : > { %v4003_v47 = vpop.permute.xlu2 %1044  ;;  %v4005_v52 = vpop.permute.xlu0 %1017 }
 0x1e2   : > { %v1022_v51 = vsel %vm570_vm12, %v4005_v52, %v3999_v31 }
 0x1e5   : > { %v4001_v45 = vpop.permute.xlu1 %1015 }
 0x1e9   : > { %v4009_v54 = vpop.permute.xlu2 %1069  ;;  %v4011_v10 = vpop.permute.xlu0 %1042 }
 0x1ea   : > { %v1047_v39 = vsel %vm591_vm13, %v4011_v10, %v4003_v47 }
 0x1ed   : > { %v4007_v20 = vpop.permute.xlu1 %1040 }
 0x1f1   : > { %v4015_v46 = vpop.permute.xlu2 %1094  ;;  %v4017_v49 = vpop.permute.xlu0 %1067 }
 0x1f5   : > { %v4013_v13 = vpop.permute.xlu1 %1065 }
 0x1f9   : > { %v4023_v28 = vpop.permute.xlu0 %1092 }
 0x1fd   : > { %v4019_v57 = vpop.permute.xlu1 %1090 }
 0x214   : > { %v4021_v33 = vpop.xlane.xlu2 %428 }
 0x215   : > { %4901 = vst [vmem:[#allocation35_spill] sm:$0xff] %v4021_v33  ;;  %v876_v33 = vadd.f32 %v868_v12, %v851_v26  ;;  %v957_v12 = vsel %vm654_vm0, %v952_v11, %v954_v27  ;;  %v995_v11 = vrot.slane %v989_v38, 1  ;;  %v996_v27 = vrot.slane %v990_v32, 1 }
 0x216   : > { %v962_v62 = vadd.f32 %v957_v12, %v940_v21  ;;  %v1071_v12 = vsel %vm612_vm14, %v4013_v13, %v4017_v49  ;;  %v1097_v13 = vsel %vm633_vm15, %v4023_v28, %v4015_v46 }
 0x217   : > { %v898_v17 = vadd.f32 %v890_v48, %v876_v33  ;;  %v979_v48 = vsel %vm308_vm4, %v974_v16, %v976_v41 }
 0x219   : > { %v920_v59 = vadd.f32 %v912_v58, %v898_v17  ;;  %v980_v17 = vsel %vm308_vm4, %v976_v41, %v3997_v25 }
 0x21a   : > { %v985_v2 = vadd.f32 %v980_v17, %v963_v23 }
 0x21b   : > { %v942_v33 = vadd.f32 %v934_v1, %v920_v59  ;;  %v984_v1 = vadd.f32 %v979_v48, %v962_v62 }
 0x21c   : > { %v4037_v53 = vpop.xlane.xlu2 %437  ;;  %v1002_v59 = vadd.f32 %v996_v27, %v985_v2 }
 0x21d   : > { %4903 = vst [vmem:[#allocation37_spill] sm:$0xff] %v4037_v53  ;;  %v964_v61 = vadd.f32 %v956_v7, %v942_v33  ;;  %v1021_v7 = vsel %vm570_vm12, %v4001_v45, %v4005_v52  ;;  %v1001_v36 = vadd.f32 %v995_v11, %v984_v1 }
 0x21e   : > { %v1027_v45 = vadd.f32 %v1022_v51, %v1002_v59  ;;  %v1226_v59 = vstv %s3144_s30  ;;  %s3154_s30 = sld [smem:[#allocation6 + $0x56]] }
 0x21f   : > { %v986_v58 = vadd.f32 %v3997_v25, %v964_v61  ;;  %v1046_v25 = vsel %vm591_vm13, %v4007_v20, %v4011_v10  ;;  %v1026_v56 = vadd.f32 %v1021_v7, %v1001_v36  ;;  %v1072_v20 = vsel %vm612_vm14, %v4017_v49, %v4009_v54 }
 0x220   : > { %v1052_v60 = vadd.f32 %v1047_v39, %v1027_v45  ;;  %v1248_v39 = vstv %s3145_s5  ;;  %s3155_s5 = sld [smem:[#allocation6 + $0x5d]] }
 0x221   : > { %v1003_v41 = vadd.f32 %v997_v5, %v986_v58  ;;  %v1051_v21 = vadd.f32 %v1046_v25, %v1026_v56  ;;  %v1229_v25 = vmul.f32 %v1226_v59, %v3726_v35  ;;  %v1228_v56 = vmul.f32 %v1226_v59, %v3735_v42 }
 0x222   : > { %v1077_v40 = vadd.f32 %v1072_v20, %v1052_v60  ;;  %v1251_v45 = vmul.f32 %v1248_v39, %v3726_v35 }
 0x223   : > { %v1028_v22 = vadd.f32 %v3999_v31, %v1003_v41  ;;  %v1096_v31 = vsel %vm633_vm15, %v4019_v57, %v4023_v28  ;;  %v1076_v29 = vadd.f32 %v1071_v12, %v1051_v21  ;;  %v1249_v12 = vmul.f32 %v1248_v39, %v3738_v43 }
 0x224   : > { %v4033_v44 = vpop.xlane.xlu1 %431  ;;  %v4039_v26 = vpop.xlane.xlu0 %434  ;;  %v1102_v17 = vadd.f32 %v1097_v13, %v1077_v40  ;;  %v1314_v40 = vstv %s3148_s7  ;;  %s3149_s7 = sld [smem:[#allocation6 + $0x33]] }
 0x225   : > { %4902 = vst [vmem:[#allocation36_spill] sm:$0xff] %v4033_v44  ;;  %v1120_v16 = vpop.permute.xlu2 %1119  ;;  %v1053_v52 = vadd.f32 %v4003_v47, %v1028_v22  ;;  %v1101_v62 = vadd.f32 %v1096_v31, %v1076_v29  ;;  %v1227_v22 = vmul.f32 %v1226_v59, %v3738_v43  ;;  %v1292_v31 = vstv %s3147_s12  ;;  %s3142_s12 = sld [smem:[#allocation6 + $0x2]] }
 0x226   : > { %4904 = vst [vmem:[#allocation38_spill] sm:$0xff] %v4039_v26  ;;  %v1293_v29 = vmul.f32 %v1292_v31, %v3738_v43  ;;  %v1294_v13 = vmul.f32 %v1292_v31, %v3735_v42 }
 0x227   : > { %v1078_v10 = vadd.f32 %v4009_v54, %v1053_v52  ;;  %v1270_v52 = vstv %s3146_s10  ;;  %s3529_s10 = smov 2  }
 0x228   : > { %v1273_v21 = vmul.f32 %v1270_v52, %v3726_v35  ;;  %v1271_v20 = vmul.f32 %v1270_v52, %v3738_v43  ;;  %v1272_v60 = vmul.f32 %v1270_v52, %v3735_v42 }
 0x229   : > { %v1103_v61 = vadd.f32 %v4015_v46, %v1078_v10  ;;  %v1295_v10 = vmul.f32 %v1292_v31, %v3726_v35  ;;  %v1478_v31 = vstv %s3155_s5  ;;  %s3161_s5 = sld [smem:[#allocation6 + $0x26]] }
 0x22b   : > { %v1128_v23 = vadd.f32 %v1120_v16, %v1103_v61  ;;  %v1316_v61 = vmul.f32 %v1314_v40, %v3735_v42 }
 0x22d   : > { %v1145_v38 = vpop.permute.xlu2 %1144 }
 0x22e   : > { %v1153_v28 = vadd.f32 %v1145_v38, %v1128_v23 }
 0x237   : > { %v1118_v3 = vpop.permute.xlu0 %1117 }
 0x238   : > { %v1122_v49 = vsel %vm654_vm0, %v1118_v3, %v1120_v16  ;;  %v1204_v16 = vstv %s3143_s8  ;;  %s3152_s8 = sld [smem:[#allocation6 + $0x48]] }
 0x239   : > { %v1127_v58 = vadd.f32 %v1122_v49, %v1102_v17  ;;  %v1207_v41 = vmul.f32 %v1204_v16, %v3726_v35  ;;  %v1205_v36 = vmul.f32 %v1204_v16, %v3738_v43  ;;  %v1206_v51 = vmul.f32 %v1204_v16, %v3735_v42 }
 0x23c   : > { %v1116_v4 = vpop.permute.xlu1 %1115 }
 0x23d   : > { %v1121_v47 = vsel %vm654_vm0, %v1116_v4, %v1118_v3 }
 0x23e   : > { %v1126_v54 = vadd.f32 %v1121_v47, %v1101_v62  ;;  %v1317_v47 = vmul.f32 %v1314_v40, %v3726_v35  ;;  %v1353_v62 = vstv %s3150_s20  ;;  %s3157_s20 = sld [smem:[#allocation6 + $0xa]] }
 0x23f   : > { %v1143_v48 = vpop.permute.xlu0 %1142  ;;  %v1356_v49 = vmul.f32 %v1353_v62, %v3726_v35  ;;  %v1354_v17 = vmul.f32 %v1353_v62, %v3738_v43 }
 0x240   : > { %v1147_v32 = vsel %vm308_vm4, %v1143_v48, %v1145_v38  ;;  %v1355_v38 = vmul.f32 %v1353_v62, %v3735_v42 }
 0x241   : > { %v1152_v11 = vadd.f32 %v1147_v32, %v1127_v58  ;;  %v1360_v23 = vrot.slane %v1354_v17, 1  ;;  %v1378_v32 = vstv %s3151_s29  ;;  %v4906_v17 = vmov 0.0   ;;  %s3530_s29 = smov 126  }
 0x242   : > { %v1381_v58 = vmul.f32 %v1378_v32, %v3726_v35 }
 0x244   : > { %v1141_v33 = vpop.permute.xlu1 %1140 }
 0x245   : > { %v1146_v57 = vsel %vm308_vm4, %v1141_v33, %v1143_v48  ;;  %v1250_v33 = vmul.f32 %v1248_v39, %v3735_v42  ;;  %v1315_v48 = vmul.f32 %v1314_v40, %v3738_v43  ;;  %v1184_v40 = vadd.s32 4294967295, %v3988_v24 }
 0x246   : > { %v1151_v2 = vadd.f32 %v1146_v57, %v1126_v54  ;;  %v1362_v57 = vrot.slane %v1356_v49, 1  ;;  %v1361_v54 = vrot.slane %v1355_v38, 1 }
 0x247   : > { %vm1186_vm1 = vcmp.ge.s32.totalorder %v1184_v40, 0 }
 0x24c   : > { %v3330_v1 = vpop.permute.xlu1 %3329 }
 0x24d   : > { %v3332_v4 = vunpack.i.h.bf16 %v3330_v1  ;;  %v3331_v5 = vunpack.i.l.bf16 %v3330_v1  ;;  %v1379_v1 = vmul.f32 %v1378_v32, %v3738_v43 }
 0x24f   : > { %v1166_v46 = vmul.f32 %v3332_v4, %v1153_v28  ;;  %v1164_v27 = vmul.f32 %v3331_v5, %v1151_v2  ;;  %v1160_v3 = vsel %vm275_vm3, %v3331_v5, %v3332_v4  ;;  %v1380_v28 = vmul.f32 %v1378_v32, %v3735_v42 }
 0x250   : > { %v1165_v7 = vmul.f32 %v1160_v3, %v1152_v11  ;;  %v1387_v2 = vrot.slane %v1381_v58, 1  ;;  %v1385_v4 = vrot.slane %v1379_v1, 1  ;;  %v1403_v11 = vstv %s3152_s8  ;;  %s3158_s8 = sld [smem:[#allocation6 + $0x11]] }
 0x251   : > { %1174 = vrot.lane.b32.xlu1 %v1166_v46, %s3528_s13  ;;  %1170 = vrot.lane.b32.xlu0 %v1164_v27, %s3528_s13  ;;  %v1386_v5 = vrot.slane %v1380_v28, 1  ;;  %v1406_v46 = vmul.f32 %v1403_v11, %v3726_v35  ;;  %v1404_v27 = vmul.f32 %v1403_v11, %v3738_v43  ;;  %v1405_v3 = vmul.f32 %v1403_v11, %v3735_v42 }
 0x252   : > { %1172 = vrot.lane.b32.xlu2 %v1165_v7, %s3528_s13  ;;  %s3153_s13 = sld [smem:[#allocation6 + $0x4f]] }
 0x253   : > { %v1412_v7 = vrot.slane %v1406_v46, 1  ;;  %v1410_v16 = vrot.slane %v1404_v27, 1 }
 0x259   : > { %1215 = vrot.lane.b32.xlu1 %v1207_v41, %s3520_s23  ;;  %1211 = vrot.lane.b32.xlu0 %v1205_v36, %s3520_s23  ;;  %v1411_v41 = vrot.slane %v1405_v3, 1  ;;  %v1428_v36 = vstv %s3153_s13  ;;  %s3159_s13 = sld [smem:[#allocation6 + $0x18]] }
 0x25a   : > { %1213 = vrot.lane.b32.xlu2 %v1206_v51, %s3520_s23  ;;  %v1431_v51 = vmul.f32 %v1428_v36, %v3726_v35  ;;  %v1429_v59 = vmul.f32 %v1428_v36, %v3738_v43 }
 0x261   : > { %1237 = vrot.lane.b32.xlu1 %v1229_v25, %s3521_s25  ;;  %1233 = vrot.lane.b32.xlu0 %v1227_v22, %s3521_s25  ;;  %v1430_v25 = vmul.f32 %v1428_v36, %v3735_v42  ;;  %v1437_v22 = vrot.slane %v1431_v51, 1 }
 0x262   : > { %1235 = vrot.lane.b32.xlu2 %v1228_v56, %s3521_s25  ;;  %v1435_v56 = vrot.slane %v1429_v59, 1 }
 0x263   : > { %v1436_v39 = vrot.slane %v1430_v25, 1 }
 0x269   : > { %1259 = vrot.lane.b32.xlu1 %v1251_v45, %s3522_s6  ;;  %1255 = vrot.lane.b32.xlu0 %v1249_v12, %s3522_s6  ;;  %v1453_v45 = vstv %s3154_s30  ;;  %s3160_s30 = sld [smem:[#allocation6 + $0x1f]] }
 0x26a   : > { %1257 = vrot.lane.b32.xlu2 %v1250_v33, %s3522_s6  ;;  %v1456_v12 = vmul.f32 %v1453_v45, %v3726_v35  ;;  %v1454_v33 = vmul.f32 %v1453_v45, %v3738_v43  ;;  %v1455_v52 = vmul.f32 %v1453_v45, %v3735_v42 }
 0x271   : > { %1281 = vrot.lane.b32.xlu1 %v1273_v21, %s3523_s9  ;;  %1277 = vrot.lane.b32.xlu0 %v1271_v20, %s3523_s9  ;;  %v1462_v21 = vrot.slane %v1456_v12, 1  ;;  %v1460_v20 = vrot.slane %v1454_v33, 1 }
 0x272   : > { %1279 = vrot.lane.b32.xlu2 %v1272_v60, %s3523_s9  ;;  %v1461_v60 = vrot.slane %v1455_v52, 1 }
 0x279   : > { %1303 = vrot.lane.b32.xlu1 %v1295_v10, %s3524_s11  ;;  %1299 = vrot.lane.b32.xlu0 %v1293_v29, %s3524_s11  ;;  %v1481_v10 = vmul.f32 %v1478_v31, %v3726_v35  ;;  %v1479_v29 = vmul.f32 %v1478_v31, %v3738_v43 }
 0x27a   : > { %1301 = vrot.lane.b32.xlu2 %v1294_v13, %s3524_s11  ;;  %v1183_v13 = vadd.s32 4294967295, %v3986_v14 }
 0x27c   : > { %vm1185_vm3 = vcmp.ge.s32.totalorder %v1183_v13, 0 }
 0x27d   : > { %v3140_v38 = vsel %vm1185_vm3, 1.0, %v4906_v17  ;;  %vm1524_vm3 = vcmask 1031168  }
 0x281   : > { %1325 = vrot.lane.b32.xlu1 %v1317_v47, %s3525_s26  ;;  %1321 = vrot.lane.b32.xlu0 %v1315_v48, %s3525_s26  ;;  %v1480_v47 = vmul.f32 %v1478_v31, %v3735_v42  ;;  %v1487_v48 = vrot.slane %v1481_v10, 1  ;;  %v1196_v31 = vstv %s3142_s12  ;;  %s3164_s12 = sld [smem:[#allocation6 + $0x3b]] }
 0x282   : > { %1323 = vrot.lane.b32.xlu2 %v1316_v61, %s3525_s26  ;;  %v1485_v61 = vrot.slane %v1479_v29, 1  ;;  %v1199_v29 = vmul.f32 %v1196_v31, %v3726_v35  ;;  %v1197_v40 = vmul.f32 %v1196_v31, %v3738_v43 }
 0x283   : > { %v1486_v49 = vrot.slane %v1480_v47, 1  ;;  %v1198_v47 = vmul.f32 %v1196_v31, %v3735_v42 }
 0x289   : > { %1367 = vrot.lane.b32.xlu1 %v1362_v57, %s3520_s23  ;;  %1363 = vrot.lane.b32.xlu0 %v1360_v23, %s3520_s23  ;;  %v3141_v57 = vsel %vm1186_vm1, 1.0, %v4906_v17  ;;  %vm2220_vm1 = vcmask 1014784  }
 0x28a   : > { %1365 = vrot.lane.b32.xlu2 %v1361_v54, %s3520_s23  ;;  %v3333_v23 = vpack.i.bf16 %v3141_v57, %v3140_v38 }
 0x291   : > { %1392 = vrot.lane.b32.xlu1 %v1387_v2, %s3521_s25  ;;  %1388 = vrot.lane.b32.xlu0 %v1385_v4, %s3521_s25 }
 0x292   : > { %1390 = vrot.lane.b32.xlu2 %v1386_v5, %s3521_s25 }
 0x299   : > { %1417 = vrot.lane.b32.xlu1 %v1412_v7, %s3522_s6  ;;  %1413 = vrot.lane.b32.xlu0 %v1410_v16, %s3522_s6 }
 0x29a   : > { %1415 = vrot.lane.b32.xlu2 %v1411_v41, %s3522_s6 }
 0x2a1   : > { %1442 = vrot.lane.b32.xlu1 %v1437_v22, %s3523_s9  ;;  %1438 = vrot.lane.b32.xlu0 %v1435_v56, %s3523_s9 }
 0x2a2   : > { %1440 = vrot.lane.b32.xlu2 %v1436_v39, %s3523_s9 }
 0x2a9   : > { %1467 = vrot.lane.b32.xlu1 %v1462_v21, %s3524_s11  ;;  %1463 = vrot.lane.b32.xlu0 %v1460_v20, %s3524_s11 }
 0x2aa   : > { %1465 = vrot.lane.b32.xlu2 %v1461_v60, %s3524_s11 }
 0x2ac   : > { %v4155_v62 = vpop.permute.xlu2 %1172 }
 0x2ad   : > { %4905 = vst [vmem:[#allocation39_spill] sm:$0xff] %v4155_v62 }
 0x2b1   : > { %1492 = vrot.lane.b32.xlu1 %v1487_v48, %s3525_s26  ;;  %1488 = vrot.lane.b32.xlu0 %v1485_v61, %s3525_s26 }
 0x2b2   : > { %1490 = vrot.lane.b32.xlu2 %v1486_v49, %s3525_s26 }
 0x2b4   : > { %v1214_v54 = vpop.permute.xlu2 %1213 }
 0x2b9   : > { %3334 = vrot.lane.b32.xlu0 %v3333_v23, %s3529_s10  ;;  %s3162_s10 = sld [smem:[#allocation6 + $0x2d]] }
 0x2bc   : > { %v1236_v1 = vpop.permute.xlu2 %1235 }
 0x2c3   : > { %v4162_v32 = vpop.permute.xlu1 %1174  ;;  %v4164_v58 = vpop.permute.xlu0 %1170 }
 0x2c4   : > { %4907 = vst [vmem:[#allocation40_spill] sm:$0xff] %v4162_v32  ;;  %v1258_v4 = vpop.permute.xlu2 %1257 }
 0x2c5   : > { %4908 = vst [vmem:[#allocation41_spill] sm:$0xff] %v4164_v58 }
 0x2cb   : > { %v1216_v28 = vpop.permute.xlu1 %1215  ;;  %v1212_v2 = vpop.permute.xlu0 %1211 }
 0x2cc   : > { %v1280_v46 = vpop.permute.xlu2 %1279  ;;  %v1217_v10 = vsel %vm570_vm12, %v1212_v2, %v1214_v54  ;;  %v1218_v13 = vsel %vm570_vm12, %v1214_v54, %v1216_v28  ;;  %v1224_v61 = vadd.f32 %v1216_v28, %v1199_v29 }
 0x2cd   : > { %v1222_v49 = vadd.f32 %v1217_v10, %v1197_v40  ;;  %v1223_v57 = vadd.f32 %v1218_v13, %v1198_v47 }
 0x2d3   : > { %v1238_v5 = vpop.permute.xlu1 %1237  ;;  %v1234_v11 = vpop.permute.xlu0 %1233 }
 0x2d4   : > { %v1302_v7 = vpop.permute.xlu2 %1301  ;;  %v1239_v48 = vsel %vm591_vm13, %v1234_v11, %v1236_v1  ;;  %v1240_v38 = vsel %vm591_vm13, %v1236_v1, %v1238_v5  ;;  %v1246_v2 = vadd.f32 %v1238_v5, %v1224_v61  ;;  %v1336_v11 = vstv %s3149_s7  ;;  %s3165_s7 = sld [smem:[#allocation6 + $0x42]] }
 0x2d5   : > { %v1244_v44 = vadd.f32 %v1239_v48, %v1222_v49  ;;  %v1245_v62 = vadd.f32 %v1240_v38, %v1223_v57 }
 0x2db   : > { %v1260_v27 = vpop.permute.xlu1 %1259  ;;  %v1256_v3 = vpop.permute.xlu0 %1255 }
 0x2dc   : > { %v1324_v59 = vpop.permute.xlu2 %1323  ;;  %v1261_v23 = vsel %vm612_vm14, %v1256_v3, %v1258_v4  ;;  %v1262_v58 = vsel %vm612_vm14, %v1258_v4, %v1260_v27  ;;  %v1268_v31 = vadd.f32 %v1260_v27, %v1246_v2  ;;  %v1339_v4 = vmul.f32 %v1336_v11, %v3726_v35 }
 0x2dd   : > { %v1266_v0 = vadd.f32 %v1261_v23, %v1244_v44  ;;  %v1267_v10 = vadd.f32 %v1262_v58, %v1245_v62  ;;  %v1337_v44 = vmul.f32 %v1336_v11, %v3738_v43  ;;  %v1338_v62 = vmul.f32 %v1336_v11, %v3735_v42 }
 0x2e3   : > { %v1282_v16 = vpop.permute.xlu1 %1281  ;;  %v1278_v41 = vpop.permute.xlu0 %1277 }
 0x2e4   : > { %v1366_v56 = vpop.permute.xlu2 %1365  ;;  %v1283_v32 = vsel %vm633_vm15, %v1278_v41, %v1280_v46  ;;  %v1284_v28 = vsel %vm633_vm15, %v1280_v46, %v1282_v16  ;;  %v1290_v29 = vadd.f32 %v1282_v16, %v1268_v31 }
 0x2e5   : > { %v1288_v3 = vadd.f32 %v1283_v32, %v1266_v0  ;;  %v1289_v5 = vadd.f32 %v1284_v28, %v1267_v10 }
 0x2eb   : > { %v1304_v36 = vpop.permute.xlu1 %1303  ;;  %v1300_v51 = vpop.permute.xlu0 %1299 }
 0x2ec   : > { %v4168_v12 = vpop.permute.xlu2 %1390  ;;  %v1305_v1 = vsel %vm654_vm0, %v1300_v51, %v1302_v7  ;;  %v1306_v13 = vsel %vm654_vm0, %v1302_v7, %v1304_v36  ;;  %v1312_v47 = vadd.f32 %v1304_v36, %v1290_v29  ;;  %v1345_v7 = vrot.slane %v1339_v4, 1 }
 0x2ed   : > { %v1310_v48 = vadd.f32 %v1305_v1, %v1288_v3  ;;  %v1311_v46 = vadd.f32 %v1306_v13, %v1289_v5  ;;  %v1343_v51 = vrot.slane %v1337_v44, 1 }
 0x2f3   : > { %v1326_v25 = vpop.permute.xlu1 %1325  ;;  %v1322_v22 = vpop.permute.xlu0 %1321 }
 0x2f4   : > { %v4172_v21 = vpop.permute.xlu2 %1415  ;;  %v1327_v40 = vsel %vm308_vm4, %v1322_v22, %v1324_v59  ;;  %v1328_v27 = vsel %vm308_vm4, %v1324_v59, %v1326_v25  ;;  %v1334_v41 = vadd.f32 %v1326_v25, %v1312_v47  ;;  %v1344_v22 = vrot.slane %v1338_v62, 1 }
 0x2f5   : > { %v1332_v16 = vadd.f32 %v1327_v40, %v1310_v48  ;;  %v1333_v0 = vadd.f32 %v1328_v27, %v1311_v46 }
 0x2f6   : > { %v1351_v36 = vadd.f32 %v1345_v7, %v1334_v41 }
 0x2f7   : > { %v1349_v38 = vadd.f32 %v1343_v51, %v1332_v16  ;;  %v1350_v57 = vadd.f32 %v1344_v22, %v1333_v0 }
 0x2fb   : > { %v4166_v39 = vpop.permute.xlu1 %1367  ;;  %v1364_v45 = vpop.permute.xlu0 %1363 }
 0x2fc   : > { %v1441_v54 = vpop.permute.xlu2 %1440  ;;  %v1369_v49 = vsel %vm570_vm12, %v1364_v45, %v1366_v56  ;;  %v1370_v59 = vsel %vm570_vm12, %v1366_v56, %v4166_v39  ;;  %v1376_v25 = vadd.f32 %v4166_v39, %v1351_v36  ;;  %v1572_v36 = vstv %s3158_s8  ;;  %s3168_s8 = sld [smem:[#allocation6 + $0x57]] }
 0x2fd   : > { %v1374_v2 = vadd.f32 %v1369_v49, %v1349_v38  ;;  %v1375_v28 = vadd.f32 %v1370_v59, %v1350_v57  ;;  %v1575_v59 = vmul.f32 %v1572_v36, %v3726_v35  ;;  %v1573_v38 = vmul.f32 %v1572_v36, %v3738_v43 }
 0x2fe   : > { %v1574_v57 = vmul.f32 %v1572_v36, %v3735_v42 }
 0x303   : > { %v4170_v33 = vpop.permute.xlu1 %1392  ;;  %v1389_v52 = vpop.permute.xlu0 %1388 }
 0x304   : > { %v1466_v61 = vpop.permute.xlu2 %1465  ;;  %v1394_v23 = vsel %vm591_vm13, %v1389_v52, %v4168_v12  ;;  %v1395_v31 = vsel %vm591_vm13, %v4168_v12, %v4170_v33  ;;  %v1401_v10 = vadd.f32 %v4170_v33, %v1376_v25 }
 0x305   : > { %v1399_v56 = vadd.f32 %v1394_v23, %v1374_v2  ;;  %v1400_v52 = vadd.f32 %v1395_v31, %v1375_v28  ;;  %v1594_v23 = vstv %s3159_s13  ;;  %v1616_v28 = vstv %s3160_s30  ;;  %s3169_s13 = sld [smem:[#allocation6 + $0x5e]]  ;;  %s3532_s30 = smov 3  }
 0x306   : > { %v1597_v25 = vmul.f32 %v1594_v23, %v3726_v35  ;;  %v1595_v2 = vmul.f32 %v1594_v23, %v3738_v43  ;;  %v1596_v31 = vmul.f32 %v1594_v23, %v3735_v42 }
 0x30b   : > { %v4174_v20 = vpop.permute.xlu1 %1417  ;;  %v1414_v60 = vpop.permute.xlu0 %1413 }
 0x30c   : > { %v1419_v45 = vsel %vm612_vm14, %v1414_v60, %v4172_v21  ;;  %v1420_v1 = vsel %vm612_vm14, %v4172_v21, %v4174_v20  ;;  %v1426_v29 = vadd.f32 %v4174_v20, %v1401_v10  ;;  %v1491_v40 = vpop.permute.xlu2 %1490  ;;  %v1618_v10 = vmul.f32 %v1616_v28, %v3735_v42 }
 0x30d   : > { %v1424_v3 = vadd.f32 %v1419_v45, %v1399_v56  ;;  %v1425_v13 = vadd.f32 %v1420_v1, %v1400_v52  ;;  %v1619_v45 = vmul.f32 %v1616_v28, %v3726_v35  ;;  %v1638_v56 = vstv %s3161_s5  ;;  %s3156_s5 = sld [smem:[#allocation6 + $0x3]] }
 0x30e   : > { %v1641_v1 = vmul.f32 %v1638_v56, %v3726_v35  ;;  %v1639_v52 = vmul.f32 %v1638_v56, %v3738_v43 }
 0x313   : > { %v1443_v53 = vpop.permute.xlu1 %1442  ;;  %v1439_v26 = vpop.permute.xlu0 %1438 }
 0x314   : > { %v1444_v39 = vsel %vm633_vm15, %v1439_v26, %v1441_v54  ;;  %v1445_v12 = vsel %vm633_vm15, %v1441_v54, %v1443_v53  ;;  %v1451_v4 = vadd.f32 %v1443_v53, %v1426_v29  ;;  %v1660_v29 = vstv %s3162_s10  ;;  %s3163_s10 = sld [smem:[#allocation6 + $0x34]] }
 0x315   : > { %v1449_v33 = vadd.f32 %v1444_v39, %v1424_v3  ;;  %v1450_v48 = vadd.f32 %v1445_v12, %v1425_v13  ;;  %v1640_v39 = vmul.f32 %v1638_v56, %v3735_v42  ;;  %v1663_v3 = vmul.f32 %v1660_v29, %v3726_v35 }
 0x316   : > { %v1661_v12 = vmul.f32 %v1660_v29, %v3738_v43  ;;  %v1662_v13 = vmul.f32 %v1660_v29, %v3735_v42 }
 0x31b   : > { %v1464_v58 = vpop.permute.xlu0 %1463  ;;  %v1468_v32 = vpop.permute.xlu1 %1467 }
 0x31c   : > { %v1469_v5 = vsel %vm654_vm0, %v1464_v58, %v1466_v61  ;;  %v1470_v47 = vsel %vm654_vm0, %v1466_v61, %v1468_v32  ;;  %v1476_v27 = vadd.f32 %v1468_v32, %v1451_v4  ;;  %v1550_v32 = vstv %s3157_s20  ;;  %s3166_s20 = sld [smem:[#allocation6 + $0x49]] }
 0x31d   : > { %v1474_v44 = vadd.f32 %v1469_v5, %v1449_v33  ;;  %v1475_v20 = vadd.f32 %v1470_v47, %v1450_v48  ;;  %v1553_v61 = vmul.f32 %v1550_v32, %v3726_v35  ;;  %v1551_v22 = vmul.f32 %v1550_v32, %v3738_v43 }
 0x31e   : > { %v1552_v49 = vmul.f32 %v1550_v32, %v3735_v42  ;;  %v1699_v5 = vstv %s3164_s12  ;;  %s3173_s12 = sld [smem:[#allocation6 + $0xb]] }
 0x31f   : > { %v1701_v4 = vmul.f32 %v1699_v5, %v3735_v42 }
 0x321   : > { %v1707_v48 = vrot.slane %v1701_v4, 1 }
 0x323   : > { %v1489_v11 = vpop.permute.xlu0 %1488  ;;  %v1493_v60 = vpop.permute.xlu1 %1492 }
 0x324   : > { %v1494_v21 = vsel %vm308_vm4, %v1489_v11, %v1491_v40  ;;  %v1495_v26 = vsel %vm308_vm4, %v1491_v40, %v1493_v60  ;;  %v1501_v54 = vadd.f32 %v1493_v60, %v1476_v27  ;;  %v1617_v11 = vmul.f32 %v1616_v28, %v3738_v43 }
 0x325   : > { %v1499_v62 = vadd.f32 %v1494_v21, %v1474_v44  ;;  %v1500_v16 = vadd.f32 %v1495_v26, %v1475_v20  ;;  %v1702_v60 = vmul.f32 %v1699_v5, %v3726_v35  ;;  %v1700_v40 = vmul.f32 %v1699_v5, %v3738_v43 }
 0x326   : > { %v1724_v21 = vstv %s3165_s7  ;;  %s3533_s7 = smov 125  }
 0x327   : > { %v1708_v33 = vrot.slane %v1702_v60, 1  ;;  %v1706_v47 = vrot.slane %v1700_v40, 1  ;;  %v1727_v27 = vmul.f32 %v1724_v21, %v3726_v35  ;;  %v1725_v44 = vmul.f32 %v1724_v21, %v3738_v43 }
 0x328   : > { %v1726_v26 = vmul.f32 %v1724_v21, %v3735_v42 }
 0x329   : > { %v1733_v20 = vrot.slane %v1727_v27, 1 }
 0x32b   : > { %v3335_v46 = vpop.permute.xlu0 %3334 }
 0x32c   : > { %v3337_v41 = vunpack.i.h.bf16 %v3335_v46  ;;  %v3336_v58 = vunpack.i.l.bf16 %v3335_v46  ;;  %v1731_v46 = vrot.slane %v1725_v44, 1 }
 0x32e   : > { %v1514_v0 = vmul.f32 %v3337_v41, %v1501_v54  ;;  %v1512_v53 = vmul.f32 %v3336_v58, %v1499_v62  ;;  %v1508_v7 = vsel %vm426_vm10, %v3336_v58, %v3337_v41  ;;  %v1732_v54 = vrot.slane %v1726_v26, 1 }
 0x32f   : > { %v1513_v51 = vmul.f32 %v1508_v7, %v1500_v16  ;;  %v1749_v62 = vstv %s3166_s20  ;;  %vm1854_vm10 = vcmask 23552   ;;  %s3174_s20 = sld [smem:[#allocation6 + $0x12]] }
 0x330   : > { %1522 = vrot.lane.b32.xlu0 %v1514_v0, %s3530_s29  ;;  %1518 = vrot.lane.b32.xlu2 %v1512_v53, %s3530_s29  ;;  %v1752_v41 = vmul.f32 %v1749_v62, %v3726_v35  ;;  %v1750_v58 = vmul.f32 %v1749_v62, %v3738_v43  ;;  %v1751_v16 = vmul.f32 %v1749_v62, %v3735_v42 }
 0x331   : > { %1520 = vrot.lane.b32.xlu1 %v1513_v51, %s3530_s29  ;;  %s3167_s29 = sld [smem:[#allocation6 + $0x50]] }
 0x332   : > { %v1758_v0 = vrot.slane %v1752_v41, 1  ;;  %v1756_v53 = vrot.slane %v1750_v58, 1  ;;  %v1757_v7 = vrot.slane %v1751_v16, 1 }
 0x337   : > { %v1774_v51 = vstv %s3167_s29  ;;  %s3175_s29 = sld [smem:[#allocation6 + $0x19]] }
 0x338   : > { %1561 = vrot.lane.b32.xlu0 %v1553_v61, %s3520_s23  ;;  %1557 = vrot.lane.b32.xlu2 %v1551_v22, %s3520_s23  ;;  %v1777_v32 = vmul.f32 %v1774_v51, %v3726_v35  ;;  %v1775_v61 = vmul.f32 %v1774_v51, %v3738_v43  ;;  %v1776_v22 = vmul.f32 %v1774_v51, %v3735_v42 }
 0x339   : > { %1559 = vrot.lane.b32.xlu1 %v1552_v49, %s3520_s23 }
 0x33a   : > { %v1783_v49 = vrot.slane %v1777_v32, 1  ;;  %v1781_v36 = vrot.slane %v1775_v61, 1 }
 0x340   : > { %1583 = vrot.lane.b32.xlu0 %v1575_v59, %s3521_s25  ;;  %1579 = vrot.lane.b32.xlu2 %v1573_v38, %s3521_s25  ;;  %v1782_v59 = vrot.slane %v1776_v22, 1  ;;  %v1799_v38 = vstv %s3168_s8  ;;  %s3176_s8 = sld [smem:[#allocation6 + $0x20]] }
 0x341   : > { %1581 = vrot.lane.b32.xlu1 %v1574_v57, %s3521_s25  ;;  %v1802_v57 = vmul.f32 %v1799_v38, %v3726_v35  ;;  %v1800_v23 = vmul.f32 %v1799_v38, %v3738_v43 }
 0x348   : > { %1605 = vrot.lane.b32.xlu0 %v1597_v25, %s3522_s6  ;;  %1601 = vrot.lane.b32.xlu2 %v1595_v2, %s3522_s6  ;;  %v1801_v25 = vmul.f32 %v1799_v38, %v3735_v42  ;;  %v1808_v2 = vrot.slane %v1802_v57, 1 }
 0x349   : > { %1603 = vrot.lane.b32.xlu1 %v1596_v31, %s3522_s6  ;;  %v1806_v31 = vrot.slane %v1800_v23, 1 }
 0x34a   : > { %v1807_v28 = vrot.slane %v1801_v25, 1 }
 0x350   : > { %1627 = vrot.lane.b32.xlu0 %v1619_v45, %s3523_s9  ;;  %1623 = vrot.lane.b32.xlu2 %v1617_v11, %s3523_s9  ;;  %v1824_v45 = vstv %s3169_s13  ;;  %s3177_s13 = sld [smem:[#allocation6 + $0x27]] }
 0x351   : > { %1625 = vrot.lane.b32.xlu1 %v1618_v10, %s3523_s9  ;;  %v1827_v10 = vmul.f32 %v1824_v45, %v3726_v35  ;;  %v1825_v56 = vmul.f32 %v1824_v45, %v3738_v43 }
 0x358   : > { %1649 = vrot.lane.b32.xlu0 %v1641_v1, %s3524_s11  ;;  %1645 = vrot.lane.b32.xlu2 %v1639_v52, %s3524_s11  ;;  %v1826_v1 = vmul.f32 %v1824_v45, %v3735_v42  ;;  %v1833_v52 = vrot.slane %v1827_v10, 1 }
 0x359   : > { %1647 = vrot.lane.b32.xlu1 %v1640_v39, %s3524_s11  ;;  %v1831_v39 = vrot.slane %v1825_v56, 1 }
 0x35a   : > { %v1832_v29 = vrot.slane %v1826_v1, 1 }
 0x360   : > { %1671 = vrot.lane.b32.xlu0 %v1663_v3, %s3525_s26  ;;  %1667 = vrot.lane.b32.xlu2 %v1661_v12, %s3525_s26  ;;  %v3531_v12 = vmov 1.0|1.0  }
 0x361   : > { %1669 = vrot.lane.b32.xlu1 %v1662_v13, %s3525_s26 }
 0x368   : > { %1713 = vrot.lane.b32.xlu0 %v1708_v33, %s3520_s23  ;;  %1709 = vrot.lane.b32.xlu2 %v1706_v47, %s3520_s23 }
 0x369   : > { %1711 = vrot.lane.b32.xlu1 %v1707_v48, %s3520_s23 }
 0x370   : > { %1738 = vrot.lane.b32.xlu0 %v1733_v20, %s3521_s25  ;;  %1734 = vrot.lane.b32.xlu2 %v1731_v46, %s3521_s25 }
 0x371   : > { %1736 = vrot.lane.b32.xlu1 %v1732_v54, %s3521_s25 }
 0x378   : > { %1763 = vrot.lane.b32.xlu0 %v1758_v0, %s3522_s6  ;;  %1759 = vrot.lane.b32.xlu2 %v1756_v53, %s3522_s6 }
 0x379   : > { %1761 = vrot.lane.b32.xlu1 %v1757_v7, %s3522_s6 }
 0x380   : > { %1788 = vrot.lane.b32.xlu0 %v1783_v49, %s3523_s9  ;;  %1784 = vrot.lane.b32.xlu2 %v1781_v36, %s3523_s9  ;;  %v1542_v36 = vstv %s3156_s5  ;;  %s3180_s5 = sld [smem:[#allocation6 + $0x3c]] }
 0x381   : > { %1786 = vrot.lane.b32.xlu1 %v1782_v59, %s3523_s9  ;;  %v1545_v59 = vmul.f32 %v1542_v36, %v3726_v35  ;;  %v1543_v25 = vmul.f32 %v1542_v36, %v3738_v43 }
 0x388   : > { %1813 = vrot.lane.b32.xlu0 %v1808_v2, %s3524_s11  ;;  %1809 = vrot.lane.b32.xlu2 %v1806_v31, %s3524_s11  ;;  %v1544_v2 = vmul.f32 %v1542_v36, %v3735_v42 }
 0x389   : > { %1811 = vrot.lane.b32.xlu1 %v1807_v28, %s3524_s11 }
 0x38a   : > { %v4283_v11 = vpop.permute.xlu2 %1518 }
 0x38b   : > { %4909 = vst [vmem:[#allocation42_spill] sm:$0xff] %v4283_v11 }
 0x390   : > { %1838 = vrot.lane.b32.xlu0 %v1833_v52, %s3525_s26  ;;  %1834 = vrot.lane.b32.xlu2 %v1831_v39, %s3525_s26 }
 0x391   : > { %1836 = vrot.lane.b32.xlu1 %v1832_v29, %s3525_s26 }
 0x392   : > { %v1558_v3 = vpop.permute.xlu2 %1557 }
 0x398   : > { %3339 = vrot.lane.b32.xlu2 %v3531_v12, %s3532_s30  ;;  %s3178_s30 = sld [smem:[#allocation6 + $0x2e]] }
 0x39a   : > { %v1580_v13 = vpop.permute.xlu2 %1579 }
 0x3a2   : > { %v4291_v5 = vpop.permute.xlu0 %1522  ;;  %v1602_v60 = vpop.permute.xlu2 %1601 }
 0x3a3   : > { %4910 = vst [vmem:[#allocation43_spill] sm:$0xff] %v4291_v5  ;;  %v4293_v40 = vpop.permute.xlu1 %1520 }
 0x3aa   : > { %v1562_v4 = vpop.permute.xlu0 %1561  ;;  %v1624_v33 = vpop.permute.xlu2 %1623 }
 0x3ab   : > { %v1560_v47 = vpop.permute.xlu1 %1559  ;;  %v1570_v23 = vadd.f32 %v1562_v4, %v1545_v59 }
 0x3ac   : > { %v1563_v38 = vsel %vm570_vm12, %v1558_v3, %v1560_v47  ;;  %v1564_v57 = vsel %vm570_vm12, %v1560_v47, %v1562_v4 }
 0x3ad   : > { %v1568_v10 = vadd.f32 %v1563_v38, %v1543_v25  ;;  %v1569_v56 = vadd.f32 %v1564_v57, %v1544_v2 }
 0x3b2   : > { %v1584_v48 = vpop.permute.xlu0 %1583  ;;  %v1646_v21 = vpop.permute.xlu2 %1645 }
 0x3b3   : > { %v1582_v27 = vpop.permute.xlu1 %1581  ;;  %v1592_v1 = vadd.f32 %v1584_v48, %v1570_v23 }
 0x3b4   : > { %v1585_v31 = vsel %vm591_vm13, %v1580_v13, %v1582_v27  ;;  %v1586_v28 = vsel %vm591_vm13, %v1582_v27, %v1584_v48  ;;  %v1682_v13 = vstv %s3163_s10  ;;  %s3181_s10 = sld [smem:[#allocation6 + $0x43]] }
 0x3b5   : > { %v1590_v12 = vadd.f32 %v1585_v31, %v1568_v10  ;;  %v1591_v4 = vadd.f32 %v1586_v28, %v1569_v56 }
 0x3ba   : > { %v1606_v44 = vpop.permute.xlu0 %1605  ;;  %v1668_v26 = vpop.permute.xlu2 %1667 }
 0x3bb   : > { %v1604_v20 = vpop.permute.xlu1 %1603  ;;  %v1614_v47 = vadd.f32 %v1606_v44, %v1592_v1 }
 0x3bc   : > { %v1607_v29 = vsel %vm612_vm14, %v1602_v60, %v1604_v20  ;;  %v1608_v3 = vsel %vm612_vm14, %v1604_v20, %v1606_v44  ;;  %v1685_v20 = vmul.f32 %v1682_v13, %v3726_v35 }
 0x3bd   : > { %v1612_v5 = vadd.f32 %v1607_v29, %v1590_v12  ;;  %v1613_v27 = vadd.f32 %v1608_v3, %v1591_v4 }
 0x3c2   : > { %v1628_v46 = vpop.permute.xlu0 %1627  ;;  %v4295_v54 = vpop.permute.xlu2 %1709 }
 0x3c3   : > { %v1626_v62 = vpop.permute.xlu1 %1625  ;;  %v1636_v11 = vadd.f32 %v1628_v46, %v1614_v47 }
 0x3c4   : > { %v1629_v59 = vsel %vm633_vm15, %v1624_v33, %v1626_v62  ;;  %v1630_v36 = vsel %vm633_vm15, %v1626_v62, %v1628_v46  ;;  %v1683_v33 = vmul.f32 %v1682_v13, %v3738_v43  ;;  %v1684_v46 = vmul.f32 %v1682_v13, %v3735_v42 }
 0x3c5   : > { %v1634_v57 = vadd.f32 %v1629_v59, %v1612_v5  ;;  %v1635_v23 = vadd.f32 %v1630_v36, %v1613_v27  ;;  %v1691_v5 = vrot.slane %v1685_v20, 1 }
 0x3c6   : > { %v1690_v1 = vrot.slane %v1684_v46, 1 }
 0x3ca   : > { %v1650_v41 = vpop.permute.xlu0 %1649  ;;  %v4297_v16 = vpop.permute.xlu2 %1734 }
 0x3cb   : > { %v1648_v58 = vpop.permute.xlu1 %1647  ;;  %v1658_v60 = vadd.f32 %v1650_v41, %v1636_v11 }
 0x3cc   : > { %v1651_v38 = vsel %vm654_vm0, %v1646_v21, %v1648_v58  ;;  %v1652_v48 = vsel %vm654_vm0, %v1648_v58, %v1650_v41  ;;  %v1689_v41 = vrot.slane %v1683_v33, 1 }
 0x3cd   : > { %v1656_v2 = vadd.f32 %v1651_v38, %v1634_v57  ;;  %v1657_v31 = vadd.f32 %v1652_v48, %v1635_v23 }
 0x3d2   : > { %v1672_v0 = vpop.permute.xlu0 %1671  ;;  %v4299_v7 = vpop.permute.xlu2 %1759 }
 0x3d3   : > { %v1670_v53 = vpop.permute.xlu1 %1669  ;;  %v1680_v28 = vadd.f32 %v1672_v0, %v1658_v60 }
 0x3d4   : > { %v1673_v25 = vsel %vm308_vm4, %v1668_v26, %v1670_v53  ;;  %v1674_v44 = vsel %vm308_vm4, %v1670_v53, %v1672_v0 }
 0x3d5   : > { %v1678_v10 = vadd.f32 %v1673_v25, %v1656_v2  ;;  %v1679_v58 = vadd.f32 %v1674_v44, %v1657_v31  ;;  %v1697_v11 = vadd.f32 %v1691_v5, %v1680_v28 }
 0x3d7   : > { %v1695_v3 = vadd.f32 %v1689_v41, %v1678_v10  ;;  %v1696_v12 = vadd.f32 %v1690_v1, %v1679_v58  ;;  %v1899_v1 = vstv %s3173_s12  ;;  %s3182_s12 = sld [smem:[#allocation6 + $0x4a]] }
 0x3da   : > { %v1714_v51 = vpop.permute.xlu0 %1713  ;;  %v4301_v61 = vpop.permute.xlu2 %1784 }
 0x3db   : > { %v1712_v32 = vpop.permute.xlu1 %1711  ;;  %v1722_v29 = vadd.f32 %v1714_v51, %v1697_v11 }
 0x3dc   : > { %v1715_v26 = vsel %vm570_vm12, %v4295_v54, %v1712_v32  ;;  %v1716_v53 = vsel %vm570_vm12, %v1712_v32, %v1714_v51 }
 0x3dd   : > { %v1720_v59 = vadd.f32 %v1715_v26, %v1695_v3  ;;  %v1721_v36 = vadd.f32 %v1716_v53, %v1696_v12  ;;  %v1902_v26 = vmul.f32 %v1899_v1, %v3726_v35  ;;  %v1901_v53 = vmul.f32 %v1899_v1, %v3735_v42 }
 0x3e2   : > { %v1739_v22 = vpop.permute.xlu0 %1738  ;;  %v1810_v52 = vpop.permute.xlu2 %1809 }
 0x3e3   : > { %v1737_v49 = vpop.permute.xlu1 %1736  ;;  %v1747_v13 = vadd.f32 %v1739_v22, %v1722_v29  ;;  %v1921_v29 = vstv %s3174_s20  ;;  %s3184_s20 = sld [smem:[#allocation6 + $0x58]] }
 0x3e4   : > { %v1740_v0 = vsel %vm591_vm13, %v4297_v16, %v1737_v49  ;;  %v1741_v4 = vsel %vm591_vm13, %v1737_v49, %v1739_v22  ;;  %v1924_v3 = vmul.f32 %v1921_v29, %v3726_v35  ;;  %v1923_v12 = vmul.f32 %v1921_v29, %v3735_v42 }
 0x3e5   : > { %v1745_v48 = vadd.f32 %v1740_v0, %v1720_v59  ;;  %v1746_v32 = vadd.f32 %v1741_v4, %v1721_v36  ;;  %v1922_v0 = vmul.f32 %v1921_v29, %v3738_v43  ;;  %v1943_v4 = vstv %s3175_s29  ;;  %s3185_s29 = sld [smem:[#allocation6 + $0x5f]] }
 0x3e6   : > { %v1945_v59 = vmul.f32 %v1943_v4, %v3735_v42  ;;  %v1944_v36 = vmul.f32 %v1943_v4, %v3738_v43 }
 0x3ea   : > { %v1764_v45 = vpop.permute.xlu0 %1763  ;;  %v1835_v56 = vpop.permute.xlu2 %1834 }
 0x3eb   : > { %v1762_v39 = vpop.permute.xlu1 %1761  ;;  %v1772_v51 = vadd.f32 %v1764_v45, %v1747_v13  ;;  %v1965_v13 = vstv %s3176_s8  ;;  %s3534_s8 = smov 4  }
 0x3ec   : > { %v1765_v38 = vsel %vm612_vm14, %v4299_v7, %v1762_v39  ;;  %v1766_v54 = vsel %vm612_vm14, %v1762_v39, %v1764_v45 }
 0x3ed   : > { %v1770_v49 = vadd.f32 %v1765_v38, %v1745_v48  ;;  %v1771_v60 = vadd.f32 %v1766_v54, %v1746_v32  ;;  %v1967_v38 = vmul.f32 %v1965_v13, %v3735_v42  ;;  %v1966_v54 = vmul.f32 %v1965_v13, %v3738_v43 }
 0x3ee   : > { %v1987_v48 = vstv %s3177_s13  ;;  %s3172_s13 = sld [smem:[#allocation6 + $0x4]] }
 0x3ef   : > { %v1990_v32 = vmul.f32 %v1987_v48, %v3726_v35 }
 0x3f2   : > { %v1789_v62 = vpop.permute.xlu0 %1788  ;;  %v3340_v57 = vpop.permute.xlu2 %3339 }
 0x3f3   : > { %v1787_v21 = vpop.permute.xlu1 %1786  ;;  %v1797_v20 = vadd.f32 %v1789_v62, %v1772_v51  ;;  %v3342_v44 = vunpack.i.h.bf16 %v3340_v57  ;;  %v3341_v7 = vunpack.i.l.bf16 %v3340_v57  ;;  %v1989_v51 = vmul.f32 %v1987_v48, %v3735_v42 }
 0x3f4   : > { %v1790_v23 = vsel %vm633_vm15, %v4301_v61, %v1787_v21  ;;  %v1791_v16 = vsel %vm633_vm15, %v1787_v21, %v1789_v62  ;;  %v1988_v57 = vmul.f32 %v1987_v48, %v3738_v43 }
 0x3f5   : > { %v1795_v33 = vadd.f32 %v1790_v23, %v1770_v49  ;;  %v1796_v39 = vadd.f32 %v1791_v16, %v1771_v60  ;;  %v1855_v21 = vsel %vm1854_vm10, %v3341_v7, %v3342_v44  ;;  %v2009_v23 = vstv %s3178_s30  ;;  %s3179_s30 = sld [smem:[#allocation6 + $0x35]] }
 0x3f6   : > { %v2012_v16 = vmul.f32 %v2009_v23, %v3726_v35  ;;  %v2048_v49 = vstv %s3180_s5  ;;  %v2011_v60 = vmul.f32 %v2009_v23, %v3735_v42  ;;  %s3189_s5 = sld [smem:[#allocation6 + $0xc]] }
 0x3fa   : > { %v1814_v47 = vpop.permute.xlu0 %1813 }
 0x3fb   : > { %v1812_v27 = vpop.permute.xlu1 %1811  ;;  %v1822_v2 = vadd.f32 %v1814_v47, %v1797_v20  ;;  %v2010_v20 = vmul.f32 %v2009_v23, %v3738_v43 }
 0x3fc   : > { %v1815_v22 = vsel %vm654_vm0, %v1810_v52, %v1812_v27  ;;  %v1816_v25 = vsel %vm654_vm0, %v1812_v27, %v1814_v47  ;;  %v1946_v47 = vmul.f32 %v1943_v4, %v3726_v35  ;;  %v1968_v27 = vmul.f32 %v1965_v13, %v3726_v35 }
 0x3fd   : > { %v1820_v31 = vadd.f32 %v1815_v22, %v1795_v33  ;;  %v1821_v28 = vadd.f32 %v1816_v25, %v1796_v39  ;;  %v2051_v22 = vmul.f32 %v2048_v49, %v3726_v35  ;;  %v2050_v25 = vmul.f32 %v2048_v49, %v3735_v42 }
 0x3fe   : > { %v2073_v33 = vstv %s3181_s10  ;;  %v2173_v13 = vstv %s3185_s29  ;;  %s3535_s10 = smov 124   ;;  %s3193_s29 = sld [smem:[#allocation6 + $0x28]] }
 0x3ff   : > { %v2056_v39 = vrot.slane %v2050_v25, 1  ;;  %v2175_v48 = vmul.f32 %v2173_v13, %v3735_v42 }
 0x402   : > { %v1839_v45 = vpop.permute.xlu0 %1838 }
 0x403   : > { %v1847_v61 = vadd.f32 %v1839_v45, %v1822_v2  ;;  %v1837_v46 = vpop.permute.xlu1 %1836 }
 0x404   : > { %v1840_v10 = vsel %vm308_vm4, %v1835_v56, %v1837_v46  ;;  %v1841_v62 = vsel %vm308_vm4, %v1837_v46, %v1839_v45  ;;  %v1900_v56 = vmul.f32 %v1899_v1, %v3738_v43  ;;  %v2076_v45 = vmul.f32 %v2073_v33, %v3726_v35 }
 0x405   : > { %v1861_v52 = vmul.f32 %v3342_v44, %v1847_v61  ;;  %v1845_v58 = vadd.f32 %v1840_v10, %v1820_v31  ;;  %v1846_v5 = vadd.f32 %v1841_v62, %v1821_v28  ;;  %v2049_v44 = vmul.f32 %v2048_v49, %v3738_v43 }
 0x406   : > { %v2075_v31 = vmul.f32 %v2073_v33, %v3735_v42  ;;  %v2074_v28 = vmul.f32 %v2073_v33, %v3738_v43  ;;  %v2082_v61 = vrot.slane %v2076_v45, 1  ;;  %v2098_v46 = vstv %s3182_s12  ;;  %s3190_s12 = sld [smem:[#allocation6 + $0x13]] }
 0x407   : > { %v1859_v11 = vmul.f32 %v3341_v7, %v1845_v58  ;;  %v1860_v41 = vmul.f32 %v1855_v21, %v1846_v5  ;;  %1869 = vrot.lane.b32.xlu2 %v1861_v52, %s3533_s7  ;;  %v2057_v7 = vrot.slane %v2051_v22, 1  ;;  %v2055_v2 = vrot.slane %v2049_v44, 1 }
 0x408   : > { %v2081_v21 = vrot.slane %v2075_v31, 1  ;;  %v2080_v10 = vrot.slane %v2074_v28, 1  ;;  %v2101_v62 = vmul.f32 %v2098_v46, %v3726_v35  ;;  %v2100_v52 = vmul.f32 %v2098_v46, %v3735_v42 }
 0x409   : > { %1867 = vrot.lane.b32.xlu0 %v1860_v41, %s3533_s7  ;;  %1865 = vrot.lane.b32.xlu1 %v1859_v11, %s3533_s7  ;;  %s3183_s7 = sld [smem:[#allocation6 + $0x51]]  ;;  %v2099_v58 = vmul.f32 %v2098_v46, %v3738_v43 }
 0x40a   : > { %v2107_v5 = vrot.slane %v2101_v62, 1  ;;  %v2106_v41 = vrot.slane %v2100_v52, 1 }
 0x40b   : > { %v2105_v1 = vrot.slane %v2099_v58, 1 }
 0x40f   : > { %1910 = vrot.lane.b32.xlu2 %v1902_v26, %s3520_s23  ;;  %v2123_v11 = vstv %s3183_s7  ;;  %s3191_s7 = sld [smem:[#allocation6 + $0x1a]] }
 0x410   : > { %v2126_v26 = vmul.f32 %v2123_v11, %v3726_v35 }
 0x411   : > { %1908 = vrot.lane.b32.xlu0 %v1901_v53, %s3520_s23  ;;  %1906 = vrot.lane.b32.xlu1 %v1900_v56, %s3520_s23  ;;  %v2125_v53 = vmul.f32 %v2123_v11, %v3735_v42  ;;  %v2124_v56 = vmul.f32 %v2123_v11, %v3738_v43 }
 0x412   : > { %v2132_v29 = vrot.slane %v2126_v26, 1 }
 0x417   : > { %1932 = vrot.lane.b32.xlu2 %v1924_v3, %s3521_s25  ;;  %v2148_v3 = vstv %s3184_s20  ;;  %s3192_s20 = sld [smem:[#allocation6 + $0x21]] }
 0x418   : > { %v2151_v4 = vmul.f32 %v2148_v3, %v3726_v35 }
 0x419   : > { %1930 = vrot.lane.b32.xlu0 %v1923_v12, %s3521_s25  ;;  %1928 = vrot.lane.b32.xlu1 %v1922_v0, %s3521_s25  ;;  %v2131_v12 = vrot.slane %v2125_v53, 1  ;;  %v2130_v0 = vrot.slane %v2124_v56, 1 }
 0x41f   : > { %1954 = vrot.lane.b32.xlu2 %v1946_v47, %s3522_s6  ;;  %v2150_v47 = vmul.f32 %v2148_v3, %v3735_v42 }
 0x421   : > { %1952 = vrot.lane.b32.xlu0 %v1945_v59, %s3522_s6  ;;  %1950 = vrot.lane.b32.xlu1 %v1944_v36, %s3522_s6  ;;  %v2149_v59 = vmul.f32 %v2148_v3, %v3738_v43  ;;  %v2157_v36 = vrot.slane %v2151_v4, 1 }
 0x427   : > { %1976 = vrot.lane.b32.xlu2 %v1968_v27, %s3523_s9  ;;  %v2156_v27 = vrot.slane %v2150_v47, 1 }
 0x429   : > { %1974 = vrot.lane.b32.xlu0 %v1967_v38, %s3523_s9  ;;  %1972 = vrot.lane.b32.xlu1 %v1966_v54, %s3523_s9  ;;  %v2155_v38 = vrot.slane %v2149_v59, 1  ;;  %v2176_v54 = vmul.f32 %v2173_v13, %v3726_v35 }
 0x42b   : > { %v2182_v23 = vrot.slane %v2176_v54, 1 }
 0x42f   : > { %1998 = vrot.lane.b32.xlu2 %v1990_v32, %s3524_s11  ;;  %v2174_v32 = vmul.f32 %v2173_v13, %v3738_v43 }
 0x431   : > { %1996 = vrot.lane.b32.xlu0 %v1989_v51, %s3524_s11  ;;  %1994 = vrot.lane.b32.xlu1 %v1988_v57, %s3524_s11  ;;  %v1878_v51 = vadd.s32 1, %v3986_v14  ;;  %v1879_v57 = vadd.s32 1, %v3988_v24  ;;  %v2180_v49 = vrot.slane %v2174_v32, 1 }
 0x433   : > { %vm1882_vm2 = vcmp.lt.s32.totalorder %v1878_v51, 16  ;;  %vm1883_vm5 = vcmp.lt.s32.totalorder %v1879_v57, 16 }
 0x434   : > { %v3171_v22 = vsel %vm1883_vm5, 1.0, %v4906_v17 }
 0x437   : > { %2020 = vrot.lane.b32.xlu2 %v2012_v16, %s3525_s26  ;;  %v2181_v16 = vrot.slane %v2175_v48, 1 }
 0x439   : > { %2018 = vrot.lane.b32.xlu0 %v2011_v60, %s3525_s26  ;;  %2016 = vrot.lane.b32.xlu1 %v2010_v20, %s3525_s26  ;;  %v3170_v20 = vsel %vm1882_vm2, 1.0, %v4906_v17 }
 0x43a   : > { %v3343_v25 = vpack.i.bf16 %v3171_v22, %v3170_v20 }
 0x43f   : > { %2062 = vrot.lane.b32.xlu2 %v2057_v7, %s3520_s23 }
 0x441   : > { %2060 = vrot.lane.b32.xlu0 %v2056_v39, %s3520_s23  ;;  %2058 = vrot.lane.b32.xlu1 %v2055_v2, %s3520_s23 }
 0x447   : > { %2087 = vrot.lane.b32.xlu2 %v2082_v61, %s3521_s25 }
 0x449   : > { %2085 = vrot.lane.b32.xlu0 %v2081_v21, %s3521_s25  ;;  %2083 = vrot.lane.b32.xlu1 %v2080_v10, %s3521_s25  ;;  %v1891_v21 = vstv %s3172_s13  ;;  %s3196_s13 = sld [smem:[#allocation6 + $0x3d]] }
 0x44a   : > { %v1892_v62 = vmul.f32 %v1891_v21, %v3738_v43 }
 0x44f   : > { %2112 = vrot.lane.b32.xlu2 %v2107_v5, %s3522_s6 }
 0x451   : > { %2110 = vrot.lane.b32.xlu0 %v2106_v41, %s3522_s6  ;;  %2108 = vrot.lane.b32.xlu1 %v2105_v1, %s3522_s6 }
 0x457   : > { %2137 = vrot.lane.b32.xlu2 %v2132_v29, %s3523_s9 }
 0x459   : > { %2135 = vrot.lane.b32.xlu0 %v2131_v12, %s3523_s9  ;;  %2133 = vrot.lane.b32.xlu1 %v2130_v0, %s3523_s9 }
 0x45f   : > { %2162 = vrot.lane.b32.xlu2 %v2157_v36, %s3524_s11 }
 0x461   : > { %2160 = vrot.lane.b32.xlu0 %v2156_v27, %s3524_s11  ;;  %2158 = vrot.lane.b32.xlu1 %v2155_v38, %s3524_s11  ;;  %v1870_v60 = vpop.permute.xlu2 %1869 }
 0x467   : > { %2187 = vrot.lane.b32.xlu2 %v2182_v23, %s3525_s26  ;;  %v1894_v23 = vmul.f32 %v1891_v21, %v3726_v35 }
 0x469   : > { %2185 = vrot.lane.b32.xlu0 %v2181_v16, %s3525_s26  ;;  %2183 = vrot.lane.b32.xlu1 %v2180_v49, %s3525_s26  ;;  %v1911_v44 = vpop.permute.xlu2 %1910  ;;  %v1893_v16 = vmul.f32 %v1891_v21, %v3735_v42 }
 0x46a   : > { %v1919_v49 = vadd.f32 %v1911_v44, %v1894_v23 }
 0x471   : > { %3344 = vrot.lane.b32.xlu1 %v3343_v25, %s3534_s8  ;;  %v1933_v39 = vpop.permute.xlu2 %1932  ;;  %s3194_s8 = sld [smem:[#allocation6 + $0x2f]] }
 0x479   : > { %v1955_v10 = vpop.permute.xlu2 %1954 }
 0x47b   : > { %v1868_v7 = vpop.permute.xlu0 %1867  ;;  %v1866_v33 = vpop.permute.xlu1 %1865 }
 0x47c   : > { %v4413_v2 = vsel %vm1871_vm6, %v1868_v7, %v1870_v60  ;;  %v4415_v45 = vsel %vm1871_vm6, %v1866_v33, %v1868_v7  ;;  %v1941_v33 = vadd.f32 %v1933_v39, %v1919_v49 }
 0x481   : > { %v1977_v1 = vpop.permute.xlu2 %1976 }
 0x483   : > { %v1909_v31 = vpop.permute.xlu0 %1908  ;;  %v1907_v28 = vpop.permute.xlu1 %1906 }
 0x484   : > { %v1913_v61 = vsel %vm570_vm12, %v1909_v31, %v1911_v44  ;;  %v1912_v46 = vsel %vm570_vm12, %v1907_v28, %v1909_v31 }
 0x485   : > { %v1917_v52 = vadd.f32 %v1912_v46, %v1892_v62  ;;  %v1918_v20 = vadd.f32 %v1913_v61, %v1893_v16 }
 0x489   : > { %v1999_v56 = vpop.permute.xlu2 %1998 }
 0x48b   : > { %v1931_v58 = vpop.permute.xlu0 %1930  ;;  %v1929_v5 = vpop.permute.xlu1 %1928 }
 0x48c   : > { %v1934_v11 = vsel %vm591_vm13, %v1929_v5, %v1931_v58  ;;  %v1935_v60 = vsel %vm591_vm13, %v1931_v58, %v1933_v39 }
 0x48d   : > { %v1939_v41 = vadd.f32 %v1934_v11, %v1917_v52  ;;  %v1940_v28 = vadd.f32 %v1935_v60, %v1918_v20  ;;  %v1963_v52 = vadd.f32 %v1955_v10, %v1941_v33  ;;  %v2031_v11 = vstv %s3179_s30  ;;  %s3197_s30 = sld [smem:[#allocation6 + $0x44]] }
 0x48e   : > { %v2034_v39 = vmul.f32 %v2031_v11, %v3726_v35 }
 0x48f   : > { %v1985_v61 = vadd.f32 %v1977_v1, %v1963_v52 }
 0x491   : > { %v2021_v4 = vpop.permute.xlu2 %2020  ;;  %v2007_v49 = vadd.f32 %v1999_v56, %v1985_v61 }
 0x493   : > { %v1953_v26 = vpop.permute.xlu0 %1952  ;;  %v1951_v53 = vpop.permute.xlu1 %1950 }
 0x494   : > { %v1956_v22 = vsel %vm612_vm14, %v1951_v53, %v1953_v26  ;;  %v1957_v31 = vsel %vm612_vm14, %v1953_v26, %v1955_v10 }
 0x495   : > { %v1961_v5 = vadd.f32 %v1956_v22, %v1939_v41  ;;  %v1962_v44 = vadd.f32 %v1957_v31, %v1940_v28  ;;  %v2032_v41 = vmul.f32 %v2031_v11, %v3738_v43 }
 0x497   : > { %v2038_v31 = vrot.slane %v2032_v41, 1 }
 0x499   : > { %v2063_v36 = vpop.permute.xlu2 %2062 }
 0x49b   : > { %v1975_v29 = vpop.permute.xlu0 %1974  ;;  %v1973_v3 = vpop.permute.xlu1 %1972 }
 0x49c   : > { %v1978_v46 = vsel %vm633_vm15, %v1973_v3, %v1975_v29  ;;  %v1979_v21 = vsel %vm633_vm15, %v1975_v29, %v1977_v1  ;;  %v2033_v29 = vmul.f32 %v2031_v11, %v3735_v42 }
 0x49d   : > { %v1983_v23 = vadd.f32 %v1978_v46, %v1961_v5  ;;  %v1984_v16 = vadd.f32 %v1979_v21, %v1962_v44 }
 0x49e   : > { %v2039_v28 = vrot.slane %v2033_v29, 1 }
 0x4a1   : > { %v2088_v38 = vpop.permute.xlu2 %2087 }
 0x4a3   : > { %v1997_v12 = vpop.permute.xlu0 %1996  ;;  %v1995_v0 = vpop.permute.xlu1 %1994 }
 0x4a4   : > { %v2000_v58 = vsel %vm654_vm0, %v1995_v0, %v1997_v12  ;;  %v2001_v53 = vsel %vm654_vm0, %v1997_v12, %v1999_v56  ;;  %v2029_v0 = vadd.f32 %v2021_v4, %v2007_v49  ;;  %v2040_v12 = vrot.slane %v2034_v39, 1 }
 0x4a5   : > { %v2005_v3 = vadd.f32 %v2000_v58, %v1983_v23  ;;  %v2006_v60 = vadd.f32 %v2001_v53, %v1984_v16 }
 0x4a6   : > { %v2046_v56 = vadd.f32 %v2040_v12, %v2029_v0 }
 0x4a8   : > { %v2071_v44 = vadd.f32 %v2063_v36, %v2046_v56 }
 0x4a9   : > { %v2113_v32 = vpop.permute.xlu2 %2112 }
 0x4aa   : > { %v2096_v53 = vadd.f32 %v2088_v38, %v2071_v44 }
 0x4ab   : > { %v2019_v47 = vpop.permute.xlu0 %2018  ;;  %v2017_v59 = vpop.permute.xlu1 %2016 }
 0x4ac   : > { %v2022_v26 = vsel %vm308_vm4, %v2017_v59, %v2019_v47  ;;  %v2023_v10 = vsel %vm308_vm4, %v2019_v47, %v2021_v4 }
 0x4ad   : > { %v2027_v1 = vadd.f32 %v2022_v26, %v2005_v3  ;;  %v2028_v33 = vadd.f32 %v2023_v10, %v2006_v60 }
 0x4af   : > { %v2044_v47 = vadd.f32 %v2038_v31, %v2027_v1  ;;  %v2045_v5 = vadd.f32 %v2039_v28, %v2028_v33 }
 0x4b1   : > { %v2138_v62 = vpop.permute.xlu2 %2137 }
 0x4b3   : > { %v2061_v13 = vpop.permute.xlu0 %2060  ;;  %v2059_v27 = vpop.permute.xlu1 %2058 }
 0x4b4   : > { %v2064_v46 = vsel %vm570_vm12, %v2059_v27, %v2061_v13  ;;  %v2065_v52 = vsel %vm570_vm12, %v2061_v13, %v2063_v36  ;;  %v2121_v13 = vadd.f32 %v2113_v32, %v2096_v53  ;;  %v2314_v53 = vstv %s3192_s20  ;;  %s4500_s20 = sld [smem:[#allocation6 + $0x31]] }
 0x4b5   : > { %v2069_v11 = vadd.f32 %v2064_v46, %v2044_v47  ;;  %v2070_v58 = vadd.f32 %v2065_v52, %v2045_v5  ;;  %v2270_v5 = vstv %s3190_s12  ;;  %s550_s12 = sld [smem:[#allocation6]] }
 0x4b6   : > { %v2271_v44 = vmul.f32 %v2270_v5, %v3738_v43 }
 0x4b9   : > { %v2163_v59 = vpop.permute.xlu2 %2162 }
 0x4bb   : > { %v2086_v54 = vpop.permute.xlu0 %2085  ;;  %v2084_v48 = vpop.permute.xlu1 %2083 }
 0x4bc   : > { %v2089_v21 = vsel %vm591_vm13, %v2084_v48, %v2086_v54  ;;  %v2090_v4 = vsel %vm591_vm13, %v2086_v54, %v2088_v38  ;;  %v2146_v54 = vadd.f32 %v2138_v62, %v2121_v13 }
 0x4bd   : > { %v2094_v39 = vadd.f32 %v2089_v21, %v2069_v11  ;;  %v2095_v16 = vadd.f32 %v2090_v4, %v2070_v58  ;;  %v2273_v21 = vmul.f32 %v2270_v5, %v3726_v35  ;;  %v2272_v11 = vmul.f32 %v2270_v5, %v3735_v42 }
 0x4be   : > { %v2292_v4 = vstv %s3191_s7  ;;  %s3200_s7 = sld [smem:[#allocation6 + $0x59]] }
 0x4bf   : > { %v2295_v58 = vmul.f32 %v2292_v4, %v3726_v35 }
 0x4c1   : > { %v2188_v60 = vpop.permute.xlu2 %2187 }
 0x4c3   : > { %v2111_v51 = vpop.permute.xlu0 %2110  ;;  %v2109_v57 = vpop.permute.xlu1 %2108 }
 0x4c4   : > { %v2114_v61 = vsel %vm612_vm14, %v2109_v57, %v2111_v51  ;;  %v2115_v27 = vsel %vm612_vm14, %v2111_v51, %v2113_v32  ;;  %v2171_v51 = vadd.f32 %v2163_v59, %v2146_v54 }
 0x4c5   : > { %v2119_v49 = vadd.f32 %v2114_v61, %v2094_v39  ;;  %v2120_v36 = vadd.f32 %v2115_v27, %v2095_v16  ;;  %v2293_v61 = vmul.f32 %v2292_v4, %v3738_v43  ;;  %v2317_v39 = vmul.f32 %v2314_v53, %v3726_v35 }
 0x4c6   : > { %v2315_v27 = vmul.f32 %v2314_v53, %v3738_v43  ;;  %v2316_v16 = vmul.f32 %v2314_v53, %v3735_v42  ;;  %v593_v53 = vsel %vm591_vm13, %v3859_v19, %v3843_v8  ;;  %v634_v8 = vsel %vm633_vm15, %v3883_v50, %v3890_v55 }
 0x4cb   : > { %v2136_v25 = vpop.permute.xlu0 %2135  ;;  %v2134_v7 = vpop.permute.xlu1 %2133 }
 0x4cc   : > { %v2139_v26 = vsel %vm633_vm15, %v2134_v7, %v2136_v25  ;;  %v2140_v3 = vsel %vm633_vm15, %v2136_v25, %v2138_v62  ;;  %v2196_v25 = vadd.f32 %v2188_v60, %v2171_v51 }
 0x4cd   : > { %v2144_v41 = vadd.f32 %v2139_v26, %v2119_v49  ;;  %v2145_v38 = vadd.f32 %v2140_v3, %v2120_v36  ;;  %v2336_v26 = vstv %s3193_s29  ;;  %s3201_s29 = sld [smem:[#allocation6 + $0x60]] }
 0x4ce   : > { %v2339_v13 = vmul.f32 %v2336_v26, %v3726_v35  ;;  %v2337_v49 = vmul.f32 %v2336_v26, %v3738_v43  ;;  %v2338_v3 = vmul.f32 %v2336_v26, %v3735_v42 }
 0x4d3   : > { %v2159_v20 = vpop.permute.xlu1 %2158  ;;  %v2161_v22 = vpop.permute.xlu0 %2160 }
 0x4d4   : > { %v2164_v10 = vsel %vm654_vm0, %v2159_v20, %v2161_v22  ;;  %v2165_v57 = vsel %vm654_vm0, %v2161_v22, %v2163_v59  ;;  %v2248_v59 = vstv %s3189_s5  ;;  %s3198_s5 = sld [smem:[#allocation6 + $0x4b]] }
 0x4d5   : > { %v2169_v0 = vadd.f32 %v2164_v10, %v2144_v41  ;;  %v2170_v32 = vadd.f32 %v2165_v57, %v2145_v38  ;;  %v2251_v56 = vmul.f32 %v2248_v59, %v3726_v35  ;;  %v2249_v52 = vmul.f32 %v2248_v59, %v3738_v43 }
 0x4d6   : > { %v2250_v47 = vmul.f32 %v2248_v59, %v3735_v42  ;;  %v2397_v41 = vstv %s3196_s13  ;;  %s3206_s13 = sld [smem:[#allocation6 + $0x14]] }
 0x4d7   : > { %v2400_v57 = vmul.f32 %v2397_v41, %v3726_v35  ;;  %v2399_v38 = vmul.f32 %v2397_v41, %v3735_v42 }
 0x4db   : > { %v2184_v23 = vpop.permute.xlu1 %2183  ;;  %v2186_v48 = vpop.permute.xlu0 %2185 }
 0x4dc   : > { %v2189_v29 = vsel %vm308_vm4, %v2184_v23, %v2186_v48  ;;  %v2190_v7 = vsel %vm308_vm4, %v2186_v48, %v2188_v60  ;;  %v2294_v23 = vmul.f32 %v2292_v4, %v3735_v42  ;;  %v2358_v48 = vstv %s3194_s8  ;;  %s3205_s8 = sld [smem:[#allocation6 + $0xd]] }
 0x4dd   : > { %v2194_v33 = vadd.f32 %v2189_v29, %v2169_v0  ;;  %v2195_v62 = vadd.f32 %v2190_v7, %v2170_v32  ;;  %v2361_v36 = vmul.f32 %v2358_v48, %v3726_v35  ;;  %v2359_v10 = vmul.f32 %v2358_v48, %v3738_v43 }
 0x4de   : > { %v2360_v54 = vmul.f32 %v2358_v48, %v3735_v42  ;;  %v2398_v60 = vmul.f32 %v2397_v41, %v3738_v43  ;;  %v2406_v29 = vrot.slane %v2400_v57, 1  ;;  %v2405_v0 = vrot.slane %v2399_v38, 1  ;;  %v4913_v41 = vld [vmem:[#allocation11_spill] sm:$0xff] }
 0x4df   : > { %v2422_v7 = vstv %s3197_s30  ;;  %v4915_v38 = vld [vmem:[#allocation15_spill] sm:$0xff]  ;;  %s3207_s30 = sld [smem:[#allocation6 + $0x1b]] }
 0x4e0   : > { %v2404_v51 = vrot.slane %v2398_v60, 1  ;;  %v2425_v32 = vmul.f32 %v2422_v7, %v3726_v35  ;;  %v4914_v60 = vld [vmem:[#allocation17_spill] sm:$0xff] }
 0x4e3   : > { %v3345_v1 = vpop.permute.xlu1 %3344 }
 0x4e4   : > { %v3347_v12 = vunpack.i.h.bf16 %v3345_v1  ;;  %v3346_v20 = vunpack.i.l.bf16 %v3345_v1  ;;  %v2423_v1 = vmul.f32 %v2422_v7, %v3738_v43 }
 0x4e6   : > { %v2210_v31 = vmul.f32 %v3347_v12, %v2196_v25  ;;  %v2204_v28 = vsel %vm2203_vm7, %v3346_v20, %v3347_v12  ;;  %v2208_v22 = vmul.f32 %v3346_v20, %v2194_v33  ;;  %v2424_v25 = vmul.f32 %v2422_v7, %v3735_v42 }
 0x4e7   : > { %v2209_v46 = vmul.f32 %v2204_v28, %v2195_v62  ;;  %v2431_v33 = vrot.slane %v2425_v32, 1  ;;  %v2429_v12 = vrot.slane %v2423_v1, 1  ;;  %v2447_v62 = vstv %s3198_s5  ;;  %s3208_s5 = sld [smem:[#allocation6 + $0x22]] }
 0x4e8   : > { %2218 = vrot.lane.b32.xlu1 %v2210_v31, %s3535_s10  ;;  %2214 = vrot.lane.b32.xlu0 %v2208_v22, %s3535_s10  ;;  %v2430_v20 = vrot.slane %v2424_v25, 1  ;;  %v2450_v31 = vmul.f32 %v2447_v62, %v3726_v35  ;;  %v2448_v28 = vmul.f32 %v2447_v62, %v3738_v43  ;;  %v2449_v22 = vmul.f32 %v2447_v62, %v3735_v42 }
 0x4e9   : > { %2216 = vrot.lane.b32.xlu2 %v2209_v46, %s3535_s10  ;;  %s3199_s10 = sld [smem:[#allocation6 + $0x52]]  ;;  %v4553_v62 = vstv %s3201_s29  ;;  %vm2552_vm7 = vcmask 39936  }
 0x4ea   : > { %v2456_v46 = vrot.slane %v2450_v31, 1  ;;  %v2454_v59 = vrot.slane %v2448_v28, 1  ;;  %s3213_s29 = sld [smem:[#allocation6 + $0x45]] }
 0x4f0   : > { %2259 = vrot.lane.b32.xlu1 %v2251_v56, %s3520_s23  ;;  %2255 = vrot.lane.b32.xlu0 %v2249_v52, %s3520_s23  ;;  %v2455_v56 = vrot.slane %v2449_v22, 1  ;;  %v2472_v52 = vstv %s3199_s10  ;;  %s3209_s10 = sld [smem:[#allocation6 + $0x29]] }
 0x4f1   : > { %2257 = vrot.lane.b32.xlu2 %v2250_v47, %s3520_s23  ;;  %v551_v47 = vstv %s550_s12  ;;  %v2475_v5 = vmul.f32 %v2472_v52, %v3726_v35  ;;  %v2474_v4 = vmul.f32 %v2472_v52, %v3735_v42  ;;  %s3188_s12 = sld [smem:[#allocation6 + $0x5]] }
 0x4f3   : > { %v2480_v26 = vrot.slane %v2474_v4, 1  ;;  %v2524_v4 = vmul.f32 %v4553_v62, %v3735_v42 }
 0x4f8   : > { %2281 = vrot.lane.b32.xlu1 %v2273_v21, %s3521_s25  ;;  %2277 = vrot.lane.b32.xlu0 %v2271_v44, %s3521_s25  ;;  %v2473_v21 = vmul.f32 %v2472_v52, %v3738_v43  ;;  %v572_v44 = vsel %vm570_vm12, %v3840_v6, %v3830_v63  ;;  %v4918_v52 = vld [vmem:[#allocation18_spill] sm:$0xff] }
 0x4f9   : > { %2279 = vrot.lane.b32.xlu2 %v2272_v11, %s3521_s25  ;;  %v571_v11 = vsel %vm570_vm12, %v3845_v9, %v3840_v6  ;;  %v613_v6 = vsel %vm612_vm14, %v3868_v30, %v3874_v37  ;;  %v614_v9 = vsel %vm612_vm14, %v3874_v37, %v3857_v18  ;;  %v682_v30 = vstv %s4500_s20  ;;  %s3212_s20 = sld [smem:[#allocation6 + $0x3e]] }
 0x4fa   : > { %v683_v7 = vmul.f32 %v682_v30, %v3738_v43  ;;  %v684_v32 = vmul.f32 %v682_v30, %v3735_v42  ;;  %v2530_v30 = vrot.slane %v2524_v4, 1  ;;  %v4935_v4 = vld [vmem:[#allocation40_spill] sm:$0xff] }
 0x4fc   : > { %v687_v22 = vrot.slane %v683_v7, 1 }
 0x500   : > { %2303 = vrot.lane.b32.xlu1 %v2295_v58, %s3522_s6  ;;  %2299 = vrot.lane.b32.xlu0 %v2293_v61, %s3522_s6  ;;  %v553_v58 = vmul.f32 %v551_v47, %v3735_v42  ;;  %v552_v61 = vmul.f32 %v551_v47, %v3738_v43 }
 0x501   : > { %2301 = vrot.lane.b32.xlu2 %v2294_v23, %s3522_s6  ;;  %v592_v23 = vsel %vm591_vm13, %v3853_v15, %v3859_v19  ;;  %v635_v19 = vsel %vm633_vm15, %v3890_v55, %v3872_v34 }
 0x502   : > { %v576_v63 = vadd.f32 %v572_v44, %v553_v58 }
 0x508   : > { %2325 = vrot.lane.b32.xlu1 %v2317_v39, %s3523_s9  ;;  %2321 = vrot.lane.b32.xlu0 %v2315_v27, %s3523_s9  ;;  %v575_v39 = vadd.f32 %v571_v11, %v552_v61  ;;  %v2481_v27 = vrot.slane %v2475_v5, 1  ;;  %v4919_v5 = vld [vmem:[#allocation16_spill] sm:$0xff]  ;;  %v2597_v11 = vstv %s3205_s8  ;;  %s3214_s8 = sld [smem:[#allocation6 + $0x4c]] }
 0x509   : > { %2323 = vrot.lane.b32.xlu2 %v2316_v16, %s3523_s9  ;;  %v2479_v16 = vrot.slane %v2473_v21, 1 }
 0x50a   : > { %v596_v15 = vadd.f32 %v592_v23, %v575_v39  ;;  %v4920_v23 = vld [vmem:[#allocation23_spill] sm:$0xff] }
 0x50b   : > { %v4922_v39 = vld [vmem:[#allocation19_spill] sm:$0xff] }
 0x50c   : > { %v617_v18 = vadd.f32 %v613_v6, %v596_v15  ;;  %v4924_v15 = vld [vmem:[#allocation24_spill] sm:$0xff] }
 0x50e   : > { %v638_v34 = vadd.f32 %v634_v8, %v617_v18  ;;  %v4925_v8 = vld [vmem:[#allocation22_spill] sm:$0xff] }
 0x510   : > { %2347 = vrot.lane.b32.xlu1 %v2339_v13, %s3524_s11  ;;  %2343 = vrot.lane.b32.xlu0 %v2337_v49, %s3524_s11  ;;  %v2497_v13 = vstv %s3200_s7  ;;  %v597_v49 = vadd.f32 %v593_v53, %v576_v63  ;;  %v4921_v53 = vld [vmem:[#allocation21_spill] sm:$0xff]  ;;  %s3210_s7 = sld [smem:[#allocation6 + $0x30]] }
 0x511   : > { %2345 = vrot.lane.b32.xlu2 %v2338_v3, %s3524_s11  ;;  %v2500_v3 = vmul.f32 %v2497_v13, %v3726_v35  ;;  %v2498_v48 = vmul.f32 %v2497_v13, %v3738_v43  ;;  %v2499_v57 = vmul.f32 %v2497_v13, %v3735_v42  ;;  %v733_v63 = vsel %vm591_vm13, %v4921_v53, %v4920_v23  ;;  %v4923_v13 = vld [vmem:[#allocation26_spill] sm:$0xff] }
 0x512   : > { %v618_v37 = vadd.f32 %v614_v9, %v597_v49  ;;  %v2598_v9 = vmul.f32 %v2597_v11, %v3738_v43  ;;  %v756_v49 = vsel %vm612_vm14, %v4924_v15, %v4923_v13 }
 0x514   : > { %v639_v55 = vadd.f32 %v635_v19, %v618_v37  ;;  %v757_v19 = vsel %vm612_vm14, %v4923_v13, %v4925_v8 }
 0x518   : > { %2369 = vrot.lane.b32.xlu1 %v2361_v36, %s3525_s26  ;;  %2365 = vrot.lane.b32.xlu0 %v2359_v10, %s3525_s26  ;;  %v4911_v36 = vld [vmem:[#allocation14_spill] sm:$0xff]  ;;  %v4912_v10 = vld [vmem:[#allocation12_spill] sm:$0xff] }
 0x519   : > { %2367 = vrot.lane.b32.xlu2 %v2360_v54, %s3525_s26  ;;  %v655_v54 = vsel %vm654_vm0, %v4912_v10, %v4911_v36  ;;  %v656_v50 = vsel %vm654_vm0, %v4911_v36, %v4913_v41  ;;  %v4928_v10 = vld [vmem:[#allocation25_spill] sm:$0xff]  ;;  %v2619_v41 = vstv %s3206_s13  ;;  %s3215_s13 = sld [smem:[#allocation6 + $0x53]] }
 0x51a   : > { %v659_v1 = vadd.f32 %v655_v54, %v638_v34  ;;  %v660_v25 = vadd.f32 %v656_v50, %v639_v55  ;;  %v539_v34 = vadd.s32 4294967293, %v3988_v24  ;;  %v538_v55 = vadd.s32 4294967293, %v3986_v14 }
 0x51b   : > { %v2621_v8 = vmul.f32 %v2619_v41, %v3735_v42 }
 0x51c   : > { %vm541_vm8 = vcmp.ge.s32.totalorder %v539_v34, 0  ;;  %vm540_vm9 = vcmp.ge.s32.totalorder %v538_v55, 0 }
 0x520   : > { %2411 = vrot.lane.b32.xlu1 %v2406_v29, %s3520_s23  ;;  %2407 = vrot.lane.b32.xlu0 %v2404_v51, %s3520_s23  ;;  %v675_v29 = vsel %vm308_vm4, %v4915_v38, %v4914_v60  ;;  %v4916_v51 = vld [vmem:[#allocation13_spill] sm:$0xff]  ;;  %v4930_v38 = vld [vmem:[#allocation30_spill] sm:$0xff] }
 0x521   : > { %2409 = vrot.lane.b32.xlu2 %v2405_v0, %s3520_s23  ;;  %v676_v0 = vsel %vm308_vm4, %v4914_v60, %v4916_v51  ;;  %v679_v31 = vadd.f32 %v675_v29, %v659_v1  ;;  %v4929_v60 = vld [vmem:[#allocation32_spill] sm:$0xff] }
 0x522   : > { %v680_v28 = vadd.f32 %v676_v0, %v660_v25  ;;  %v802_v29 = vsel %vm654_vm0, %v4930_v38, %v4929_v60  ;;  %v4931_v51 = vld [vmem:[#allocation28_spill] sm:$0xff]  ;;  %v4932_v25 = vld [vmem:[#allocation34_spill] sm:$0xff] }
 0x523   : > { %v691_v58 = vadd.f32 %v687_v22, %v679_v31  ;;  %v803_v0 = vsel %vm654_vm0, %v4929_v60, %v4931_v51  ;;  %v2599_v22 = vmul.f32 %v2597_v11, %v3735_v42  ;;  %v2685_v51 = vstv %s3209_s10  ;;  %s3539_s10 = smov 122  }
 0x528   : > { %2436 = vrot.lane.b32.xlu1 %v2431_v33, %s3521_s25  ;;  %2432 = vrot.lane.b32.xlu0 %v2429_v12, %s3521_s25  ;;  %v2506_v33 = vrot.slane %v2500_v3, 1  ;;  %v2504_v12 = vrot.slane %v2498_v48, 1  ;;  %v4926_v3 = vld [vmem:[#allocation29_spill] sm:$0xff]  ;;  %v4927_v48 = vld [vmem:[#allocation27_spill] sm:$0xff] }
 0x529   : > { %2434 = vrot.lane.b32.xlu2 %v2430_v20, %s3521_s25  ;;  %v2505_v20 = vrot.slane %v2499_v57, 1  ;;  %v779_v36 = vsel %vm633_vm15, %v4927_v48, %v4926_v3  ;;  %v780_v54 = vsel %vm633_vm15, %v4926_v3, %v4928_v10 }
 0x530   : > { %2461 = vrot.lane.b32.xlu1 %v2456_v46, %s3522_s6  ;;  %2457 = vrot.lane.b32.xlu0 %v2454_v59, %s3522_s6  ;;  %v688_v46 = vrot.slane %v684_v32, 1  ;;  %v2523_v59 = vmul.f32 %v4553_v62, %v3738_v43 }
 0x531   : > { %2459 = vrot.lane.b32.xlu2 %v2455_v56, %s3522_s6  ;;  %v4917_v56 = vld [vmem:[#allocation20_spill] sm:$0xff] }
 0x532   : > { %v710_v47 = vsel %vm570_vm12, %v4918_v52, %v4917_v56  ;;  %v711_v21 = vsel %vm570_vm12, %v4917_v56, %v4919_v5  ;;  %v692_v61 = vadd.f32 %v688_v46, %v680_v28  ;;  %v2620_v28 = vmul.f32 %v2619_v41, %v3738_v43 }
 0x533   : > { %v2600_v56 = vmul.f32 %v2597_v11, %v3726_v35  ;;  %v3110_v5 = vsel %vm541_vm8, 1.0, %v4906_v17 }
 0x534   : > { %v715_v6 = vadd.f32 %v711_v21, %v692_v61  ;;  %v3109_v21 = vsel %vm540_vm9, 1.0, %v4906_v17 }
 0x538   : > { %2486 = vrot.lane.b32.xlu1 %v2481_v27, %s3523_s9  ;;  %2482 = vrot.lane.b32.xlu0 %v2479_v16, %s3523_s9  ;;  %v734_v27 = vsel %vm591_vm13, %v4920_v23, %v4922_v39  ;;  %v714_v16 = vadd.f32 %v710_v47, %v691_v58  ;;  %v4936_v58 = vld [vmem:[#allocation39_spill] sm:$0xff]  ;;  %v4937_v23 = vld [vmem:[#allocation41_spill] sm:$0xff] }
 0x539   : > { %2484 = vrot.lane.b32.xlu2 %v2480_v26, %s3523_s9  ;;  %v2529_v26 = vrot.slane %v2523_v59, 1  ;;  %v738_v37 = vadd.f32 %v734_v27, %v715_v6  ;;  %v1178_v61 = vsel %vm1176_vm11, %v4936_v58, %v4935_v4  ;;  %v1177_v11 = vsel %vm1176_vm11, %v4937_v23, %v4936_v58 }
 0x53a   : > { %v737_v18 = vadd.f32 %v733_v63, %v714_v16  ;;  %v2641_v63 = vstv %s3207_s30  ;;  %v4938_v16 = vld [vmem:[#allocation42_spill] sm:$0xff]  ;;  %v2688_v23 = vmul.f32 %v2685_v51, %v3726_v35  ;;  %s3195_s30 = sld [smem:[#allocation6 + $0x36]] }
 0x53b   : > { %v761_v57 = vadd.f32 %v757_v19, %v738_v37  ;;  %v1525_v6 = vsel %vm1524_vm3, %v4938_v16, %v4293_v40  ;;  %v2622_v19 = vmul.f32 %v2619_v41, %v3726_v35  ;;  %v2663_v41 = vstv %s3208_s5  ;;  %s3538_s5 = smov 123  }
 0x53c   : > { %v760_v50 = vadd.f32 %v756_v49, %v737_v18  ;;  %v2642_v49 = vmul.f32 %v2641_v63, %v3738_v43  ;;  %v2664_v34 = vmul.f32 %v2663_v41, %v3738_v43 }
 0x53d   : > { %v784_v1 = vadd.f32 %v780_v54, %v761_v57 }
 0x53e   : > { %v783_v32 = vadd.f32 %v779_v36, %v760_v50 }
 0x53f   : > { %v807_v59 = vadd.f32 %v803_v0, %v784_v1  ;;  %v2240_v0 = vstv %s3188_s12  ;;  %v2665_v1 = vmul.f32 %v2663_v41, %v3735_v42  ;;  %s3226_s12 = sshll.u32 %s3589_s19, 6 }
 0x540   : > { %2511 = vrot.lane.b32.xlu1 %v2506_v33, %s3524_s11  ;;  %2507 = vrot.lane.b32.xlu0 %v2504_v12, %s3524_s11  ;;  %v4933_v33 = vld [vmem:[#allocation33_spill] sm:$0xff]  ;;  %v806_v46 = vadd.f32 %v802_v29, %v783_v32  ;;  %v2686_v32 = vmul.f32 %v2685_v51, %v3738_v43 }
 0x541   : > { %2509 = vrot.lane.b32.xlu2 %v2505_v20, %s3524_s11  ;;  %v825_v12 = vsel %vm308_vm4, %v4933_v33, %v4932_v25  ;;  %v4934_v20 = vld [vmem:[#allocation31_spill] sm:$0xff]  ;;  %v2666_v33 = vmul.f32 %v2663_v41, %v3726_v35 }
 0x542   : > { %v826_v31 = vsel %vm308_vm4, %v4932_v25, %v4934_v20  ;;  %v829_v52 = vadd.f32 %v825_v12, %v806_v46  ;;  %v2243_v25 = vmul.f32 %v2240_v0, %v3726_v35  ;;  %v2242_v12 = vmul.f32 %v2240_v0, %v3735_v42 }
 0x543   : > { %v4566_v44 = vpop.permute.xlu2 %2216  ;;  %v830_v47 = vadd.f32 %v826_v31, %v807_v59  ;;  %v2241_v20 = vmul.f32 %v2240_v0, %v3738_v43 }
 0x544   : > { %v831_v27 = vmul.f32 %v3109_v21, %v829_v52 }
 0x545   : > { %v832_v39 = vmul.f32 %v3110_v5, %v830_v47  ;;  %v2707_v5 = vstv %s3210_s7 }
 0x546   : > { %v1181_v15 = vadd.f32 %v1177_v11, %v831_v27  ;;  %v2708_v58 = vmul.f32 %v2707_v5, %v3738_v43  ;;  %v2746_v11 = vstv %s3212_s20  ;;  %s3001_s20 = scalar_lea.hbm %s4855_s4, %s3226_s12 }
 0x547   : > { %v1182_v13 = vadd.f32 %v1178_v61, %v832_v39  ;;  %v2687_v61 = vmul.f32 %v2685_v51, %v3735_v42  ;;  %v2747_v39 = vmul.f32 %v2746_v11, %v3738_v43 }
 0x548   : > { %2604 = vrot.lane.b32.xlu1 %v2598_v9, %s3520_s23  ;;  %2532 = vrot.lane.b32.xlu0 %v2529_v26, %s3525_s26  ;;  %v4939_v9 = vld [vmem:[#allocation43_spill] sm:$0xff] }
 0x549   : > { %2534 = vrot.lane.b32.xlu2 %v2530_v30, %s3525_s26  ;;  %v1526_v26 = vsel %vm1524_vm3, %v4293_v40, %v4939_v9  ;;  %v1529_v30 = vadd.f32 %v1525_v6, %v1181_v15  ;;  %v2753_v15 = vrot.slane %v2747_v39, 1 }
 0x54a   : > { %v1530_v18 = vadd.f32 %v1526_v26, %v1182_v13 }
 0x54b   : > { %v4600_v7 = vpop.permute.xlu2 %2257  ;;  %v1876_v40 = vadd.f32 %v4415_v45, %v1529_v30  ;;  %v2644_v45 = vmul.f32 %v2641_v63, %v3726_v35 }
 0x54c   : > { %v1877_v37 = vadd.f32 %v4413_v2, %v1530_v18  ;;  %v2643_v2 = vmul.f32 %v2641_v63, %v3735_v42 }
 0x550   : > { %2626 = vrot.lane.b32.xlu1 %v2620_v28, %s3521_s25  ;;  %2606 = vrot.lane.b32.xlu0 %v2599_v22, %s3520_s23 }
 0x551   : > { %2608 = vrot.lane.b32.xlu2 %v2600_v56, %s3520_s23 }
 0x553   : > { %v2280_v53 = vpop.permute.xlu2 %2279 }
 0x558   : > { %2648 = vrot.lane.b32.xlu1 %v2642_v49, %s3522_s6  ;;  %2628 = vrot.lane.b32.xlu0 %v2621_v8, %s3521_s25  ;;  %v2709_v49 = vmul.f32 %v2707_v5, %v3735_v42  ;;  %v2710_v8 = vmul.f32 %v2707_v5, %v3726_v35 }
 0x559   : > { %2630 = vrot.lane.b32.xlu2 %v2622_v19, %s3521_s25  ;;  %v2771_v19 = vstv %s3213_s29  ;;  %s231_s29 = scalar_lea.vmem [#allocation7], %s3098_s3  ;;  %s2990_s3 = scalar_lea.sflag [#allocation4], %s3665_s14 }
 0x55a   : > { %v2219_v3 = vpop.permute.xlu1 %2218  ;;  %v2215_v48 = vpop.permute.xlu0 %2214  ;;  %v2773_v51 = vmul.f32 %v2771_v19, %v3735_v42 }
 0x55b   : > { %v2222_v36 = vsel %vm2220_vm1, %v4566_v44, %v2219_v3  ;;  %v2221_v10 = vsel %vm2220_vm1, %v2215_v48, %v4566_v44  ;;  %v2302_v54 = vpop.permute.xlu2 %2301 }
 0x55c   : > { %v4634_v50 = vadd.f32 %v2222_v36, %v1877_v37  ;;  %v4636_v57 = vadd.f32 %v2221_v10, %v1876_v40  ;;  %v2772_v37 = vmul.f32 %v2771_v19, %v3738_v43  ;;  %v2748_v40 = vmul.f32 %v2746_v11, %v3735_v42 }
 0x560   : > { %2670 = vrot.lane.b32.xlu1 %v2664_v34, %s3523_s9  ;;  %2650 = vrot.lane.b32.xlu0 %v2643_v2, %s3522_s6  ;;  %v2778_v2 = vrot.slane %v2772_v37, 1 }
 0x561   : > { %2652 = vrot.lane.b32.xlu2 %v2644_v45, %s3522_s6  ;;  %v2754_v45 = vrot.slane %v2748_v40, 1 }
 0x562   : > { %v2260_v44 = vpop.permute.xlu1 %2259  ;;  %v2256_v55 = vpop.permute.xlu0 %2255 }
 0x563   : > { %v2262_v60 = vsel %vm570_vm12, %v4600_v7, %v2260_v44  ;;  %v2261_v38 = vsel %vm570_vm12, %v2256_v55, %v4600_v7  ;;  %v2324_v29 = vpop.permute.xlu2 %2323  ;;  %v2268_v7 = vadd.f32 %v2260_v44, %v2243_v25  ;;  %v2796_v55 = vstv %s3214_s8  ;;  %s3002_s8 = sshll.u32 %s231_s29, 4  ;;  %s3003_s8 = int_to_ptr.vmem [resolvable:$true] %s3002_s8 }
 0x564   : > { %v2267_v31 = vadd.f32 %v2262_v60, %v2242_v12  ;;  %v2266_v28 = vadd.f32 %v2261_v38, %v2241_v20  ;;  %v2799_v5 = vmul.f32 %v2796_v55, %v3726_v35 }
 0x568   : > { %2692 = vrot.lane.b32.xlu1 %v2686_v32, %s3524_s11  ;;  %2672 = vrot.lane.b32.xlu0 %v2665_v1, %s3523_s9 }
 0x569   : > { %2674 = vrot.lane.b32.xlu2 %v2666_v33, %s3523_s9  ;;  %v2774_v33 = vmul.f32 %v2771_v19, %v3726_v35 }
 0x56a   : > { %v2282_v22 = vpop.permute.xlu1 %2281  ;;  %v2278_v46 = vpop.permute.xlu0 %2277 }
 0x56b   : > { %v2284_v59 = vsel %vm591_vm13, %v2280_v53, %v2282_v22  ;;  %v2290_v56 = vadd.f32 %v2282_v22, %v2268_v7  ;;  %v2283_v52 = vsel %vm591_vm13, %v2278_v46, %v2280_v53  ;;  %v2346_v47 = vpop.permute.xlu2 %2345  ;;  %v2821_v22 = vstv %s3215_s13  ;;  %s3004_s13 = sshll.u32 %s3001_s20, 4  ;;  %s3005_s13 = int_to_ptr.hbm [resolvable:$true] %s3004_s13 }
 0x56c   : > { %v2289_v21 = vadd.f32 %v2284_v59, %v2267_v31  ;;  %v2288_v4 = vadd.f32 %v2283_v52, %v2266_v28  ;;  %v2779_v31 = vrot.slane %v2773_v51, 1  ;;  %v2780_v28 = vrot.slane %v2774_v33, 1 }
 0x56d   : > { %v2380_v46 = vstv %s3195_s30  ;;  %v2822_v52 = vmul.f32 %v2821_v22, %v3738_v43  ;;  %v2823_v37 = vmul.f32 %v2821_v22, %v3735_v42  ;;  %v2228_v51 = vadd.s32 2, %v3988_v24  ;;  %s3455_s30 = sshra.s32 %s3005_s13, 4  ;;  %s3456_s30 = int_to_ptr.hbm [resolvable:$true] %s3455_s30 }
 0x56e   : > { %v2381_v39 = vmul.f32 %v2380_v46, %v3738_v43  ;;  %p3462_p0 = scmp.lt.s32.totalorder %s3456_s30, %s4855_s4 }
 0x56f   : > { %vm2232_vm2 = vcmp.lt.s32.totalorder %v2228_v51, 16 }
 0x570   : > { %2714 = vrot.lane.b32.xlu1 %v2708_v58, %s3525_s26  ;;  %2694 = vrot.lane.b32.xlu0 %v2687_v61, %s3524_s11 }
 0x571   : > { %2696 = vrot.lane.b32.xlu2 %v2688_v23, %s3524_s11  ;;  %v2383_v23 = vmul.f32 %v2380_v46, %v3726_v35 }
 0x572   : > { %v2304_v63 = vpop.permute.xlu1 %2303  ;;  %v2300_v53 = vpop.permute.xlu0 %2299 }
 0x573   : > { %v2306_v27 = vsel %vm612_vm14, %v2302_v54, %v2304_v63  ;;  %v2312_v16 = vadd.f32 %v2304_v63, %v2290_v56  ;;  %v2305_v6 = vsel %vm612_vm14, %v2300_v53, %v2302_v54  ;;  %v2368_v9 = vpop.permute.xlu2 %2367  ;;  %v2749_v54 = vmul.f32 %v2746_v11, %v3726_v35 }
 0x574   : > { %v2311_v26 = vadd.f32 %v2306_v27, %v2289_v21  ;;  %v2310_v13 = vadd.f32 %v2305_v6, %v2288_v4  ;;  %v2382_v53 = vmul.f32 %v2380_v46, %v3735_v42  ;;  %v2828_v27 = vrot.slane %v2822_v52, 1 }
 0x575   : > { %v2755_v44 = vrot.slane %v2749_v54, 1  ;;  %v2805_v6 = vrot.slane %v2799_v5, 1  ;;  %v2824_v54 = vmul.f32 %v2821_v22, %v3726_v35 }
 0x578   : > { %2756 = vrot.lane.b32.xlu1 %v2753_v15, %s3520_s23  ;;  %2716 = vrot.lane.b32.xlu0 %v2709_v49, %s3525_s26 }
 0x579   : > { %2718 = vrot.lane.b32.xlu2 %v2710_v8, %s3525_s26 }
 0x57a   : > { %v2326_v30 = vpop.permute.xlu1 %2325  ;;  %v2322_v18 = vpop.permute.xlu0 %2321 }
 0x57b   : > { %v2328_v3 = vsel %vm633_vm15, %v2324_v29, %v2326_v30  ;;  %v2334_v48 = vadd.f32 %v2326_v30, %v2312_v16  ;;  %v2327_v36 = vsel %vm633_vm15, %v2322_v18, %v2324_v29  ;;  %v4677_v10 = vpop.permute.xlu2 %2409  ;;  %v2797_v29 = vmul.f32 %v2796_v55, %v3738_v43 }
 0x57c   : > { %v2333_v41 = vadd.f32 %v2328_v3, %v2311_v26  ;;  %v2332_v34 = vadd.f32 %v2327_v36, %v2310_v13  ;;  %v2389_v26 = vrot.slane %v2383_v23, 1  ;;  %v2387_v13 = vrot.slane %v2381_v39, 1 }
 0x57d   : > { %v2803_v7 = vrot.slane %v2797_v29, 1  ;;  %v2525_v18 = vmul.f32 %v4553_v62, %v3726_v35  ;;  %v2227_v29 = vadd.s32 2, %v3986_v14 }
 0x57f   : > { %vm2231_vm10 = vcmp.lt.s32.totalorder %v2227_v29, 16 }
 0x580   : > { %2781 = vrot.lane.b32.xlu1 %v2778_v2, %s3521_s25  ;;  %2758 = vrot.lane.b32.xlu0 %v2754_v45, %s3520_s23  ;;  %v2531_v2 = vrot.slane %v2525_v18, 1  ;;  %v2829_v45 = vrot.slane %v2823_v37, 1 }
 0x581   : > { %2760 = vrot.lane.b32.xlu2 %v2755_v44, %s3520_s23  ;;  %s3216_s23 = sld [smem:[#allocation6 + $0x5a]]  ;;  %v2830_v44 = vrot.slane %v2824_v54, 1 }
 0x582   : > { %v2348_v60 = vpop.permute.xlu1 %2347  ;;  %v2344_v38 = vpop.permute.xlu0 %2343 }
 0x583   : > { %v2350_v0 = vsel %vm654_vm0, %v2346_v47, %v2348_v60  ;;  %v2356_v32 = vadd.f32 %v2348_v60, %v2334_v48  ;;  %v2349_v1 = vsel %vm654_vm0, %v2344_v38, %v2346_v47  ;;  %v4687_v25 = vpop.permute.xlu2 %2434  ;;  %v2798_v47 = vmul.f32 %v2796_v55, %v3735_v42 }
 0x584   : > { %v2355_v12 = vadd.f32 %v2350_v0, %v2333_v41  ;;  %v2354_v20 = vadd.f32 %v2349_v1, %v2332_v34 }
 0x585   : > { %v2804_v16 = vrot.slane %v2798_v47, 1 }
 0x587   : > { %v2846_v55 = vstv %s3216_s23 }
 0x588   : > { %2806 = vrot.lane.b32.xlu1 %v2803_v7, %s3522_s6  ;;  %2783 = vrot.lane.b32.xlu0 %v2779_v31, %s3521_s25  ;;  %v2847_v38 = vmul.f32 %v2846_v55, %v3738_v43 }
 0x589   : > { %2785 = vrot.lane.b32.xlu2 %v2780_v28, %s3521_s25  ;;  %s3217_s25 = sld [smem:[#allocation6 + $0x61]] }
 0x58a   : > { %v2370_v59 = vpop.permute.xlu1 %2369  ;;  %v2366_v56 = vpop.permute.xlu0 %2365  ;;  %v2853_v28 = vrot.slane %v2847_v38, 1 }
 0x58b   : > { %v2372_v21 = vsel %vm308_vm4, %v2368_v9, %v2370_v59  ;;  %v2378_v4 = vadd.f32 %v2370_v59, %v2356_v32  ;;  %v2371_v58 = vsel %vm308_vm4, %v2366_v56, %v2368_v9  ;;  %v4698_v61 = vpop.permute.xlu2 %2459  ;;  %v2388_v9 = vrot.slane %v2382_v53, 1 }
 0x58c   : > { %v2377_v11 = vadd.f32 %v2372_v21, %v2355_v12  ;;  %v2376_v63 = vadd.f32 %v2371_v58, %v2354_v20  ;;  %v2848_v12 = vmul.f32 %v2846_v55, %v3735_v42  ;;  %v3186_v59 = vsel %vm2231_vm10, 1.0, %v4906_v17 }
 0x58d   : > { %v2395_v15 = vadd.f32 %v2389_v26, %v2378_v4  ;;  %v2576_v21 = vadd.s32 3, %v3986_v14 }
 0x58e   : > { %v2394_v8 = vadd.f32 %v2388_v9, %v2377_v11  ;;  %v2393_v30 = vadd.f32 %v2387_v13, %v2376_v63  ;;  %v2854_v22 = vrot.slane %v2848_v12, 1  ;;  %v2577_v63 = vadd.s32 3, %v3988_v24 }
 0x58f   : > { %v2871_v46 = vstv %s3217_s25  ;;  %vm2580_vm5 = vcmp.lt.s32.totalorder %v2576_v21, 16 }
 0x590   : > { %2831 = vrot.lane.b32.xlu1 %v2828_v27, %s3523_s9  ;;  %2808 = vrot.lane.b32.xlu0 %v2804_v16, %s3522_s6  ;;  %v2873_v47 = vmul.f32 %v2871_v46, %v3735_v42  ;;  %v2872_v5 = vmul.f32 %v2871_v46, %v3738_v43  ;;  %vm2581_vm6 = vcmp.lt.s32.totalorder %v2577_v63, 16  ;;  %v2874_v26 = vmul.f32 %v2871_v46, %v3726_v35 }
 0x591   : > { %2810 = vrot.lane.b32.xlu2 %v2805_v6, %s3522_s6  ;;  %s3204_s6 = sld [smem:[#allocation6 + $0x6]]  ;;  %v3202_v24 = vsel %vm2580_vm5, 1.0, %v4906_v17  ;;  %v3203_v9 = vsel %vm2581_vm6, 1.0, %v4906_v17 }
 0x592   : > { %v2412_v49 = vpop.permute.xlu1 %2411  ;;  %v2408_v19 = vpop.permute.xlu0 %2407  ;;  %v2879_v16 = vrot.slane %v2873_v47, 1  ;;  %v2878_v6 = vrot.slane %v2872_v5, 1  ;;  %v3353_v37 = vpack.i.bf16 %v3203_v9, %v3202_v24 }
 0x593   : > { %v2414_v40 = vsel %vm570_vm12, %v4677_v10, %v2412_v49  ;;  %v2420_v3 = vadd.f32 %v2412_v49, %v2395_v15  ;;  %v2413_v48 = vsel %vm570_vm12, %v2408_v19, %v4677_v10  ;;  %v4713_v36 = vpop.permute.xlu2 %2484  ;;  %v2849_v10 = vmul.f32 %v2846_v55, %v3726_v35 }
 0x594   : > { %v2419_v41 = vadd.f32 %v2414_v40, %v2394_v8  ;;  %v2418_v34 = vadd.f32 %v2413_v48, %v2393_v30  ;;  %v2880_v40 = vrot.slane %v2874_v26, 1 }
 0x595   : > { %v2855_v31 = vrot.slane %v2849_v10, 1 }
 0x597   : > { %v2589_v18 = vstv %s3204_s6  ;;  %s3461_s6 = scalar_lea.hbm %s4855_s4, 128 }
 0x598   : > { %2536 = vrot.lane.b32.xlu1 %v2531_v2, %s3525_s26  ;;  %2833 = vrot.lane.b32.xlu0 %v2829_v45, %s3523_s9  ;;  %v2590_v12 = vmul.f32 %v2589_v18, %v3738_v43 }
 0x599   : > { %2835 = vrot.lane.b32.xlu2 %v2830_v44, %s3523_s9  ;;  %s3536_s9 = smov 5  }
 0x59a   : > { %v2437_v62 = vpop.permute.xlu1 %2436  ;;  %v2433_v60 = vpop.permute.xlu0 %2432 }
 0x59b   : > { %v2439_v0 = vsel %vm591_vm13, %v4687_v25, %v2437_v62  ;;  %v2445_v32 = vadd.f32 %v2437_v62, %v2420_v3  ;;  %v2438_v1 = vsel %vm591_vm13, %v2433_v60, %v4687_v25  ;;  %v2510_v33 = vpop.permute.xlu2 %2509  ;;  %v3187_v25 = vsel %vm2232_vm2, 1.0, %v4906_v17 }
 0x59c   : > { %v2444_v20 = vadd.f32 %v2439_v0, %v2419_v41  ;;  %v2443_v7 = vadd.f32 %v2438_v1, %v2418_v34  ;;  %v3348_v27 = vpack.i.bf16 %v3187_v25, %v3186_v59  ;;  %v2592_v3 = vmul.f32 %v2589_v18, %v3726_v35 }
 0x5a0   : > { %2860 = vrot.lane.b32.xlu1 %v2855_v31, %s3524_s11  ;;  %2856 = vrot.lane.b32.xlu0 %v2853_v28, %s3524_s11 }
 0x5a1   : > { %2858 = vrot.lane.b32.xlu2 %v2854_v22, %s3524_s11  ;;  %s3537_s11 = smov 6  }
 0x5a2   : > { %v2462_v56 = vpop.permute.xlu1 %2461  ;;  %v2458_v52 = vpop.permute.xlu0 %2457 }
 0x5a3   : > { %v2464_v4 = vsel %vm612_vm14, %v4698_v61, %v2462_v56  ;;  %v2470_v58 = vadd.f32 %v2462_v56, %v2445_v32  ;;  %v2463_v23 = vsel %vm612_vm14, %v2458_v52, %v4698_v61  ;;  %v4740_v11 = vpop.permute.xlu2 %2534 }
 0x5a4   : > { %v2469_v53 = vadd.f32 %v2464_v4, %v2444_v20  ;;  %v2468_v39 = vadd.f32 %v2463_v23, %v2443_v7  ;;  %v2591_v20 = vmul.f32 %v2589_v18, %v3735_v42 }
 0x5a8   : > { %2883 = vrot.lane.b32.xlu1 %v2879_v16, %s3525_s26  ;;  %3349 = vrot.lane.b32.xlu0 %v3348_v27, %s3536_s9 }
 0x5a9   : > { %2881 = vrot.lane.b32.xlu2 %v2878_v6, %s3525_s26 }
 0x5aa   : > { %v2487_v14 = vpop.permute.xlu1 %2486  ;;  %v2483_v61 = vpop.permute.xlu0 %2482 }
 0x5ab   : > { %v2489_v13 = vsel %vm633_vm15, %v4713_v36, %v2487_v14  ;;  %v2495_v15 = vadd.f32 %v2487_v14, %v2470_v58  ;;  %v2488_v49 = vsel %vm633_vm15, %v2483_v61, %v4713_v36  ;;  %v2609_v8 = vpop.permute.xlu2 %2608 }
 0x5ac   : > { %v2494_v19 = vadd.f32 %v2489_v13, %v2469_v53  ;;  %v2493_v30 = vadd.f32 %v2488_v49, %v2468_v39  ;;  %v2617_v17 = vadd.f32 %v2609_v8, %v2592_v3 }
 0x5b0   : > { %2885 = vrot.lane.b32.xlu0 %v2880_v40, %s3525_s26  ;;  %s3211_s26 = sld [smem:[#allocation6 + $0x37]] }
 0x5b1   : > { %3354 = vrot.lane.b32.xlu2 %v3353_v37, %s3537_s11 }
 0x5b2   : > { %v2512_v48 = vpop.permute.xlu1 %2511  ;;  %v2508_v54 = vpop.permute.xlu0 %2507 }
 0x5b3   : > { %v2514_v41 = vsel %vm654_vm0, %v2510_v33, %v2512_v48  ;;  %v4755_v34 = vadd.f32 %v2512_v48, %v2495_v15  ;;  %v2513_v36 = vsel %vm654_vm0, %v2508_v54, %v2510_v33  ;;  %v2631_v2 = vpop.permute.xlu2 %2630 }
 0x5b4   : > { %v4758_v45 = vadd.f32 %v2514_v41, %v2494_v19  ;;  %v2518_v44 = vadd.f32 %v2513_v36, %v2493_v30  ;;  %v2639_v55 = vadd.f32 %v2631_v2, %v2617_v17 }
 0x5b6   : > { %v2729_v30 = vstv %s3211_s26 }
 0x5ba   : > { %v2605_v62 = vpop.permute.xlu1 %2604  ;;  %v2533_v60 = vpop.permute.xlu0 %2532 }
 0x5bb   : > { %v2538_v10 = vsel %vm308_vm4, %v2533_v60, %v4740_v11  ;;  %v2653_v38 = vpop.permute.xlu2 %2652 }
 0x5bc   : > { %v4762_v29 = vadd.f32 %v2538_v10, %v2518_v44  ;;  %v2732_v44 = vmul.f32 %v2729_v30, %v3726_v35 }
 0x5c2   : > { %v2627_v51 = vpop.permute.xlu1 %2626  ;;  %v2607_v0 = vpop.permute.xlu0 %2606 }
 0x5c3   : > { %v2610_v32 = vsel %vm570_vm12, %v2605_v62, %v2607_v0  ;;  %v2611_v1 = vsel %vm570_vm12, %v2607_v0, %v2609_v8  ;;  %v2675_v33 = vpop.permute.xlu2 %2674  ;;  %v2661_v8 = vadd.f32 %v2653_v38, %v2639_v55  ;;  %v2730_v0 = vmul.f32 %v2729_v30, %v3738_v43 }
 0x5c4   : > { %v2615_v7 = vadd.f32 %v2610_v32, %v2590_v12  ;;  %v2616_v31 = vadd.f32 %v2611_v1, %v2591_v20  ;;  %v2738_v32 = vrot.slane %v2732_v44, 1 }
 0x5c5   : > { %v2683_v40 = vadd.f32 %v2675_v33, %v2661_v8 }
 0x5ca   : > { %v2649_v28 = vpop.permute.xlu1 %2648  ;;  %v2629_v22 = vpop.permute.xlu0 %2628 }
 0x5cb   : > { %v2632_v46 = vsel %vm591_vm13, %v2627_v51, %v2629_v22  ;;  %v2633_v59 = vsel %vm591_vm13, %v2629_v22, %v2631_v2  ;;  %v2697_v52 = vpop.permute.xlu2 %2696 }
 0x5cc   : > { %v2637_v25 = vadd.f32 %v2632_v46, %v2615_v7  ;;  %v2638_v56 = vadd.f32 %v2633_v59, %v2616_v31  ;;  %v2705_v41 = vadd.f32 %v2697_v52, %v2683_v40 }
 0x5d2   : > { %v2671_v47 = vpop.permute.xlu1 %2670  ;;  %v2651_v5 = vpop.permute.xlu0 %2650 }
 0x5d3   : > { %v2719_v21 = vpop.permute.xlu2 %2718  ;;  %v2654_v49 = vsel %vm612_vm14, %v2649_v28, %v2651_v5  ;;  %v2655_v3 = vsel %vm612_vm14, %v2651_v5, %v2653_v38  ;;  %v2736_v28 = vrot.slane %v2730_v0, 1 }
 0x5d4   : > { %v2659_v17 = vadd.f32 %v2654_v49, %v2637_v25  ;;  %v2660_v62 = vadd.f32 %v2655_v3, %v2638_v56  ;;  %v2727_v60 = vadd.f32 %v2719_v21, %v2705_v41 }
 0x5d6   : > { %v2744_v35 = vadd.f32 %v2738_v32, %v2727_v60 }
 0x5da   : > { %v2693_v4 = vpop.permute.xlu1 %2692  ;;  %v2673_v58 = vpop.permute.xlu0 %2672 }
 0x5db   : > { %v2761_v53 = vpop.permute.xlu2 %2760  ;;  %v2676_v19 = vsel %vm633_vm15, %v2671_v47, %v2673_v58  ;;  %v2677_v36 = vsel %vm633_vm15, %v2673_v58, %v2675_v33  ;;  %v2731_v33 = vmul.f32 %v2729_v30, %v3735_v42 }
 0x5dc   : > { %v2681_v2 = vadd.f32 %v2676_v19, %v2659_v17  ;;  %v2682_v38 = vadd.f32 %v2677_v36, %v2660_v62  ;;  %v2769_v59 = vadd.f32 %v2761_v53, %v2744_v35 }
 0x5dd   : > { %v2737_v56 = vrot.slane %v2731_v33, 1 }
 0x5e2   : > { %v2715_v23 = vpop.permute.xlu1 %2714  ;;  %v2695_v63 = vpop.permute.xlu0 %2694 }
 0x5e3   : > { %v2786_v16 = vpop.permute.xlu2 %2785  ;;  %v2698_v48 = vsel %vm654_vm0, %v2693_v4, %v2695_v63  ;;  %v2699_v10 = vsel %vm654_vm0, %v2695_v63, %v2697_v52 }
 0x5e4   : > { %v2703_v51 = vadd.f32 %v2698_v48, %v2681_v2  ;;  %v2704_v20 = vadd.f32 %v2699_v10, %v2682_v38  ;;  %v2794_v47 = vadd.f32 %v2786_v16, %v2769_v59 }
 0x5ea   : > { %v2757_v39 = vpop.permute.xlu1 %2756  ;;  %v2717_v27 = vpop.permute.xlu0 %2716 }
 0x5eb   : > { %v2811_v61 = vpop.permute.xlu2 %2810  ;;  %v2720_v55 = vsel %vm308_vm4, %v2715_v23, %v2717_v27  ;;  %v2721_v1 = vsel %vm308_vm4, %v2717_v27, %v2719_v21 }
 0x5ec   : > { %v2725_v12 = vadd.f32 %v2720_v55, %v2703_v51  ;;  %v2726_v22 = vadd.f32 %v2721_v1, %v2704_v20  ;;  %v2819_v58 = vadd.f32 %v2811_v61, %v2794_v47 }
 0x5ee   : > { %v2742_v25 = vadd.f32 %v2736_v28, %v2725_v12  ;;  %v2743_v4 = vadd.f32 %v2737_v56, %v2726_v22 }
 0x5f2   : > { %v2782_v6 = vpop.permute.xlu1 %2781  ;;  %v2759_v14 = vpop.permute.xlu0 %2758 }
 0x5f3   : > { %v4770_v9 = vpop.permute.xlu2 %2835  ;;  %v2762_v46 = vsel %vm570_vm12, %v2757_v39, %v2759_v14  ;;  %v2763_v5 = vsel %vm570_vm12, %v2759_v14, %v2761_v53  ;;  %vm2901_vm12 = vcmask 48128  }
 0x5f4   : > { %v2767_v21 = vadd.f32 %v2762_v46, %v2742_v25  ;;  %v2768_v27 = vadd.f32 %v2763_v5, %v2743_v4  ;;  %v2844_v41 = vadd.f32 %v4770_v9, %v2819_v58 }
 0x5fa   : > { %v2807_v26 = vpop.permute.xlu1 %2806  ;;  %v2784_v24 = vpop.permute.xlu0 %2783 }
 0x5fb   : > { %v2859_v54 = vpop.permute.xlu2 %2858  ;;  %v2787_v43 = vsel %vm591_vm13, %v2782_v6, %v2784_v24  ;;  %v2788_v23 = vsel %vm591_vm13, %v2784_v24, %v2786_v16  ;;  %vm2569_vm13 = vcmask 1006592  }
 0x5fc   : > { %v2792_v63 = vadd.f32 %v2787_v43, %v2767_v21  ;;  %v2793_v40 = vadd.f32 %v2788_v23, %v2768_v27 }
 0x602   : > { %v2832_v13 = vpop.permute.xlu1 %2831  ;;  %v2809_v15 = vpop.permute.xlu0 %2808 }
 0x603   : > { %v2882_v52 = vpop.permute.xlu2 %2881  ;;  %v2812_v42 = vsel %vm612_vm14, %v2807_v26, %v2809_v15  ;;  %v2813_v49 = vsel %vm612_vm14, %v2809_v15, %v2811_v61  ;;  %vm2918_vm14 = vcmask 998400  }
 0x604   : > { %v2817_v19 = vadd.f32 %v2812_v42, %v2792_v63  ;;  %v2818_v17 = vadd.f32 %v2813_v49, %v2793_v40 }
 0x60a   : > { %v2537_v18 = vpop.permute.xlu1 %2536  ;;  %v2834_v37 = vpop.permute.xlu0 %2833 }
 0x60b   : > { %v2539_v39 = vsel %vm308_vm4, %v4740_v11, %v2537_v18  ;;  %v2837_v6 = vsel %vm633_vm15, %v2832_v13, %v2834_v37  ;;  %v2545_v53 = vadd.f32 %v2537_v18, %v4755_v34  ;;  %v2838_v24 = vsel %vm633_vm15, %v2834_v37, %v4770_v9  ;;  %v3355_v18 = vpop.permute.xlu2 %3354 }
 0x60c   : > { %v2544_v16 = vadd.f32 %v2539_v39, %v4758_v45  ;;  %v2842_v3 = vadd.f32 %v2837_v6, %v2817_v19  ;;  %v3357_v2 = vunpack.i.h.bf16 %v3355_v18  ;;  %v2843_v37 = vadd.f32 %v2838_v24, %v2818_v17  ;;  %v4940_v24 = vld [vmem:[#allocation35_spill] sm:$0xff] }
 0x612   : > { %v2861_v7 = vpop.permute.xlu1 %2860  ;;  %v2857_v31 = vpop.permute.xlu0 %2856 }
 0x613   : > { %v2862_v11 = vsel %vm654_vm0, %v2857_v31, %v2859_v54  ;;  %v2863_v36 = vsel %vm654_vm0, %v2859_v54, %v2861_v7  ;;  %v2869_v44 = vadd.f32 %v2861_v7, %v2844_v41  ;;  %v3540_v31 = vmov 2.0  }
 0x614   : > { %v2867_v45 = vadd.f32 %v2862_v11, %v2842_v3  ;;  %v2868_v55 = vadd.f32 %v2863_v36, %v2843_v37  ;;  %3378 = vrcp.f32 %v3540_v31  ;;  %v3393_v31 = vld [vmem:[%s3671_s22 + $0x28] sm:$0xff] }
 0x61a   : > { %v3350_v8 = vpop.permute.xlu0 %3349  ;;  %v2884_v14 = vpop.permute.xlu1 %2883 }
 0x61b   : > { %v3352_v30 = vunpack.i.h.bf16 %v3350_v8  ;;  %v3351_v26 = vunpack.i.l.bf16 %v3350_v8  ;;  %v2887_v48 = vsel %vm308_vm4, %v2882_v52, %v2884_v14  ;;  %v3379_v21 = vpop.eup %3378 }
 0x61c   : > { %v2892_v62 = vadd.f32 %v2887_v48, %v2867_v45  ;;  %v440_v4 = vmul.f32 2.0, %v3379_v21 }
 0x61d   : > { %v2559_v61 = vmul.f32 %v3352_v30, %v2545_v53  ;;  %v2553_v15 = vsel %vm2552_vm7, %v3351_v26, %v3352_v30  ;;  %v2557_v13 = vmul.f32 %v3351_v26, %v4762_v29  ;;  %v3356_v29 = vunpack.i.l.bf16 %v3355_v18  ;;  %v4942_v18 = vld [vmem:[#allocation38_spill] sm:$0xff] }
 0x61e   : > { %v2558_v34 = vmul.f32 %v2553_v15, %v2544_v16  ;;  %v441_v58 = vsub.f32 1.0, %v440_v4  ;;  %v4941_v15 = vld [vmem:[#allocation36_spill] sm:$0xff] }
 0x61f   : > { %2567 = vrot.lane.b32.xlu2 %v2559_v61, %s3538_s5  ;;  %2563 = vrot.lane.b32.xlu1 %v2557_v13, %s3538_s5  ;;  %v2902_v0 = vsel %vm2901_vm12, %v3356_v29, %v3357_v2  ;;  %v2906_v38 = vmul.f32 %v3356_v29, %v2892_v62  ;;  %v4943_v29 = vld [vmem:[#allocation37_spill] sm:$0xff] }
 0x620   : > { %2565 = vrot.lane.b32.xlu0 %v2558_v34, %s3538_s5 }
 0x622   : > { %v2886_v60 = vpop.permute.xlu0 %2885 }
 0x623   : > { %v2888_v10 = vsel %vm308_vm4, %v2884_v14, %v2886_v60  ;;  %v2894_v51 = vadd.f32 %v2886_v60, %v2869_v44  ;;  %vm444_vm4 = vweird.f32 %v3379_v21  ;;  %v3389_v60 = vld [vmem:[%s3671_s22 + $0x10] sm:$0xff] }
 0x624   : > { %v2893_v9 = vadd.f32 %v2888_v10, %v2868_v55 }
 0x625   : > { %v2908_v54 = vmul.f32 %v3357_v2, %v2894_v51  ;;  %v3388_v2 = vld [vmem:[%s3671_s22] sm:$0xff] }
 0x626   : > { %v2907_v32 = vmul.f32 %v2902_v0, %v2893_v9  ;;  %v3390_v9 = vld [vmem:[%s3671_s22 + $0x8] sm:$0xff] }
 0x627   : > { %2916 = vrot.lane.b32.xlu2 %v2908_v54, %s3539_s10  ;;  %2912 = vrot.lane.b32.xlu1 %v2906_v38, %s3539_s10  ;;  %v3391_v54 = vld [vmem:[%s3671_s22 + $0x18] sm:$0xff] }
 0x628   : > { %2914 = vrot.lane.b32.xlu0 %v2907_v32, %s3539_s10 }
 0x679   : > { %v2568_v1 = vpop.permute.xlu2 %2567 }
 0x681   : > { %v2917_v28 = vpop.permute.xlu2 %2916 }
 0x691   : > { %v2564_v12 = vpop.permute.xlu1 %2563 }
 0x692   : > { %v2566_v20 = vpop.permute.xlu0 %2565 }
 0x693   : > { %v2570_v33 = vsel %vm2569_vm13, %v2564_v12, %v2566_v20  ;;  %v2571_v7 = vsel %vm2569_vm13, %v2566_v20, %v2568_v1  ;;  %v3392_v12 = vld [vmem:[%s3671_s22 + $0x20] sm:$0xff] }
 0x694   : > { %v2574_v22 = vadd.f32 %v2570_v33, %v4636_v57  ;;  %v2575_v46 = vadd.f32 %v2571_v7, %v4634_v50  ;;  %v442_v57 = vmul.f32 %v3379_v21, %v441_v58 }
 0x696   : > { %v443_v50 = vadd.f32 %v3379_v21, %v442_v57 }
 0x698   : > { %v445_v19 = vsel %vm444_vm4, %v3379_v21, %v443_v50 }
 0x699   : > { %v2913_v35 = vpop.permute.xlu1 %2912  ;;  %v446_v11 = vmul.f32 %v445_v19, %v4940_v24  ;;  %v447_v13 = vmul.f32 %v445_v19, %v4941_v15  ;;  %v448_v41 = vmul.f32 %v445_v19, %v4942_v18  ;;  %v449_v55 = vmul.f32 %v445_v19, %v4943_v29 }
 0x69a   : > { %v2915_v59 = vpop.permute.xlu0 %2914 }
 0x69b   : > { %v2919_v25 = vsel %vm2918_vm14, %v2913_v35, %v2915_v59  ;;  %v2920_v56 = vsel %vm2918_vm14, %v2915_v59, %v2917_v28  ;;  %v2963_v37 = vmul.f32 %v3388_v2, %v446_v11  ;;  %v2965_v10 = vmul.f32 %v3389_v60, %v447_v13 }
 0x69c   : > { %v2923_v43 = vadd.f32 %v2919_v25, %v2574_v22  ;;  %v2924_v52 = vadd.f32 %v2920_v56, %v2575_v46  ;;  %v2964_v38 = vmul.f32 %v3390_v9, %v446_v11  ;;  %v2966_v32 = vmul.f32 %v3391_v54, %v447_v13  ;;  %v3394_v46 = vld [vmem:[%s3671_s22 + $0x30] sm:$0xff]  ;;  %v3395_v56 = vld [vmem:[%s3671_s22 + $0x38] sm:$0xff]  ;;  %s3457_s22 = scalar_lea.hbm %s3456_s30, 64 }
 0x69d   : > { %v2967_v20 = vmul.f32 %v3392_v12, %v448_v41  ;;  %v2968_v35 = vmul.f32 %v3393_v31, %v448_v41  ;;  %v2969_v59 = vmul.f32 %v3394_v46, %v449_v55  ;;  %p3458_p4 = scmp.ne.s32.totalorder %s3456_s30, %s3457_s22  ;;  %p3463_p3 = scmp.lt.s32.totalorder %s3461_s6, %s3457_s22 }
 0x69e   : > { %v3218_v47 = vmul.f32 -1.442695, %v2923_v43  ;;  %v3219_v5 = vmul.f32 -1.442695, %v2924_v52  ;;  %v2970_v43 = vmul.f32 %v3395_v56, %v449_v55 }
 0x69f   : > { %p3459_p6 = pnand %p3458_p4, %p3620_p11  ;;  %p3464_p5 = por %p3463_p3, %p3462_p0 }
 0x6a0   : > { %3380 = vpow2.f32 %v3218_v47 }
 0x6a1   : > { %3382 = vpow2.f32 %v3219_v5  ;;  %p3460_p13 = pneg %p3459_p6 }
 0x6a3   : > { %p3465_p8 = pnand %p3464_p5, %p3460_p13 }
 0x6a6   : > { %v3381_v42 = vpop.eup %3380 }
 0x6a7   : > { %v3383_v23 = vpop.eup %3382  ;;  %v2931_v63 = vadd.f32 1.0, %v3381_v42 }
 0x6a8   : > { %v2932_v39 = vadd.f32 1.0, %v3383_v23 }
 0x6a9   : > { %3384 = vrcp.f32 %v2931_v63  ;;  %v2944_v14 = vand.u32 2147483648, %v2931_v63  ;;  %v2942_v40 = vand.u32 2147483647, %v2931_v63  ;;  %vm2938_vm8 = vweird.f32 %v2931_v63 }
 0x6aa   : > { %3386 = vrcp.f32 %v2932_v39  ;;  %v2959_v16 = vand.u32 2147483648, %v2932_v39  ;;  %v2957_v61 = vand.u32 2147483647, %v2932_v39  ;;  %vm2953_vm11 = vweird.f32 %v2932_v39 }
 0x6ab   : > { %v2945_v48 = vor.u32 1.1754944e-38, %v2944_v14  ;;  %vm2943_vm3 = vcmp.eq.f32.partialorder %v2942_v40, 8.507059e+37 }
 0x6ac   : > { %v2960_v45 = vor.u32 1.1754944e-38, %v2959_v16  ;;  %vm2958_vm10 = vcmp.eq.f32.partialorder %v2957_v61, 8.507059e+37 }
 0x6af   : > { %v3385_v27 = vpop.eup %3384 }
 0x6b0   : > { %v3387_v49 = vpop.eup %3386  ;;  %v2934_v6 = vmul.f32 %v3385_v27, %v2931_v63  ;;  %vm2939_vm15 = vweird.f32 %v3385_v27 }
 0x6b1   : > { %v2949_v8 = vmul.f32 %v3387_v49, %v2932_v39  ;;  %vm2954_vm0 = vweird.f32 %v3387_v49  ;;  %vm2940_vm9 = vmor %vm2938_vm8, %vm2939_vm15 }
 0x6b2   : > { %v2935_v53 = vsub.f32 1.0, %v2934_v6  ;;  %vm2955_vm1 = vmor %vm2953_vm11, %vm2954_vm0 }
 0x6b3   : > { %v2950_v30 = vsub.f32 1.0, %v2949_v8 }
 0x6b4   : > { %v2936_v26 = vmul.f32 %v3385_v27, %v2935_v53 }
 0x6b5   : > { %v2951_v3 = vmul.f32 %v3387_v49, %v2950_v30 }
 0x6b6   : > { %v2937_v17 = vadd.f32 %v3385_v27, %v2936_v26 }
 0x6b7   : > { %v2952_v34 = vadd.f32 %v3387_v49, %v2951_v3 }
 0x6b8   : > { %v2941_v36 = vsel %vm2940_vm9, %v3385_v27, %v2937_v17 }
 0x6b9   : > { %v2946_v44 = vsel %vm2943_vm3, %v2945_v48, %v2941_v36  ;;  %v2956_v62 = vsel %vm2955_vm1, %v3387_v49, %v2952_v34 }
 0x6ba   : > { %v2961_v51 = vsel %vm2958_vm10, %v2960_v45, %v2956_v62  ;;  %v2971_v0 = vperm.slane %v2946_v44, 0 }
 0x6bb   : > { %v2972_v1 = vperm.slane %v2961_v51, 0 }
 0x6bc   : > { %v2973_v33 = vmul.f32 %v2971_v0, %v2963_v37  ;;  %v2975_v7 = vmul.f32 %v2971_v0, %v2965_v10  ;;  %v2977_v25 = vmul.f32 %v2971_v0, %v2967_v20  ;;  %v2979_v47 = vmul.f32 %v2971_v0, %v2969_v59 }
 0x6bd   : > { %v2974_v28 = vmul.f32 %v2972_v1, %v2964_v38  ;;  %v2976_v22 = vmul.f32 %v2972_v1, %v2966_v32  ;;  %v2978_v52 = vmul.f32 %v2972_v1, %v2968_v35  ;;  %v2980_v5 = vmul.f32 %v2972_v1, %v2970_v43 }
 0x6be   : > { %2981 = vst [vmem:[%s231_s29] sm:$0xff] %v2973_v33 }
 0x6bf   : > { %2982 = vst [vmem:[%s231_s29 + $0x8] sm:$0xff] %v2974_v28 }
 0x6c0   : > { %2983 = vst [vmem:[%s231_s29 + $0x10] sm:$0xff] %v2975_v7 }
 0x6c1   : > { %2984 = vst [vmem:[%s231_s29 + $0x18] sm:$0xff] %v2976_v22 }
 0x6c2   : > { %2985 = vst [vmem:[%s231_s29 + $0x20] sm:$0xff] %v2977_v25 }
 0x6c3   : > { %2986 = vst [vmem:[%s231_s29 + $0x28] sm:$0xff] %v2978_v52 }
 0x6c4   : > { %2987 = vst [vmem:[%s231_s29 + $0x30] sm:$0xff] %v2979_v47 }
 0x6c5   : > { %2988 = vst [vmem:[%s231_s29 + $0x38] sm:$0xff] %v2980_v5 }
 0x6c6   : > { %3468 = shalt.err (!%p3465_p8)
}
 0x6c7   : > { %s3541_s14 = smov 256   ;;  %s3542_s26 = smov 16  }
 0x6c8   : > { %3245 = dma.vmem_to_hbm [thread:$0]  (%p3620_p11), %s3003_s8, 1024, %s3005_s13, %s2990_s3, %s3541_s14, %s3541_s14, %s3542_s26  }
 0x6c9 PF: > { %s3019_s5 = sand.u32 1, %s3499_s15   ;;  %p4944_p9 = scmp.ge.s32.totalorder %s3511_s18, 2 }
 0x6ca   : > { %s3020_s10 = scalar_lea.sflag [#allocation4], %s3019_s5 }
 0x6cb   : > { %p3256_p10 = pnand %p4944_p9, %p3624_p12 }
 0x6cd   : > { %p3257_p1 = pneg %p3256_p10 }
 0x6cf   : > { %3494 = dma.done.wait (%p3257_p1), %s3020_s10, 1024  }
 0x6d0   : > { %3496 = vsyncadd (%p3257_p1), %s3020_s10, 4294966272  ;;  %p18_p2 = scmp.ge.s32.totalorder %s3593_s21, 4   ;;  %s4945_s15 = smov %s3503_s16 }
 0x6d1   : > { %s4946_s16 = smov %s3507_s17  ;;  %s4947_s17 = smov %s3605_s24 }
 0x6d2   : > { %s4948_s18 = smov %s3593_s21  ;;  %20 = sbr.rel (!%p18_p2) target bundleno = 8 (0x8), region = 86 }
 0x6d7   :  { %3026 = vsyncpa [#allocation3], 1 }
 0x6d8   :  { %3028 = vsyncpa [#allocation3 + $0x1], 1 }
 0x6d9   :  { %3029 = vsyncpa [#allocation4], 1 }
 0x6da   :  { %3031 = vsyncpa [#allocation4 + $0x1], 1 }
 0x6db   :  { %3032 = vsyncpa [#allocation5], 1 }
 0x6dc   :  { %3034 = vsyncpa [#allocation5 + $0x1], 1 }

</bundles_post_ra>
